<compile_context>
chip_gen: v6e
topology: v6e:2x2x1
jax: 0.10.0
libtpu: 0.0.40
codegen_flags: <defaults>
</compile_context>

<pallas_src>
import math

import jax
import jax.numpy as jnp
from jax.experimental import pallas as pl
from jax.experimental.pallas import tpu as pltpu

_DEFAULT_BATCH_TILE = 2048  # upper bound on rows per grid step (all TPU gens)


def _round_up(x, m):
    return ((x + m - 1) // m) * m


def _cdiv(a, b):
    return -(-a // b)


def _pick_batch_tile(batch, max_tile=_DEFAULT_BATCH_TILE):
    """Largest 128-multiple tile <= max_tile, but small enough that the
    parallel batch axis has >= 2 grid steps when the batch allows it
    (v7x shards the parallel axis over its 2 TensorCores)."""
    tb = min(max_tile, _round_up(_cdiv(batch, 2), 128))
    return max(tb, 128)


# ----------------------------- Pallas kernel -----------------------------

def _make_qfunc_kernel(num_hidden, n_rep, act_dim):
    """Build the MLP kernel for `num_hidden` hidden layers and n_rep actions.

    Ref order:
      obs_ref  : (TB, O)          f32
      act_ref  : (TB, N*A)        f32   (all N actions of each row)
      w1o_ref  : (O, H1)          bf16
      w1a_ref  : (A, H1)          bf16
      b1_ref   : (1, H1)          f32
      [w_k (H_{k-1}, H_k) bf16, b_k (1, H_k) f32] * (num_hidden - 1)
      w_last   : (1, H_last)      f32   (row vector of the [H_last, 1] weight)
      b_last   : (1,)             f32   (SMEM scalar)
      out_ref  : (N, TB)          f32   (lane-dense: batch along lanes)
    """

    def kernel(*refs):
        out_ref = refs[-1]
        obs_ref, act_ref = refs[0], refs[1]
        w1o_ref, w1a_ref, b1_ref = refs[2], refs[3], refs[4]
        idx = 5
        mid_refs = []
        for _ in range(num_hidden - 1):
            mid_refs.append((refs[idx], refs[idx + 1]))
            idx += 2
        w_last_ref, b_last_ref = refs[idx], refs[idx + 1]

        # Layer 1, observation half: computed once per batch tile and reused
        # for all N actions (bf16 operands, f32 accumulation).
        obs = obs_ref[...].astype(jnp.bfloat16)
        h_obs = jnp.dot(obs, w1o_ref[...], preferred_element_type=jnp.float32)
        h_obs = h_obs + b1_ref[...]

        w_last = w_last_ref[...]          # (1, H_last) f32
        b_last = b_last_ref[0]            # SMEM scalar

        # Static unroll over the N actions of this batch tile.
        for n in range(n_rep):
            act = act_ref[:, pl.ds(n * act_dim, act_dim)].astype(jnp.bfloat16)
            h = h_obs + jnp.dot(act, w1a_ref[...],
                                preferred_element_type=jnp.float32)
            h = jnp.maximum(h, 0.0)

            # Remaining hidden layers: full [TB, H] x [H, H] MXU matmuls.
            for w_ref, b_ref in mid_refs:
                h = jnp.dot(h.astype(jnp.bfloat16), w_ref[...],
                            preferred_element_type=jnp.float32)
                h = jnp.maximum(h + b_ref[...], 0.0)

            # Final layer has a single output unit: VPU multiply + lane
            # reduction instead of a [TB, H] x [H, 1] matmul.
            q = jnp.sum(h * w_last, axis=-1) + b_last          # (TB,)

            # Lane-dense store: one (1, TB) row of the (N, TB) output block.
            out_ref[pl.ds(n, 1), :] = q[None, :].astype(out_ref.dtype)

    return kernel


def _qfunc_forward(observations, act_flat, n_rep, act_dim, params, num_hidden,
                   max_tile=_DEFAULT_BATCH_TILE):
    """observations: [B, O] f32, act_flat: [B, N*A] f32 -> q: [N, B] f32."""
    batch, obs_dim = observations.shape

    tb = _pick_batch_tile(batch, max_tile)
    grid = (_cdiv(batch, tb),)            # partial trailing tile handled by Pallas

    vmem_params = params[:-1]             # all 2-D weight/bias arrays
    b_last = params[-1]                   # (1,) f32 scalar -> SMEM

    obs_spec = pl.BlockSpec((tb, obs_dim), lambda i: (i, 0))
    act_spec = pl.BlockSpec((tb, n_rep * act_dim), lambda i: (i, 0))
    # Constant index maps -> weights are DMA'd once and stay VMEM-resident.
    param_specs = [pl.BlockSpec(p.shape, lambda i: (0, 0)) for p in vmem_params]
    smem_spec = pl.BlockSpec(memory_space=pltpu.MemorySpace.SMEM)

    # Output [N, B] with the batch along lanes (lane-dense stores).
    out_spec = pl.BlockSpec((n_rep, tb), lambda i: (0, i))

    # VMEM budget estimate (double-buffered I/O tiles + weights + live
    # activation values), 2x safety, capped under v7x's 64 MiB physical VMEM.
    lane = 128
    hidden_max = max(int(p.shape[-1]) for p in vmem_params)
    io_bytes = 2 * tb * 4 * (_round_up(obs_dim, lane)
                             + _round_up(n_rep * act_dim, lane))
    io_bytes += 2 * _round_up(n_rep, 8) * _round_up(tb, lane) * 4
    w_bytes = 2 * sum(int(p.size) * p.dtype.itemsize for p in vmem_params)
    act_bytes = 6 * tb * _round_up(hidden_max, lane) * 4
    est = io_bytes + w_bytes + act_bytes
    vmem_limit = int(min(max(2 * est, 32 * 1024 * 1024), 48 * 1024 * 1024))

    kernel = _make_qfunc_kernel(num_hidden, n_rep, act_dim)

    out = pl.pallas_call(
        kernel,
        out_shape=jax.ShapeDtypeStruct((n_rep, batch), jnp.float32),
        grid_spec=pltpu.PrefetchScalarGridSpec(
            num_scalar_prefetch=0,
            grid=grid,
            in_specs=[obs_spec, act_spec] + param_specs + [smem_spec],
            out_specs=out_spec,
        ),
        compiler_params=pltpu.CompilerParams(
            dimension_semantics=("parallel",),
            vmem_limit_bytes=vmem_limit,
        ),
    )(observations, act_flat, *vmem_params, b_last)

    return out  # [N, B]


# ------------------------- Module-equivalent wrapper -------------------------

class FullyConnectedQFunctionPallas:
    """JAX/Pallas re-implementation of FullyConnectedQFunction (p=0.0, eval)."""

    def __init__(self, observation_dim, action_dim, arch="256-256",
                 orthogonal_init=False, key=None):
        self.observation_dim = observation_dim
        self.action_dim = action_dim
        hidden_sizes = [int(h) for h in arch.split("-")]
        self.num_hidden = len(hidden_sizes)
        if key is None:
            key = jax.random.PRNGKey(0)

        d = observation_dim + action_dim
        dims = []
        for h in hidden_sizes:
            dims.append((d, h))
            d = h
        dims.append((d, 1))  # last_fc

        keys = jax.random.split(key, 2 * len(dims))
        params = []
        for li, (fan_in, fan_out) in enumerate(dims):
            kw, kb = keys[2 * li], keys[2 * li + 1]
            is_last = li == len(dims) - 1
            if is_last:
                # xavier_uniform_ with gain=0.01, bias = 0
                limit = 0.01 * math.sqrt(6.0 / (fan_in + fan_out))
                w = jax.random.uniform(kw, (fan_in, fan_out), jnp.float32,
                                       -limit, limit)
                params.append(jnp.transpose(w))               # (1, fan_in) f32
                params.append(jnp.zeros((1,), jnp.float32))   # SMEM scalar bias
            else:
                # nn.Linear default: kaiming-uniform weight, uniform bias
                limit = 1.0 / math.sqrt(fan_in)
                w = jax.random.uniform(kw, (fan_in, fan_out), jnp.float32,
                                       -limit, limit)
                b = jax.random.uniform(kb, (1, fan_out), jnp.float32,
                                       -limit, limit)
                if li == 0:
                    # Split W1 so the kernel never materializes concat([obs, act]).
                    params.append(w[:observation_dim].astype(jnp.bfloat16))
                    params.append(w[observation_dim:].astype(jnp.bfloat16))
                    params.append(b)
                else:
                    params.append(w.astype(jnp.bfloat16))
                    params.append(b)
        self.params = tuple(params)
        # TODO(synk): orthogonal_init branch (nn.init.orthogonal_) not
        # reimplemented; default (orthogonal_init=False) path is exact.

    def __call__(self, observations, actions):
        observations = jnp.asarray(observations, jnp.float32)
        actions = jnp.asarray(actions, jnp.float32)

        multiple_actions = actions.ndim == 3 and observations.ndim == 2
        if multiple_actions:
            n_rep = actions.shape[1]
            # [B, N, A] -> [B, N*A]: contiguous reshape, no HBM transpose.
            act_flat = actions.reshape(actions.shape[0], n_rep * actions.shape[2])
        else:
            n_rep = 1
            act_flat = actions                                # [B, A]

        q_nb = _qfunc_forward(observations, act_flat, n_rep, self.action_dim,
                              self.params, self.num_hidden)   # [N, B]

        if multiple_actions:
            return jnp.transpose(q_nb)                        # [B, N]
        return q_nb[0]                                        # [B]


# ----------------------------- pure-JAX reference -----------------------------

def _reference_qfunc(observations, actions, params, num_hidden):
    multiple = actions.ndim == 3 and observations.ndim == 2
    batch = observations.shape[0]
    if multiple:
        n_rep = actions.shape[1]
        obs = jnp.repeat(observations[:, None, :], n_rep, axis=1)
        obs = obs.reshape(-1, observations.shape[-1])
        act = actions.reshape(-1, actions.shape[-1])
    else:
        obs, act = observations, actions
    x = jnp.concatenate([obs, act], axis=-1)

    w1 = jnp.concatenate([params[0].astype(jnp.float32),
                          params[1].astype(jnp.float32)], axis=0)
    h = jnp.maximum(x @ w1 + params[2], 0.0)
    idx = 3
    for _ in range(num_hidden - 1):
        w, b = params[idx].astype(jnp.float32), params[idx + 1]
        idx += 2
        h = jnp.maximum(h @ w + b, 0.0)
    w_last, b_last = params[idx], params[idx + 1]
    q = jnp.squeeze(h @ jnp.transpose(w_last) + b_last, axis=-1)
    if multiple:
        q = q.reshape(batch, -1)
    return q


# ----------------------------------- main -----------------------------------

if __name__ == "__main__":
    obs_dim, act_dim = 16, 8

    qf = FullyConnectedQFunctionPallas(obs_dim, act_dim, arch="256-256",
                                       key=jax.random.PRNGKey(0))

    key = jax.random.PRNGKey(0)
    k_obs, k_act, k_obs2, k_act2 = jax.random.split(key, 4)

    # --- small-shape smoke test (single partial tile) ---
    batch, n_actions = 2, 4
    observations = jax.random.normal(k_obs, (batch, obs_dim), jnp.float32)
    actions = jax.random.normal(k_act, (batch, n_actions, act_dim), jnp.float32)

    # multiple-actions path: [B, N] output
    q_multi = qf(observations, actions)
    jax.block_until_ready(q_multi)
    assert q_multi.shape == (batch, n_actions), q_multi.shape
    ref_multi = _reference_qfunc(observations, actions, qf.params, qf.num_hidden)
    assert jnp.allclose(q_multi, ref_multi, rtol=5e-2, atol=2e-2)

    # single-action path: [B] output
    q_single = qf(observations, actions[:, 0, :])
    jax.block_until_ready(q_single)
    assert q_single.shape == (batch,), q_single.shape
    ref_single = _reference_qfunc(observations, actions[:, 0, :], qf.params,
                                  qf.num_hidden)
    assert jnp.allclose(q_single, ref_single, rtol=5e-2, atol=2e-2)

    # --- multi-tile path with a partial trailing tile (no pre-kernel pad) ---
    batch2, n2 = 300, 3
    obs2 = jax.random.normal(k_obs2, (batch2, obs_dim), jnp.float32)
    act2 = jax.random.normal(k_act2, (batch2, n2, act_dim), jnp.float32)
    q2 = qf(obs2, act2)
    jax.block_until_ready(q2)
    assert q2.shape == (batch2, n2), q2.shape
    ref2 = _reference_qfunc(obs2, act2, qf.params, qf.num_hidden)
    assert jnp.allclose(q2, ref2, rtol=5e-2, atol=2e-2)

    print("KERNEL_OK")
</pallas_src>

<mosaic_0001>
module attributes {stable_mosaic.version = 11 : i64} {
  func.func @kernel(%arg0: i32, %arg1: memref<128x16xf32, #tpu.memory_space<vmem>>, %arg2: memref<128x32xf32, #tpu.memory_space<vmem>>, %arg3: memref<16x256xbf16, #tpu.memory_space<vmem>>, %arg4: memref<8x256xbf16, #tpu.memory_space<vmem>>, %arg5: memref<1x256xf32, #tpu.memory_space<vmem>>, %arg6: memref<256x256xbf16, #tpu.memory_space<vmem>>, %arg7: memref<1x256xf32, #tpu.memory_space<vmem>>, %arg8: memref<1x256xf32, #tpu.memory_space<vmem>>, %arg9: memref<1xf32, #tpu.memory_space<smem>>, %arg10: memref<4x128xf32, #tpu.memory_space<vmem>>) attributes {dimension_semantics = [#tpu.dimension_semantics<parallel>], iteration_bounds = array<i64: 1>, scalar_prefetch = 0 : i64, scratch_operands = 0 : i64, tpu.core_type = #tpu.core_type<tc>, window_params = [{transform_indices = @transform_0, window_bounds = array<i64: 128, 16>}, {transform_indices = @transform_1, window_bounds = array<i64: 128, 32>}, {pipeline_mode = #tpu.pipeline_mode<synchronous>, transform_indices = @transform_2, window_bounds = array<i64: 16, 256>}, {pipeline_mode = #tpu.pipeline_mode<synchronous>, transform_indices = @transform_3, window_bounds = array<i64: 8, 256>}, {pipeline_mode = #tpu.pipeline_mode<synchronous>, transform_indices = @transform_4, window_bounds = array<i64: 1, 256>}, {pipeline_mode = #tpu.pipeline_mode<synchronous>, transform_indices = @transform_5, window_bounds = array<i64: 256, 256>}, {pipeline_mode = #tpu.pipeline_mode<synchronous>, transform_indices = @transform_6, window_bounds = array<i64: 1, 256>}, {pipeline_mode = #tpu.pipeline_mode<synchronous>, transform_indices = @transform_7, window_bounds = array<i64: 1, 256>}, {transform_indices = @transform_8, window_bounds = array<i64: 1>}, {transform_indices = @transform_9, window_bounds = array<i64: 4, 128>}]} {
    %c0 = arith.constant 0 : index
    %c0_0 = arith.constant 0 : index
    %0 = vector.load %arg1[%c0, %c0_0] : memref<128x16xf32, #tpu.memory_space<vmem>>, vector<128x16xf32>
    %1 = arith.truncf %0 : vector<128x16xf32> to vector<128x16xbf16>
    %c0_1 = arith.constant 0 : index
    %c0_2 = arith.constant 0 : index
    %2 = vector.load %arg3[%c0_1, %c0_2] : memref<16x256xbf16, #tpu.memory_space<vmem>>, vector<16x256xbf16>
    %cst = arith.constant dense<0.000000e+00> : vector<128x256xf32>
    %3 = tpu.matmul %1, %2, %cst {dimension_numbers = #tpu.dot_dimension_numbers<[1], [0], [0], [1], [0, 0, 1, 1], [], []>} : vector<128x16xbf16>, vector<16x256xbf16>, vector<128x256xf32> -> vector<128x256xf32>
    %c0_3 = arith.constant 0 : index
    %c0_4 = arith.constant 0 : index
    %4 = vector.load %arg5[%c0_3, %c0_4] : memref<1x256xf32, #tpu.memory_space<vmem>>, vector<1x256xf32>
    %5 = vector.broadcast %4 : vector<1x256xf32> to vector<128x256xf32>
    %6 = arith.addf %3, %5 : vector<128x256xf32>
    %c0_5 = arith.constant 0 : index
    %c0_6 = arith.constant 0 : index
    %7 = vector.load %arg8[%c0_5, %c0_6] : memref<1x256xf32, #tpu.memory_space<vmem>>, vector<1x256xf32>
    %c0_7 = arith.constant 0 : index
    %8 = memref.load %arg9[%c0_7] : memref<1xf32, #tpu.memory_space<smem>>
    %c0_8 = arith.constant 0 : index
    %c0_9 = arith.constant 0 : index
    %9 = vector.load %arg2[%c0_8, %c0_9] : memref<128x32xf32, #tpu.memory_space<vmem>>, vector<128x8xf32>
    %10 = arith.truncf %9 : vector<128x8xf32> to vector<128x8xbf16>
    %c0_10 = arith.constant 0 : index
    %c0_11 = arith.constant 0 : index
    %11 = vector.load %arg4[%c0_10, %c0_11] : memref<8x256xbf16, #tpu.memory_space<vmem>>, vector<8x256xbf16>
    %cst_12 = arith.constant dense<0.000000e+00> : vector<128x256xf32>
    %12 = tpu.matmul %10, %11, %cst_12 {dimension_numbers = #tpu.dot_dimension_numbers<[1], [0], [0], [1], [0, 0, 1, 1], [], []>} : vector<128x8xbf16>, vector<8x256xbf16>, vector<128x256xf32> -> vector<128x256xf32>
    %13 = arith.addf %6, %12 : vector<128x256xf32>
    %cst_13 = arith.constant 0.000000e+00 : f32
    %14 = vector.broadcast %cst_13 : f32 to vector<128x256xf32>
    %15 = arith.maximumf %13, %14 : vector<128x256xf32>
    %16 = arith.truncf %15 : vector<128x256xf32> to vector<128x256xbf16>
    %c0_14 = arith.constant 0 : index
    %c0_15 = arith.constant 0 : index
    %17 = vector.load %arg6[%c0_14, %c0_15] : memref<256x256xbf16, #tpu.memory_space<vmem>>, vector<256x256xbf16>
    %cst_16 = arith.constant dense<0.000000e+00> : vector<128x256xf32>
    %18 = tpu.matmul %16, %17, %cst_16 {dimension_numbers = #tpu.dot_dimension_numbers<[1], [0], [0], [1], [0, 0, 1, 1], [], []>} : vector<128x256xbf16>, vector<256x256xbf16>, vector<128x256xf32> -> vector<128x256xf32>
    %c0_17 = arith.constant 0 : index
    %c0_18 = arith.constant 0 : index
    %19 = vector.load %arg7[%c0_17, %c0_18] : memref<1x256xf32, #tpu.memory_space<vmem>>, vector<1x256xf32>
    %20 = vector.broadcast %19 : vector<1x256xf32> to vector<128x256xf32>
    %21 = arith.addf %18, %20 : vector<128x256xf32>
    %cst_19 = arith.constant 0.000000e+00 : f32
    %22 = vector.broadcast %cst_19 : f32 to vector<128x256xf32>
    %23 = arith.maximumf %21, %22 : vector<128x256xf32>
    %24 = vector.broadcast %7 : vector<1x256xf32> to vector<128x256xf32>
    %25 = arith.mulf %23, %24 : vector<128x256xf32>
    %cst_20 = arith.constant dense<0.000000e+00> : vector<128xf32>
    %26 = vector.multi_reduction <add>, %25, %cst_20 [1] : vector<128x256xf32> to vector<128xf32>
    %27 = vector.broadcast %8 : f32 to vector<128xf32>
    %28 = arith.addf %26, %27 : vector<128xf32>
    %29 = vector.shape_cast %28 : vector<128xf32> to vector<1x128xf32>
    %c0_21 = arith.constant 0 : index
    %c0_22 = arith.constant 0 : index
    %30 = vector.load %arg10[%c0_21, %c0_22] : memref<4x128xf32, #tpu.memory_space<vmem>>, vector<1x128xf32>
    tpu.vector_store %arg10[%c0_21, %c0_22], %29 {strides = array<i32>} : memref<4x128xf32, #tpu.memory_space<vmem>>, vector<1x128xf32>,
    %c0_23 = arith.constant 0 : index
    %c8 = arith.constant 8 : index
    %31 = vector.load %arg2[%c0_23, %c8] : memref<128x32xf32, #tpu.memory_space<vmem>>, vector<128x8xf32>
    %32 = arith.truncf %31 : vector<128x8xf32> to vector<128x8xbf16>
    %c0_24 = arith.constant 0 : index
    %c0_25 = arith.constant 0 : index
    %33 = vector.load %arg4[%c0_24, %c0_25] : memref<8x256xbf16, #tpu.memory_space<vmem>>, vector<8x256xbf16>
    %cst_26 = arith.constant dense<0.000000e+00> : vector<128x256xf32>
    %34 = tpu.matmul %32, %33, %cst_26 {dimension_numbers = #tpu.dot_dimension_numbers<[1], [0], [0], [1], [0, 0, 1, 1], [], []>} : vector<128x8xbf16>, vector<8x256xbf16>, vector<128x256xf32> -> vector<128x256xf32>
    %35 = arith.addf %6, %34 : vector<128x256xf32>
    %cst_27 = arith.constant 0.000000e+00 : f32
    %36 = vector.broadcast %cst_27 : f32 to vector<128x256xf32>
    %37 = arith.maximumf %35, %36 : vector<128x256xf32>
    %38 = arith.truncf %37 : vector<128x256xf32> to vector<128x256xbf16>
    %c0_28 = arith.constant 0 : index
    %c0_29 = arith.constant 0 : index
    %39 = vector.load %arg6[%c0_28, %c0_29] : memref<256x256xbf16, #tpu.memory_space<vmem>>, vector<256x256xbf16>
    %cst_30 = arith.constant dense<0.000000e+00> : vector<128x256xf32>
    %40 = tpu.matmul %38, %39, %cst_30 {dimension_numbers = #tpu.dot_dimension_numbers<[1], [0], [0], [1], [0, 0, 1, 1], [], []>} : vector<128x256xbf16>, vector<256x256xbf16>, vector<128x256xf32> -> vector<128x256xf32>
    %c0_31 = arith.constant 0 : index
    %c0_32 = arith.constant 0 : index
    %41 = vector.load %arg7[%c0_31, %c0_32] : memref<1x256xf32, #tpu.memory_space<vmem>>, vector<1x256xf32>
    %42 = vector.broadcast %41 : vector<1x256xf32> to vector<128x256xf32>
    %43 = arith.addf %40, %42 : vector<128x256xf32>
    %cst_33 = arith.constant 0.000000e+00 : f32
    %44 = vector.broadcast %cst_33 : f32 to vector<128x256xf32>
    %45 = arith.maximumf %43, %44 : vector<128x256xf32>
    %46 = vector.broadcast %7 : vector<1x256xf32> to vector<128x256xf32>
    %47 = arith.mulf %45, %46 : vector<128x256xf32>
    %cst_34 = arith.constant dense<0.000000e+00> : vector<128xf32>
    %48 = vector.multi_reduction <add>, %47, %cst_34 [1] : vector<128x256xf32> to vector<128xf32>
    %49 = vector.broadcast %8 : f32 to vector<128xf32>
    %50 = arith.addf %48, %49 : vector<128xf32>
    %51 = vector.shape_cast %50 : vector<128xf32> to vector<1x128xf32>
    %c1 = arith.constant 1 : index
    %c0_35 = arith.constant 0 : index
    %52 = vector.load %arg10[%c1, %c0_35] : memref<4x128xf32, #tpu.memory_space<vmem>>, vector<1x128xf32>
    tpu.vector_store %arg10[%c1, %c0_35], %51 {strides = array<i32>} : memref<4x128xf32, #tpu.memory_space<vmem>>, vector<1x128xf32>,
    %c0_36 = arith.constant 0 : index
    %c16 = arith.constant 16 : index
    %53 = vector.load %arg2[%c0_36, %c16] : memref<128x32xf32, #tpu.memory_space<vmem>>, vector<128x8xf32>
    %54 = arith.truncf %53 : vector<128x8xf32> to vector<128x8xbf16>
    %c0_37 = arith.constant 0 : index
    %c0_38 = arith.constant 0 : index
    %55 = vector.load %arg4[%c0_37, %c0_38] : memref<8x256xbf16, #tpu.memory_space<vmem>>, vector<8x256xbf16>
    %cst_39 = arith.constant dense<0.000000e+00> : vector<128x256xf32>
    %56 = tpu.matmul %54, %55, %cst_39 {dimension_numbers = #tpu.dot_dimension_numbers<[1], [0], [0], [1], [0, 0, 1, 1], [], []>} : vector<128x8xbf16>, vector<8x256xbf16>, vector<128x256xf32> -> vector<128x256xf32>
    %57 = arith.addf %6, %56 : vector<128x256xf32>
    %cst_40 = arith.constant 0.000000e+00 : f32
    %58 = vector.broadcast %cst_40 : f32 to vector<128x256xf32>
    %59 = arith.maximumf %57, %58 : vector<128x256xf32>
    %60 = arith.truncf %59 : vector<128x256xf32> to vector<128x256xbf16>
    %c0_41 = arith.constant 0 : index
    %c0_42 = arith.constant 0 : index
    %61 = vector.load %arg6[%c0_41, %c0_42] : memref<256x256xbf16, #tpu.memory_space<vmem>>, vector<256x256xbf16>
    %cst_43 = arith.constant dense<0.000000e+00> : vector<128x256xf32>
    %62 = tpu.matmul %60, %61, %cst_43 {dimension_numbers = #tpu.dot_dimension_numbers<[1], [0], [0], [1], [0, 0, 1, 1], [], []>} : vector<128x256xbf16>, vector<256x256xbf16>, vector<128x256xf32> -> vector<128x256xf32>
    %c0_44 = arith.constant 0 : index
    %c0_45 = arith.constant 0 : index
    %63 = vector.load %arg7[%c0_44, %c0_45] : memref<1x256xf32, #tpu.memory_space<vmem>>, vector<1x256xf32>
    %64 = vector.broadcast %63 : vector<1x256xf32> to vector<128x256xf32>
    %65 = arith.addf %62, %64 : vector<128x256xf32>
    %cst_46 = arith.constant 0.000000e+00 : f32
    %66 = vector.broadcast %cst_46 : f32 to vector<128x256xf32>
    %67 = arith.maximumf %65, %66 : vector<128x256xf32>
    %68 = vector.broadcast %7 : vector<1x256xf32> to vector<128x256xf32>
    %69 = arith.mulf %67, %68 : vector<128x256xf32>
    %cst_47 = arith.constant dense<0.000000e+00> : vector<128xf32>
    %70 = vector.multi_reduction <add>, %69, %cst_47 [1] : vector<128x256xf32> to vector<128xf32>
    %71 = vector.broadcast %8 : f32 to vector<128xf32>
    %72 = arith.addf %70, %71 : vector<128xf32>
    %73 = vector.shape_cast %72 : vector<128xf32> to vector<1x128xf32>
    %c2 = arith.constant 2 : index
    %c0_48 = arith.constant 0 : index
    %74 = vector.load %arg10[%c2, %c0_48] : memref<4x128xf32, #tpu.memory_space<vmem>>, vector<1x128xf32>
    tpu.vector_store %arg10[%c2, %c0_48], %73 {strides = array<i32>} : memref<4x128xf32, #tpu.memory_space<vmem>>, vector<1x128xf32>,
    %c0_49 = arith.constant 0 : index
    %c24 = arith.constant 24 : index
    %75 = vector.load %arg2[%c0_49, %c24] : memref<128x32xf32, #tpu.memory_space<vmem>>, vector<128x8xf32>
    %76 = arith.truncf %75 : vector<128x8xf32> to vector<128x8xbf16>
    %c0_50 = arith.constant 0 : index
    %c0_51 = arith.constant 0 : index
    %77 = vector.load %arg4[%c0_50, %c0_51] : memref<8x256xbf16, #tpu.memory_space<vmem>>, vector<8x256xbf16>
    %cst_52 = arith.constant dense<0.000000e+00> : vector<128x256xf32>
    %78 = tpu.matmul %76, %77, %cst_52 {dimension_numbers = #tpu.dot_dimension_numbers<[1], [0], [0], [1], [0, 0, 1, 1], [], []>} : vector<128x8xbf16>, vector<8x256xbf16>, vector<128x256xf32> -> vector<128x256xf32>
    %79 = arith.addf %6, %78 : vector<128x256xf32>
    %cst_53 = arith.constant 0.000000e+00 : f32
    %80 = vector.broadcast %cst_53 : f32 to vector<128x256xf32>
    %81 = arith.maximumf %79, %80 : vector<128x256xf32>
    %82 = arith.truncf %81 : vector<128x256xf32> to vector<128x256xbf16>
    %c0_54 = arith.constant 0 : index
    %c0_55 = arith.constant 0 : index
    %83 = vector.load %arg6[%c0_54, %c0_55] : memref<256x256xbf16, #tpu.memory_space<vmem>>, vector<256x256xbf16>
    %cst_56 = arith.constant dense<0.000000e+00> : vector<128x256xf32>
    %84 = tpu.matmul %82, %83, %cst_56 {dimension_numbers = #tpu.dot_dimension_numbers<[1], [0], [0], [1], [0, 0, 1, 1], [], []>} : vector<128x256xbf16>, vector<256x256xbf16>, vector<128x256xf32> -> vector<128x256xf32>
    %c0_57 = arith.constant 0 : index
    %c0_58 = arith.constant 0 : index
    %85 = vector.load %arg7[%c0_57, %c0_58] : memref<1x256xf32, #tpu.memory_space<vmem>>, vector<1x256xf32>
    %86 = vector.broadcast %85 : vector<1x256xf32> to vector<128x256xf32>
    %87 = arith.addf %84, %86 : vector<128x256xf32>
    %cst_59 = arith.constant 0.000000e+00 : f32
    %88 = vector.broadcast %cst_59 : f32 to vector<128x256xf32>
    %89 = arith.maximumf %87, %88 : vector<128x256xf32>
    %90 = vector.broadcast %7 : vector<1x256xf32> to vector<128x256xf32>
    %91 = arith.mulf %89, %90 : vector<128x256xf32>
    %cst_60 = arith.constant dense<0.000000e+00> : vector<128xf32>
    %92 = vector.multi_reduction <add>, %91, %cst_60 [1] : vector<128x256xf32> to vector<128xf32>
    %93 = vector.broadcast %8 : f32 to vector<128xf32>
    %94 = arith.addf %92, %93 : vector<128xf32>
    %95 = vector.shape_cast %94 : vector<128xf32> to vector<1x128xf32>
    %c3 = arith.constant 3 : index
    %c0_61 = arith.constant 0 : index
    %96 = vector.load %arg10[%c3, %c0_61] : memref<4x128xf32, #tpu.memory_space<vmem>>, vector<1x128xf32>
    tpu.vector_store %arg10[%c3, %c0_61], %95 {strides = array<i32>} : memref<4x128xf32, #tpu.memory_space<vmem>>, vector<1x128xf32>,
    return
  }
  func.func @transform_0(%arg0: i32) -> (i32, i32) {
    %c0_i32 = arith.constant 0 : i32
    %c0_i32_0 = arith.constant 0 : i32
    return %arg0, %c0_i32 : i32, i32
  }
  func.func @transform_1(%arg0: i32) -> (i32, i32) {
    %c0_i32 = arith.constant 0 : i32
    %c0_i32_0 = arith.constant 0 : i32
    return %arg0, %c0_i32 : i32, i32
  }
  func.func @transform_2(%arg0: i32) -> (i32, i32) {
    %c0_i32 = arith.constant 0 : i32
    %c0_i32_0 = arith.constant 0 : i32
    %c0_i32_1 = arith.constant 0 : i32
    return %c0_i32, %c0_i32_0 : i32, i32
  }
  func.func @transform_3(%arg0: i32) -> (i32, i32) {
    %c0_i32 = arith.constant 0 : i32
    %c0_i32_0 = arith.constant 0 : i32
    %c0_i32_1 = arith.constant 0 : i32
    return %c0_i32, %c0_i32_0 : i32, i32
  }
  func.func @transform_4(%arg0: i32) -> (i32, i32) {
    %c0_i32 = arith.constant 0 : i32
    %c0_i32_0 = arith.constant 0 : i32
    %c0_i32_1 = arith.constant 0 : i32
    return %c0_i32, %c0_i32_0 : i32, i32
  }
  func.func @transform_5(%arg0: i32) -> (i32, i32) {
    %c0_i32 = arith.constant 0 : i32
    %c0_i32_0 = arith.constant 0 : i32
    %c0_i32_1 = arith.constant 0 : i32
    return %c0_i32, %c0_i32_0 : i32, i32
  }
  func.func @transform_6(%arg0: i32) -> (i32, i32) {
    %c0_i32 = arith.constant 0 : i32
    %c0_i32_0 = arith.constant 0 : i32
    %c0_i32_1 = arith.constant 0 : i32
    return %c0_i32, %c0_i32_0 : i32, i32
  }
  func.func @transform_7(%arg0: i32) -> (i32, i32) {
    %c0_i32 = arith.constant 0 : i32
    %c0_i32_0 = arith.constant 0 : i32
    %c0_i32_1 = arith.constant 0 : i32
    return %c0_i32, %c0_i32_0 : i32, i32
  }
  func.func @transform_8(%arg0: i32) -> i32 {
    %c0_i32 = arith.constant 0 : i32
    %c0_i32_0 = arith.constant 0 : i32
    return %c0_i32 : i32
  }
  func.func @transform_9(%arg0: i32) -> (i32, i32) {
    %c0_i32 = arith.constant 0 : i32
    %c0_i32_0 = arith.constant 0 : i32
    return %c0_i32, %arg0 : i32, i32
  }
}

</mosaic_0001>

<bundles_post_ra>
// kernel: tpu_custom_call.1
= control target key start
LH: loop header
LB: loop body
LE: loop exit
PB: predicated region body
PF: predicated region fallthrough
CT: control target
= control target key end

     0   :  { %15 = vsyncpa [#allocation4], 0  ;;  %s5402_s0 = inlined_call_operand.vmem [shape: f32[2,16], index: 0, kind: input, shape index: {}]   ;;  %s5403_s1 = inlined_call_operand.hbm [shape: f32[2,32], index: 1, kind: input, shape index: {}]   ;;  %s5404_s2 = inlined_call_operand.hbm [shape: bf16[16,256], index: 2, kind: input, shape index: {}]   ;;  %s5405_s3 = inlined_call_operand.hbm [shape: bf16[8,256], index: 3, kind: input, shape index: {}]   ;;  %s5406_s4 = inlined_call_operand.vmem [shape: f32[1,256], index: 4, kind: input, shape index: {}]   ;;  %s5407_s5 = inlined_call_operand.hbm [shape: bf16[256,256], index: 5, kind: input, shape index: {}]   ;;  %s5408_s6 = inlined_call_operand.vmem [shape: f32[1,256], index: 6, kind: input, shape index: {}]   ;;  %s5409_s7 = inlined_call_operand.vmem [shape: f32[1,256], index: 7, kind: input, shape index: {}]   ;;  %s5410_s8 = inlined_call_operand.<no memory space> [shape: f32[1], index: 8, kind: input, shape index: {}]   ;;  %s5411_s9 = inlined_call_operand.vmem [shape: f32[4,2], index: 9, kind: output, shape index: {}]  }
   0x1   :  { %16 = vsyncpa [#allocation6], 0 }
   0x2   :  { %17 = vsyncpa [#allocation9], 0 }
   0x3   :  { %24 = vsyncadd [#allocation4], 2016  ;;  %s3996_s30 = smov [#allocation5]  }
   0x4   :  { %s37_s10 = sshll.u32 %s3996_s30, 4  ;;  %s38_s10 = int_to_ptr.vmem [resolvable:$true] %s37_s10 }
   0x5   :  { %s3918_s11 = scalar_lea.vmem %s38_s10, 256  ;;  %p3923_p1 = scmp.lt.s32.totalorder %s38_s10, %s38_s10 }
   0x6   :  { %p3919_p0 = scmp.ne.s32.totalorder %s38_s10, %s3918_s11  ;;  %p3924_p2 = scmp.lt.s32.totalorder %s3918_s11, %s3918_s11 }
   0x8   :  { %p3925_p3 = por %p3924_p2, %p3923_p1 }
   0xa   :  { %p3926_p4 = pnand %p3925_p3, %p3919_p0 }
   0xc   :  { %3929 = shalt.err (!%p3926_p4)
}
   0xd   :  { %s3997_s12 = smov 128   ;;  %s3998_s13 = smov 8  }
   0xe   :  { %43 = dma.hbm_to_vmem [thread:$0]  %s5404_s2, 256, %s38_s10, [#allocation6], %s3997_s12, %s3997_s12, %s3998_s13  }
   0xf   :  { %s3999_s16 = smov [#allocation3]  }
  0x10   :  { %s25_s17 = sshll.u32 %s3999_s16, 4  ;;  %s26_s17 = int_to_ptr.vmem [resolvable:$true] %s25_s17 }
  0x11   :  { %s3938_s18 = scalar_lea.vmem %s26_s17, 32  ;;  %s3942_s19 = scalar_lea.vmem %s26_s17, 2048 }
  0x12   :  { %p3939_p5 = scmp.ne.s32.totalorder %s26_s17, %s3938_s18  ;;  %p3943_p6 = scmp.lt.s32.totalorder %s26_s17, %s26_s17 }
  0x13   :  { %p3944_p7 = scmp.lt.s32.totalorder %s3942_s19, %s3938_s18 }
  0x15   :  { %p3945_p8 = por %p3944_p7, %p3943_p6 }
  0x17   :  { %p3946_p9 = pnand %p3945_p8, %p3939_p5 }
  0x19   :  { %3949 = shalt.err (!%p3946_p9)
}
  0x1a   :  { %s4000_s20 = smov 32   ;;  %s4001_s21 = smov 2  }
  0x1b   :  { %31 = dma.hbm_to_vmem [thread:$0]  %s5403_s1, 32, %s26_s17, [#allocation4], %s4000_s20, %s4000_s20, %s4001_s21  }
  0x1c   :  { %s4002_s24 = smov [#allocation7]   ;;  %s4003_s2 = smov [#allocation8]  }
  0x1d   :  { %s50_s25 = sshll.u32 %s4002_s24, 4  ;;  %s61_s26 = sshll.u32 %s4003_s2, 4  ;;  %s51_s25 = int_to_ptr.vmem [resolvable:$true] %s50_s25  ;;  %s62_s26 = int_to_ptr.vmem [resolvable:$true] %s61_s26 }
  0x1e   :  { %s3958_s27 = scalar_lea.vmem %s51_s25, 128  ;;  %p3963_p11 = scmp.lt.s32.totalorder %s51_s25, %s51_s25 }
  0x1f   :  { %p3959_p10 = scmp.ne.s32.totalorder %s51_s25, %s3958_s27  ;;  %p3964_p12 = scmp.lt.s32.totalorder %s3958_s27, %s3958_s27 }
  0x21   :  { %p3965_p13 = por %p3964_p12, %p3963_p11 }
  0x23   :  { %p3966_p0 = pnand %p3965_p13, %p3959_p10 }
  0x25   :  { %3969 = shalt.err (!%p3966_p0)
}
  0x26   :  { %53 = dma.hbm_to_vmem [thread:$0]  %s5405_s3, 128, %s51_s25, [#allocation6]  }
  0x27   :  { %s3978_s30 = scalar_lea.vmem %s62_s26, 4096  ;;  %p3983_p2 = scmp.lt.s32.totalorder %s62_s26, %s62_s26 }
  0x28   :  { %p3979_p1 = scmp.ne.s32.totalorder %s62_s26, %s3978_s30  ;;  %p3984_p3 = scmp.lt.s32.totalorder %s3978_s30, %s3978_s30 }
  0x2a   :  { %p3985_p4 = por %p3984_p3, %p3983_p2 }
  0x2c   :  { %p3986_p5 = pnand %p3985_p4, %p3979_p1 }
  0x2e   :  { %3989 = shalt.err (!%p3986_p5)
}
  0x2f   :  { %67 = dma.hbm_to_vmem [thread:$0]  %s5407_s5, 4096, %s62_s26, [#allocation9], %s3997_s12, %s3997_s12, %s3998_s13  }
  0x30   :  { %3990 = dma.done.wait [#allocation4], 2048  }
  0x31   :  { %3991 = vsyncadd [#allocation4], 4294965248 }
  0x32   :  { %3992 = dma.done.wait [#allocation6], 384  }
  0x33   :  { %3993 = vsyncadd [#allocation6], 4294966912 }
  0x34   :  { %3994 = dma.done.wait [#allocation9], 4096  }
  0x35   :  { %3995 = vsyncadd [#allocation9], 4294963200  ;;  %v4004_v0 = vmov 0   ;;  %v1116_v1 = vld [vmem:[#allocation3] sm:$0xff]  ;;  %v1117_v2 = vld [vmem:[#allocation3 + $0x8] sm:$0xff]  ;;  %vm330_vm0 = vcmask 1043456  }
  0x36   :  { %192 = vmatprep.mubr.bf16.mxu0 %v4004_v0  ;;  %369 = vmatprep.mubr.bf16.mxu1 %v4004_v0  ;;  %v4078_v3 = vpack.c.bf16 %v1117_v2, %v1116_v1  ;;  %v3806_v4 = vld [vmem:[#allocation5 + $0x4] ss:$8 sps:$4 sm:$0xff]   ;;  %v3808_v5 = vld [vmem:[#allocation5] ss:$8 sps:$4 sm:$0xff]   ;;  %v299_v6 = vld [vmem:[#allocation7] sm:$0xff]  ;;  %s4005_s13 = smov 120  }
  0x37   :  { %v87_v7 = vld [vmem:[%s5402_s0] sm:$0xff]  ;;  %v88_v8 = vld [vmem:[%s5402_s0 + $0x8] sm:$0xff]  ;;  %174 = vmatprep.subr.bf16.mxu0 %v3806_v4  ;;  %v4088_v9 = vcombine.high %v299_v6, %v299_v6  ;;  %v3590_v10 = vcombine.low %v299_v6, %v299_v6  ;;  %v1118_v12 = vld [vmem:[#allocation3 + $0x10] sm:$0xff]  ;;  %vm135_vm1 = vcmask 130048   ;;  %vm305_vm2 = vcmask 64512   ;;  %s4006_s22 = smov 112  }
  0x38   :  { %1149 = vrot.lane.b32.xlu0 %v4078_v3, %s4005_s13  ;;  %v103_v11 = vpack.c.bf16 %v88_v8, %v87_v7  ;;  %v1119_v13 = vld [vmem:[#allocation3 + $0x18] sm:$0xff]  ;;  %175 = vmatpush1.bf16.msra.mxu0 %v3808_v5  ;;  %v1120_v15 = vld [vmem:[#allocation3 + $0x20] sm:$0xff]  ;;  %v1121_v16 = vld [vmem:[#allocation3 + $0x28] sm:$0xff]  ;;  %s4007_s30 = smov 104   ;;  %vm1014_vm3 = vcmask 130112   ;;  %vm1021_vm4 = vcmask 195712  }
  0x39   :  { %v4090_v14 = vpack.c.bf16 %v1119_v13, %v1118_v12  ;;  %3592 = vmatprep.subr.msk.bf16.mxu1 %vm330_vm0, %v4088_v9  ;;  %v4095_v17 = vsel %vm330_vm0, %v3590_v10, 0  ;;  %v4097_v18 = vpack.c.bf16 %v1121_v16, %v1120_v15  ;;  %v1122_v19 = vld [vmem:[#allocation3 + $0x30] sm:$0xff]  ;;  %v1123_v20 = vld [vmem:[#allocation3 + $0x38] sm:$0xff]  ;;  %v1124_v21 = vld [vmem:[#allocation3 + $0x40] sm:$0xff]  ;;  %vm1028_vm5 = vcmask 261312  }
  0x3a   :  { %352 = vmatpush1.bf16.msra.mxu1 %v4095_v17  ;;  %v1125_v22 = vld [vmem:[#allocation3 + $0x48] sm:$0xff]  ;;  %v89_v23 = vld [vmem:[%s5402_s0 + $0x10] sm:$0xff]  ;;  %v90_v24 = vld [vmem:[%s5402_s0 + $0x18] sm:$0xff]  ;;  %v4112_v25 = vpack.c.bf16 %v1123_v20, %v1122_v19  ;;  %vm1035_vm6 = vcmask 326912   ;;  %vm1042_vm7 = vcmask 392512   ;;  %vm1049_vm8 = vcmask 458112  }
  0x3b   :  { %3582 = vmatmul.mubr.msk.bf16.vlgmr.msra.gmra.mxu0 %vm135_vm1, %v103_v11  ;;  %1153 = vrot.lane.b32.xlu1 %v4097_v18, %s4005_s13  ;;  %v4114_v26 = vpack.c.bf16 %v1125_v22, %v1124_v21  ;;  %v1126_v27 = vld [vmem:[#allocation3 + $0x50] sm:$0xff]  ;;  %v1127_v28 = vld [vmem:[#allocation3 + $0x58] sm:$0xff]  ;;  %v1128_v29 = vld [vmem:[#allocation3 + $0x60] sm:$0xff]  ;;  %v104_v31 = vpack.c.bf16 %v90_v24, %v89_v23  ;;  %vm1056_vm9 = vcmask 523712   ;;  %vm1063_vm10 = vcmask 589312  }
  0x3c   :  { %1151 = vrot.lane.b32.xlu0 %v4090_v14, %s4005_s13  ;;  %202 = vmatprep.mubr.bf16.mxu0 %v4004_v0  ;;  %v1129_v30 = vld [vmem:[#allocation3 + $0x68] sm:$0xff]  ;;  %v1130_v33 = vld [vmem:[#allocation3 + $0x70] sm:$0xff]  ;;  %v4130_v34 = vpack.c.bf16 %v1127_v28, %v1126_v27  ;;  %v1131_v35 = vld [vmem:[#allocation3 + $0x78] sm:$0xff]  ;;  %vm1070_vm11 = vcmask 654912   ;;  %vm1077_vm12 = vcmask 720512   ;;  %vm1084_vm13 = vcmask 786112  }
  0x3d   :  { %3593 = vmatmul.mubr.msk.bf16.vlgmr.msra.gmra.mxu1 %vm305_vm2, %v4078_v3  ;;  %3635 = vmatprep.subr.msk.bf16.mxu1 %vm330_vm0, %v4088_v9  ;;  %v4124_v32 = vpack.c.bf16 %v1129_v30, %v1128_v29  ;;  %v91_v36 = vld [vmem:[%s5402_s0 + $0x20] sm:$0xff]  ;;  %v92_v37 = vld [vmem:[%s5402_s0 + $0x28] sm:$0xff]  ;;  %v4144_v38 = vpack.c.bf16 %v1131_v35, %v1130_v33  ;;  %v93_v41 = vld [vmem:[%s5402_s0 + $0x30] sm:$0xff]  ;;  %vm1091_vm14 = vcmask 851712   ;;  %vm1098_vm15 = vcmask 917312  }
  0x3e   :  { %379 = vmatprep.mubr.bf16.mxu1 %v4004_v0  ;;  %1215 = vmatpush1.bf16.msra.mxu1 %v4095_v17  ;;  %v105_v39 = vpack.c.bf16 %v92_v37, %v91_v36  ;;  %v4153_v40 = vld [vmem:[#allocation8 + $0x74] ss:$8 sps:$4 sm:$0xff]   ;;  %v94_v42 = vld [vmem:[%s5402_s0 + $0x38] sm:$0xff]  ;;  %v4161_v43 = vld [vmem:[#allocation8 + $0x70] ss:$8 sps:$4 sm:$0xff]  }
  0x3f   :  { %3678 = vmatprep.subr.msk.bf16.mxu1 %vm330_vm0, %v4088_v9  ;;  %1155 = vrot.lane.b32.xlu1 %v4112_v25, %s4005_s13  ;;  %v4163_v44 = vld [vmem:[#allocation8 + $0x64] ss:$8 sps:$4 sm:$0xff]   ;;  %v4171_v45 = vld [vmem:[#allocation8 + $0x60] ss:$8 sps:$4 sm:$0xff]   ;;  %v106_v46 = vpack.c.bf16 %v94_v42, %v93_v41  ;;  %v4183_v47 = vld [vmem:[#allocation8 + $0x54] ss:$8 sps:$4 sm:$0xff]  }
  0x40   :  { %1157 = vrot.lane.b32.xlu0 %v4114_v26, %s4005_s13  ;;  %734 = vmatprep.subr.bf16.mxu0 %v4153_v40  ;;  %v95_v48 = vld [vmem:[%s5402_s0 + $0x40] sm:$0xff]  ;;  %v96_v49 = vld [vmem:[%s5402_s0 + $0x48] sm:$0xff]  ;;  %v97_v57 = vld [vmem:[%s5402_s0 + $0x50] sm:$0xff] }
  0x41   :  { %735 = vmatpush1.bf16.msra.mxu0 %v4161_v43  ;;  %v4192_v50 = vld [vmem:[#allocation8 + $0x50] ss:$8 sps:$4 sm:$0xff]   ;;  %v4194_v51 = vld [vmem:[#allocation8 + $0x44] ss:$8 sps:$4 sm:$0xff]   ;;  %v4202_v52 = vld [vmem:[#allocation8 + $0x40] ss:$8 sps:$4 sm:$0xff]   ;;  %v107_v53 = vpack.c.bf16 %v96_v49, %v95_v48 }
  0x42   :  { %736 = vmatprep.subr.bf16.mxu0 %v4163_v44  ;;  %v4214_v54 = vld [vmem:[#allocation8 + $0x34] ss:$8 sps:$4 sm:$0xff]   ;;  %v4217_v55 = vld [vmem:[#allocation8 + $0x30] ss:$8 sps:$4 sm:$0xff]   ;;  %v4222_v56 = vld [vmem:[#allocation8 + $0x24] ss:$8 sps:$4 sm:$0xff]  }
  0x43   :  { %3583 = vmatmul.mubr.msk.bf16.gmra.mxu0 %vm135_vm1, %v104_v31  ;;  %1159 = vrot.lane.b32.xlu1 %v4130_v34, %s4005_s13  ;;  %v98_v58 = vld [vmem:[%s5402_s0 + $0x58] sm:$0xff]  ;;  %v4245_v61 = vld [vmem:[#allocation8 + $0x14] ss:$8 sps:$4 sm:$0xff]   ;;  %v4248_v62 = vld [vmem:[#allocation8 + $0x10] ss:$8 sps:$4 sm:$0xff]  }
  0x44   :  { %1161 = vrot.lane.b32.xlu0 %v4124_v32, %s4005_s13  ;;  %212 = vmatprep.mubr.bf16.mxu0 %v4004_v0  ;;  %v4238_v59 = vld [vmem:[#allocation8 + $0x20] ss:$8 sps:$4 sm:$0xff]   ;;  %v108_v60 = vpack.c.bf16 %v98_v58, %v97_v57  ;;  %v4252_v63 = vld [vmem:[#allocation8 + $0x4] ss:$8 sps:$4 sm:$0xff]   ;;  %v100_v2 = vld [vmem:[%s5402_s0 + $0x68] sm:$0xff] }
  0x45   :  { %3594 = vmatmul.mubr.msk.bf16.gmra.mxu1 %vm305_vm2, %v4090_v14  ;;  %737 = vmatpush1.bf16.msra.mxu0 %v4171_v45  ;;  %v99_v1 = vld [vmem:[%s5402_s0 + $0x60] sm:$0xff]  ;;  %v4274_v5 = vld [vmem:[#allocation8 + $0xf4] ss:$8 sps:$4 sm:$0xff]   ;;  %v4277_v6 = vld [vmem:[#allocation8 + $0xf0] ss:$8 sps:$4 sm:$0xff]  }
  0x46   :  { %389 = vmatprep.mubr.bf16.mxu1 %v4004_v0  ;;  %738 = vmatprep.subr.bf16.mxu0 %v4183_v47  ;;  %v109_v4 = vpack.c.bf16 %v100_v2, %v99_v1  ;;  %v4281_v7 = vld [vmem:[#allocation8 + $0xe4] ss:$8 sps:$4 sm:$0xff]   ;;  %v101_v8 = vld [vmem:[%s5402_s0 + $0x70] sm:$0xff]  ;;  %v4294_v11 = vld [vmem:[#allocation8 + $0xe0] ss:$8 sps:$4 sm:$0xff]  }
  0x47   :  { %1163 = vrot.lane.b32.xlu1 %v4144_v38, %s4005_s13  ;;  %v102_v10 = vld [vmem:[%s5402_s0 + $0x78] sm:$0xff]  ;;  %v4297_v13 = vld [vmem:[#allocation8 + $0xd4] ss:$8 sps:$4 sm:$0xff]   ;;  %v4316_v19 = vld [vmem:[#allocation8 + $0xb0] ss:$8 sps:$4 sm:$0xff]  }
  0x48   :  { %1968 = vrot.lane.b32.xlu0 %v4078_v3, %s4006_s22  ;;  %v110_v12 = vpack.c.bf16 %v102_v10, %v101_v8  ;;  %v4304_v15 = vld [vmem:[#allocation8 + $0xc4] ss:$8 sps:$4 sm:$0xff]   ;;  %v4310_v16 = vld [vmem:[#allocation8 + $0xc0] ss:$8 sps:$4 sm:$0xff]   ;;  %v4325_v22 = vld [vmem:[#allocation8 + $0x94] ss:$8 sps:$4 sm:$0xff]  }
  0x49   :  { %739 = vmatpush1.bf16.msra.mxu0 %v4192_v50  ;;  %v4319_v20 = vld [vmem:[#allocation8 + $0xa4] ss:$8 sps:$4 sm:$0xff]   ;;  %v4322_v21 = vld [vmem:[#allocation8 + $0xa0] ss:$8 sps:$4 sm:$0xff]   ;;  %v4328_v23 = vld [vmem:[#allocation8 + $0x90] ss:$8 sps:$4 sm:$0xff]  }
  0x4a   :  { %740 = vmatprep.subr.bf16.mxu0 %v4194_v51  ;;  %v4331_v24 = vld [vmem:[#allocation8 + $0x84] ss:$8 sps:$4 sm:$0xff]  }
  0x4b   :  { %3584 = vmatmul.mubr.msk.bf16.gmra.mxu0 %vm135_vm1, %v105_v39  ;;  %1970 = vrot.lane.b32.xlu1 %v4090_v14, %s4006_s22 }
  0x4c   :  { %1972 = vrot.lane.b32.xlu0 %v4097_v18, %s4006_s22  ;;  %222 = vmatprep.mubr.bf16.mxu0 %v4004_v0 }
  0x4d   :  { %3595 = vmatmul.mubr.msk.bf16.gmra.mxu1 %vm305_vm2, %v4097_v18  ;;  %741 = vmatpush1.bf16.msra.mxu0 %v4202_v52 }
  0x4e   :  { %399 = vmatprep.mubr.bf16.mxu1 %v4004_v0  ;;  %742 = vmatprep.subr.bf16.mxu0 %v4214_v54 }
  0x4f   :  { %1974 = vrot.lane.b32.xlu1 %v4112_v25, %s4006_s22 }
  0x50   :  { %1976 = vrot.lane.b32.xlu0 %v4114_v26, %s4006_s22 }
  0x51   :  { %743 = vmatpush1.bf16.msra.mxu0 %v4217_v55 }
  0x52   :  { %744 = vmatprep.subr.bf16.mxu0 %v4222_v56 }
  0x53   :  { %3585 = vmatmul.mubr.msk.bf16.gmra.mxu0 %vm135_vm1, %v106_v46  ;;  %1978 = vrot.lane.b32.xlu1 %v4130_v34, %s4006_s22 }
  0x54   :  { %1980 = vrot.lane.b32.xlu0 %v4124_v32, %s4006_s22  ;;  %232 = vmatprep.mubr.bf16.mxu0 %v4004_v0 }
  0x55   :  { %3596 = vmatmul.mubr.msk.bf16.gmra.mxu1 %vm305_vm2, %v4112_v25  ;;  %745 = vmatpush1.bf16.msra.mxu0 %v4238_v59 }
  0x56   :  { %409 = vmatprep.mubr.bf16.mxu1 %v4004_v0  ;;  %746 = vmatprep.subr.bf16.mxu0 %v4245_v61 }
  0x57   :  { %1982 = vrot.lane.b32.xlu1 %v4144_v38, %s4006_s22 }
  0x58   :  { %2787 = vrot.lane.b32.xlu0 %v4078_v3, %s4007_s30  ;;  %v4269_v3 = vld [vmem:[#allocation8] ss:$8 sps:$4 sm:$0xff]  }
  0x59   :  { %747 = vmatpush1.bf16.msra.mxu0 %v4248_v62 }
  0x5a   :  { %748 = vmatprep.subr.bf16.mxu0 %v4252_v63 }
  0x5b   :  { %3586 = vmatmul.mubr.msk.bf16.gmra.mxu0 %vm135_vm1, %v107_v53  ;;  %2789 = vrot.lane.b32.xlu1 %v4090_v14, %s4007_s30  ;;  %v4300_v14 = vld [vmem:[#allocation8 + $0xd0] ss:$8 sps:$4 sm:$0xff]  }
  0x5c   :  { %2791 = vrot.lane.b32.xlu0 %v4097_v18, %s4007_s30  ;;  %242 = vmatprep.mubr.bf16.mxu0 %v4004_v0  ;;  %v4313_v18 = vld [vmem:[#allocation8 + $0xb4] ss:$8 sps:$4 sm:$0xff]  }
  0x5d   :  { %3597 = vmatmul.mubr.msk.bf16.gmra.mxu1 %vm305_vm2, %v4114_v26  ;;  %749 = vmatpush1.bf16.msra.mxu0 %v4269_v3 }
  0x5e   :  { %419 = vmatprep.mubr.bf16.mxu1 %v4004_v0  ;;  %750 = vmatprep.subr.bf16.mxu0 %v4274_v5 }
  0x5f   :  { %2793 = vrot.lane.b32.xlu1 %v4112_v25, %s4007_s30  ;;  %v4334_v25 = vld [vmem:[#allocation8 + $0x80] ss:$8 sps:$4 sm:$0xff]  }
  0x60   :  { %2795 = vrot.lane.b32.xlu0 %v4114_v26, %s4007_s30 }
  0x61   :  { %751 = vmatpush2.bf16.msra.mxu0 %v4277_v6 }
  0x62   :  { %752 = vmatprep.subr.bf16.mxu0 %v4281_v7 }
  0x63   :  { %3587 = vmatmul.mubr.msk.bf16.gmra.mxu0 %vm135_vm1, %v108_v60  ;;  %2797 = vrot.lane.b32.xlu1 %v4130_v34, %s4007_s30 }
  0x64   :  { %252 = vmatprep.mubr.bf16.mxu0 %v4004_v0  ;;  %2799 = vrot.lane.b32.xlu0 %v4124_v32, %s4007_s30 }
  0x65   :  { %3598 = vmatmul.mubr.msk.bf16.gmra.mxu1 %vm305_vm2, %v4130_v34  ;;  %753 = vmatpush2.bf16.msra.mxu0 %v4294_v11  ;;  %v5412_v34 = vlaneseq }
  0x66   :  { %429 = vmatprep.mubr.bf16.mxu1 %v4004_v0  ;;  %754 = vmatprep.subr.bf16.mxu0 %v4297_v13 }
  0x67   :  { %2801 = vrot.lane.b32.xlu1 %v4144_v38, %s4007_s30  ;;  %v4362_v36 = vshrl.u32 %v5412_v34, 7 }
  0x69   :  { %755 = vmatpush2.bf16.msra.mxu0 %v4300_v14  ;;  %5458 = vst [vmem:[#allocation13_spill] sm:$0xff] %v4362_v36  ;;  %v4367_v37 = vsub.s32 0, %v4362_v36 }
  0x6a   :  { %756 = vmatprep.subr.bf16.mxu0 %v4304_v15 }
  0x6b   :  { %3588 = vmatmul.mubr.msk.bf16.gmra.mxu0 %vm135_vm1, %v109_v4  ;;  %5459 = vst [vmem:[#allocation14_spill] sm:$0xff] %v4367_v37 }
  0x6c   :  { %262 = vmatprep.mubr.bf16.mxu0 %v4004_v0 }
  0x6d   :  { %3599 = vmatmul.mubr.msk.bf16.gmra.mxu1 %vm305_vm2, %v4124_v32  ;;  %757 = vmatpush2.bf16.msra.mxu0 %v4310_v16 }
  0x6e   :  { %439 = vmatprep.mubr.bf16.mxu1 %v4004_v0  ;;  %758 = vmatprep.subr.bf16.mxu0 %v4313_v18 }
  0x71   :  { %759 = vmatpush2.bf16.msra.mxu0 %v4316_v19 }
  0x72   :  { %760 = vmatprep.subr.bf16.mxu0 %v4319_v20 }
  0x73   :  { %3589 = vmatmul.mubr.msk.bf16.gmra.mxu0 %vm135_vm1, %v110_v12  ;;  %vm1112_vm1 = vcmask 1048512  }
  0x75   :  { %3600 = vmatmul.mubr.msk.bf16.gmra.mxu1 %vm305_vm2, %v4144_v38  ;;  %761 = vmatpush2.bf16.msra.mxu0 %v4322_v21  ;;  %v113_v38 = vld [vmem:[%s5406_s4] sm:$0x3] }
  0x76   :  { %1232 = vmatprep.mubr.bf16.mxu1 %v4004_v0  ;;  %762 = vmatprep.subr.bf16.mxu0 %v4325_v22  ;;  %v4376_v41 = vrot.slane %v113_v38, %v4367_v37 }
  0x79   :  { %763 = vmatpush2.bf16.msra.mxu0 %v4328_v23 }
  0x7a   :  { %764 = vmatprep.subr.bf16.mxu0 %v4331_v24 }
  0x7d   :  { %765 = vmatpush2.bf16.msra.mxu0 %v4334_v25 }
  0x7e   :  { %1597 = vmatprep.subr.bf16.mxu0 %v4153_v40 }
  0xaa   :  { %v1150_v26 = vpop.permute.xlu0 %1149 }
  0xab   :  { %3636 = vmatmul.mubr.msk.bf16.vlgmr.msra.gmra.mxu1 %vm305_vm2, %v1150_v26 }
  0xac   :  { %2034 = vmatpush1.bf16.msra.mxu1 %v4095_v17  ;;  %1242 = vmatprep.mubr.bf16.mxu1 %v4004_v0 }
  0xad   :  { %3721 = vmatprep.subr.msk.bf16.mxu1 %vm330_vm0, %v4088_v9  ;;  %v1154_v28 = vpop.permute.xlu1 %1153  ;;  %vm1105_vm0 = vcmask 982912  }
  0xae   :  { %v1152_v27 = vpop.permute.xlu0 %1151 }
  0xb1   :  { %v1156_v29 = vpop.permute.xlu1 %1155 }
  0xb2   :  { %v1158_v30 = vpop.permute.xlu0 %1157 }
  0xb3   :  { %3637 = vmatmul.mubr.msk.bf16.gmra.mxu1 %vm305_vm2, %v1152_v27 }
  0xb4   :  { %1252 = vmatprep.mubr.bf16.mxu1 %v4004_v0 }
  0xb5   :  { %v1160_v9 = vpop.permute.xlu1 %1159 }
  0xb6   :  { %v1162_v31 = vpop.permute.xlu0 %1161 }
  0xb9   :  { %v1164_v32 = vpop.permute.xlu1 %1163 }
  0xba   :  { %v1969_v33 = vpop.permute.xlu0 %1968 }
  0xbb   :  { %3638 = vmatmul.mubr.msk.bf16.gmra.mxu1 %vm305_vm2, %v1154_v28 }
  0xbc   :  { %1262 = vmatprep.mubr.bf16.mxu1 %v4004_v0 }
  0xbd   :  { %v1971_v35 = vpop.permute.xlu1 %1970 }
  0xbe   :  { %v1973_v39 = vpop.permute.xlu0 %1972 }
  0xc1   :  { %v1975_v58 = vpop.permute.xlu1 %1974 }
  0xc3   :  { %3639 = vmatmul.mubr.msk.bf16.gmra.mxu1 %vm305_vm2, %v1156_v29 }
  0xc4   :  { %1272 = vmatprep.mubr.bf16.mxu1 %v4004_v0 }
  0xcb   :  { %3640 = vmatmul.mubr.msk.bf16.gmra.mxu1 %vm305_vm2, %v1158_v30 }
  0xcc   :  { %1282 = vmatprep.mubr.bf16.mxu1 %v4004_v0 }
  0xd3   :  { %3641 = vmatmul.mubr.msk.bf16.gmra.mxu1 %vm305_vm2, %v1160_v9 }
  0xd4   :  { %1292 = vmatprep.mubr.bf16.mxu1 %v4004_v0 }
  0xdb   :  { %3642 = vmatmul.mubr.msk.bf16.gmra.mxu1 %vm305_vm2, %v1162_v31 }
  0xdc   :  { %1302 = vmatprep.mubr.bf16.mxu1 %v4004_v0 }
  0xe3   :  { %3643 = vmatmul.mubr.msk.bf16.gmra.mxu1 %vm305_vm2, %v1164_v32 }
  0xe4   :  { %2051 = vmatprep.mubr.bf16.mxu1 %v4004_v0 }
  0xeb   :  { %3679 = vmatmul.mubr.msk.bf16.vlgmr.msra.gmra.mxu1 %vm305_vm2, %v1969_v33 }
  0xec   :  { %2853 = vmatpush1.bf16.msra.mxu1 %v4095_v17  ;;  %2061 = vmatprep.mubr.bf16.mxu1 %v4004_v0  ;;  %v4373_v17 = vsub.s32 1, %v4362_v36 }
  0xee   :  { %5460 = vst [vmem:[#allocation15_spill] sm:$0xff] %v4373_v17  ;;  %v4380_v42 = vrot.slane %v113_v38, %v4373_v17  ;;  %v4649_v17 = vld [vmem:[#allocation8 + $0xa0] ss:$8 sps:$4 sm:$0xff]  }
  0xef   :  { %5481 = vst [vmem:[#allocation36_spill] sm:$0xff] %v4649_v17 }
  0xf3   :  { %3680 = vmatmul.mubr.msk.bf16.gmra.mxu1 %vm305_vm2, %v1971_v35 }
  0xf4   :  { %2071 = vmatprep.mubr.bf16.mxu1 %v4004_v0 }
  0xfb   :  { %3681 = vmatmul.mubr.msk.bf16.gmra.mxu1 %vm305_vm2, %v1973_v39  ;;  %v194_v46 = vpop.f32.mrf.mxu0 }
  0xfc   :  { %2081 = vmatprep.mubr.bf16.mxu1 %v4004_v0  ;;  %v4384_v48 = vadd.f32 %v194_v46, %v4376_v41 }
  0xfd   :  { %v196_v49 = vpop.f32.mrf.mxu0  ;;  %v371_v53 = vpop.f32.mrf.mxu1 }
  0xfe   :  { %5461 = vst [vmem:[#allocation16_spill] sm:$0xff] %v4384_v48  ;;  %v4387_v57 = vadd.f32 %v196_v49, %v4380_v42  ;;  %v450_v60 = vadd.f32 %v371_v53, %v4384_v48  ;;  %v1977_v49 = vpop.permute.xlu0 %1976 }
  0xff   :  { %v198_v1 = vpop.f32.mrf.mxu0  ;;  %v373_v2 = vpop.f32.mrf.mxu1 }
 0x100   :  { %5462 = vst [vmem:[#allocation17_spill] sm:$0xff] %v4387_v57  ;;  %v4391_v4 = vadd.f32 %v198_v1, %v4376_v41  ;;  %v451_v8 = vadd.f32 %v373_v2, %v4387_v57  ;;  %v482_v28 = vmax.f32 %v450_v60, 0.0 }
 0x101   :  { %v200_v10 = vpop.f32.mrf.mxu0  ;;  %v375_v12 = vpop.f32.mrf.mxu1 }
 0x102   :  { %5463 = vst [vmem:[#allocation18_spill] sm:$0xff] %v4391_v4  ;;  %v4395_v26 = vadd.f32 %v200_v10, %v4380_v42  ;;  %v452_v27 = vadd.f32 %v375_v12, %v4391_v4  ;;  %v483_v9 = vmax.f32 %v451_v8, 0.0 }
 0x103   :  { %3682 = vmatmul.mubr.msk.bf16.gmra.mxu1 %vm305_vm2, %v1975_v58  ;;  %v204_v29 = vpop.f32.mrf.mxu0  ;;  %v377_v30 = vpop.f32.mrf.mxu1 }
 0x104   :  { %5464 = vst [vmem:[#allocation19_spill] sm:$0xff] %v4395_v26  ;;  %2091 = vmatprep.mubr.bf16.mxu1 %v4004_v0  ;;  %v484_v31 = vmax.f32 %v452_v27, 0.0  ;;  %v4401_v32 = vadd.f32 %v204_v29, %v4376_v41  ;;  %v453_v33 = vadd.f32 %v377_v30, %v4395_v26 }
 0x105   :  { %v206_v35 = vpop.f32.mrf.mxu0  ;;  %v381_v38 = vpop.f32.mrf.mxu1 }
 0x106   :  { %5465 = vst [vmem:[#allocation20_spill] sm:$0xff] %v4401_v32  ;;  %v485_v39 = vmax.f32 %v453_v33, 0.0  ;;  %v4405_v46 = vadd.f32 %v206_v35, %v4380_v42  ;;  %v514_v53 = vpack.c.bf16 %v484_v31, %v482_v28  ;;  %v454_v58 = vadd.f32 %v381_v38, %v4401_v32 }
 0x107   :  { %v208_v60 = vpop.f32.mrf.mxu0  ;;  %v383_v1 = vpop.f32.mrf.mxu1 }
 0x108   :  { %5466 = vst [vmem:[#allocation21_spill] sm:$0xff] %v4405_v46  ;;  %v4409_v2 = vadd.f32 %v208_v60, %v4376_v41  ;;  %v455_v8 = vadd.f32 %v383_v1, %v4405_v46  ;;  %v515_v10 = vpack.c.bf16 %v485_v39, %v483_v9  ;;  %v486_v28 = vmax.f32 %v454_v58, 0.0 }
 0x109   :  { %v210_v12 = vpop.f32.mrf.mxu0  ;;  %v385_v27 = vpop.f32.mrf.mxu1 }
 0x10a   :  { %v4413_v29 = vadd.f32 %v210_v12, %v4380_v42  ;;  %v456_v30 = vadd.f32 %v385_v27, %v4409_v2  ;;  %766 = vmatprep.mubr.bf16.mxu0 %v515_v10  ;;  %v487_v35 = vmax.f32 %v455_v8, 0.0 }
 0x10b   :  { %3683 = vmatmul.mubr.msk.bf16.gmra.mxu1 %vm305_vm2, %v1977_v49  ;;  %v214_v31 = vpop.f32.mrf.mxu0  ;;  %v387_v33 = vpop.f32.mrf.mxu1  ;;  %767 = vmatmul.mubr.bf16.vlgmr.msra.gmra.mxu0 %v514_v53 }
 0x10c   :  { %2101 = vmatprep.mubr.bf16.mxu1 %v4004_v0  ;;  %v488_v38 = vmax.f32 %v456_v30, 0.0  ;;  %v4419_v9 = vadd.f32 %v214_v31, %v4376_v41  ;;  %v457_v39 = vadd.f32 %v387_v33, %v4413_v29  ;;  %1598 = vmatpush1.bf16.msra.mxu0 %v4161_v43  ;;  %v1979_v53 = vpop.permute.xlu1 %1978 }
 0x10d   :  { %v216_v60 = vpop.f32.mrf.mxu0  ;;  %v391_v1 = vpop.f32.mrf.mxu1  ;;  %1599 = vmatprep.subr.bf16.mxu0 %v4163_v44 }
 0x10e   :  { %v489_v49 = vmax.f32 %v457_v39, 0.0  ;;  %v4425_v58 = vadd.f32 %v216_v60, %v4380_v42  ;;  %v516_v10 = vpack.c.bf16 %v488_v38, %v486_v28  ;;  %v458_v8 = vadd.f32 %v391_v1, %v4419_v9 }
 0x10f   :  { %v218_v12 = vpop.f32.mrf.mxu0  ;;  %v393_v27 = vpop.f32.mrf.mxu1 }
 0x110   :  { %v4429_v30 = vadd.f32 %v218_v12, %v4376_v41  ;;  %v459_v31 = vadd.f32 %v393_v27, %v4425_v58  ;;  %v517_v43 = vpack.c.bf16 %v489_v49, %v487_v35  ;;  %1600 = vmatpush1.bf16.msra.mxu0 %v4171_v45  ;;  %v490_v38 = vmax.f32 %v458_v8, 0.0 }
 0x111   :  { %v220_v33 = vpop.f32.mrf.mxu0  ;;  %v395_v44 = vpop.f32.mrf.mxu1  ;;  %1601 = vmatprep.subr.bf16.mxu0 %v4183_v47 }
 0x112   :  { %v4435_v39 = vadd.f32 %v220_v33, %v4380_v42  ;;  %v460_v28 = vadd.f32 %v395_v44, %v4429_v30  ;;  %776 = vmatprep.mubr.bf16.mxu0 %v517_v43  ;;  %v491_v35 = vmax.f32 %v459_v31, 0.0 }
 0x113   :  { %3684 = vmatmul.mubr.msk.bf16.gmra.mxu1 %vm305_vm2, %v1979_v53  ;;  %v224_v60 = vpop.f32.mrf.mxu0  ;;  %v397_v1 = vpop.f32.mrf.mxu1  ;;  %777 = vmatmul.mubr.bf16.gmra.mxu0 %v516_v10 }
 0x114   :  { %2111 = vmatprep.mubr.bf16.mxu1 %v4004_v0  ;;  %v492_v45 = vmax.f32 %v460_v28, 0.0  ;;  %v4441_v49 = vadd.f32 %v224_v60, %v4376_v41  ;;  %v461_v47 = vadd.f32 %v397_v1, %v4435_v39  ;;  %1602 = vmatpush1.bf16.msra.mxu0 %v4192_v50  ;;  %v1981_v10 = vpop.permute.xlu0 %1980 }
 0x115   :  { %v226_v12 = vpop.f32.mrf.mxu0  ;;  %v401_v27 = vpop.f32.mrf.mxu1  ;;  %1603 = vmatprep.subr.bf16.mxu0 %v4194_v51 }
 0x116   :  { %v493_v53 = vmax.f32 %v461_v47, 0.0  ;;  %v4447_v8 = vadd.f32 %v226_v12, %v4380_v42  ;;  %v518_v43 = vpack.c.bf16 %v492_v45, %v490_v38  ;;  %v462_v31 = vadd.f32 %v401_v27, %v4441_v49 }
 0x117   :  { %v228_v33 = vpop.f32.mrf.mxu0  ;;  %v403_v44 = vpop.f32.mrf.mxu1 }
 0x118   :  { %v4451_v28 = vadd.f32 %v228_v33, %v4376_v41  ;;  %v463_v60 = vadd.f32 %v403_v44, %v4447_v8  ;;  %v519_v50 = vpack.c.bf16 %v493_v53, %v491_v35  ;;  %1604 = vmatpush1.bf16.msra.mxu0 %v4202_v52  ;;  %v494_v45 = vmax.f32 %v462_v31, 0.0 }
 0x119   :  { %v230_v1 = vpop.f32.mrf.mxu0  ;;  %v405_v51 = vpop.f32.mrf.mxu1  ;;  %1605 = vmatprep.subr.bf16.mxu0 %v4214_v54 }
 0x11a   :  { %v4457_v47 = vadd.f32 %v230_v1, %v4380_v42  ;;  %v464_v38 = vadd.f32 %v405_v51, %v4451_v28  ;;  %786 = vmatprep.mubr.bf16.mxu0 %v519_v50  ;;  %v495_v35 = vmax.f32 %v463_v60, 0.0 }
 0x11b   :  { %3685 = vmatmul.mubr.msk.bf16.gmra.mxu1 %vm305_vm2, %v1981_v10  ;;  %v234_v12 = vpop.f32.mrf.mxu0  ;;  %v407_v27 = vpop.f32.mrf.mxu1  ;;  %787 = vmatmul.mubr.bf16.gmra.mxu0 %v518_v43 }
 0x11c   :  { %2121 = vmatprep.mubr.bf16.mxu1 %v4004_v0  ;;  %v496_v52 = vmax.f32 %v464_v38, 0.0  ;;  %v4463_v53 = vadd.f32 %v234_v12, %v4376_v41  ;;  %v465_v54 = vadd.f32 %v407_v27, %v4457_v47  ;;  %1606 = vmatpush1.bf16.msra.mxu0 %v4217_v55  ;;  %v1983_v43 = vpop.permute.xlu1 %1982 }
 0x11d   :  { %v236_v33 = vpop.f32.mrf.mxu0  ;;  %v411_v44 = vpop.f32.mrf.mxu1  ;;  %1607 = vmatprep.subr.bf16.mxu0 %v4222_v56 }
 0x11e   :  { %v497_v10 = vmax.f32 %v465_v54, 0.0  ;;  %v4469_v31 = vadd.f32 %v236_v33, %v4380_v42  ;;  %v520_v50 = vpack.c.bf16 %v496_v52, %v494_v45  ;;  %v466_v60 = vadd.f32 %v411_v44, %v4463_v53 }
 0x11f   :  { %v238_v1 = vpop.f32.mrf.mxu0  ;;  %v413_v51 = vpop.f32.mrf.mxu1 }
 0x120   :  { %v4473_v38 = vadd.f32 %v238_v1, %v4376_v41  ;;  %v467_v12 = vadd.f32 %v413_v51, %v4469_v31  ;;  %v521_v55 = vpack.c.bf16 %v497_v10, %v495_v35  ;;  %1608 = vmatpush1.bf16.msra.mxu0 %v4238_v59  ;;  %v498_v52 = vmax.f32 %v466_v60, 0.0 }
 0x121   :  { %v240_v27 = vpop.f32.mrf.mxu0  ;;  %v415_v56 = vpop.f32.mrf.mxu1  ;;  %1609 = vmatprep.subr.bf16.mxu0 %v4245_v61 }
 0x122   :  { %v4479_v54 = vadd.f32 %v240_v27, %v4380_v42  ;;  %v468_v45 = vadd.f32 %v415_v56, %v4473_v38  ;;  %796 = vmatprep.mubr.bf16.mxu0 %v521_v55  ;;  %v499_v35 = vmax.f32 %v467_v12, 0.0 }
 0x123   :  { %3686 = vmatmul.mubr.msk.bf16.gmra.mxu1 %vm305_vm2, %v1983_v43  ;;  %v244_v33 = vpop.f32.mrf.mxu0  ;;  %v417_v44 = vpop.f32.mrf.mxu1  ;;  %797 = vmatmul.mubr.bf16.gmra.mxu0 %v520_v50 }
 0x124   :  { %2870 = vmatprep.mubr.bf16.mxu1 %v4004_v0  ;;  %v500_v59 = vmax.f32 %v468_v45, 0.0  ;;  %v4485_v10 = vadd.f32 %v244_v33, %v4376_v41  ;;  %v469_v61 = vadd.f32 %v417_v44, %v4479_v54  ;;  %1610 = vmatpush1.bf16.msra.mxu0 %v4248_v62  ;;  %v2788_v50 = vpop.permute.xlu0 %2787 }
 0x125   :  { %v246_v1 = vpop.f32.mrf.mxu0  ;;  %v421_v51 = vpop.f32.mrf.mxu1  ;;  %1611 = vmatprep.subr.bf16.mxu0 %v4252_v63 }
 0x126   :  { %v501_v43 = vmax.f32 %v469_v61, 0.0  ;;  %v4491_v60 = vadd.f32 %v246_v1, %v4380_v42  ;;  %v522_v55 = vpack.c.bf16 %v500_v59, %v498_v52  ;;  %v470_v12 = vadd.f32 %v421_v51, %v4485_v10 }
 0x127   :  { %v248_v27 = vpop.f32.mrf.mxu0  ;;  %v423_v56 = vpop.f32.mrf.mxu1 }
 0x128   :  { %v4495_v45 = vadd.f32 %v248_v27, %v4376_v41  ;;  %v471_v33 = vadd.f32 %v423_v56, %v4491_v60  ;;  %v523_v62 = vpack.c.bf16 %v501_v43, %v499_v35  ;;  %1612 = vmatpush1.bf16.msra.mxu0 %v4269_v3  ;;  %v502_v59 = vmax.f32 %v470_v12, 0.0 }
 0x129   :  { %v250_v44 = vpop.f32.mrf.mxu0  ;;  %v425_v63 = vpop.f32.mrf.mxu1  ;;  %1613 = vmatprep.subr.bf16.mxu0 %v4274_v5 }
 0x12a   :  { %v4501_v61 = vadd.f32 %v250_v44, %v4380_v42  ;;  %v472_v52 = vadd.f32 %v425_v63, %v4495_v45  ;;  %806 = vmatprep.mubr.bf16.mxu0 %v523_v62  ;;  %v503_v35 = vmax.f32 %v471_v33, 0.0 }
 0x12b   :  { %3722 = vmatmul.mubr.msk.bf16.vlgmr.msra.gmra.mxu1 %vm305_vm2, %v2788_v50  ;;  %v254_v1 = vpop.f32.mrf.mxu0  ;;  %v427_v51 = vpop.f32.mrf.mxu1  ;;  %807 = vmatmul.mubr.bf16.gmra.mxu0 %v522_v55 }
 0x12c   :  { %2880 = vmatprep.mubr.bf16.mxu1 %v4004_v0  ;;  %v504_v3 = vmax.f32 %v472_v52, 0.0  ;;  %v4507_v43 = vadd.f32 %v254_v1, %v4376_v41  ;;  %v473_v5 = vadd.f32 %v427_v51, %v4501_v61  ;;  %1614 = vmatpush2.bf16.msra.mxu0 %v4277_v6  ;;  %v2790_v55 = vpop.permute.xlu1 %2789 }
 0x12d   :  { %v256_v27 = vpop.f32.mrf.mxu0  ;;  %v431_v56 = vpop.f32.mrf.mxu1  ;;  %1615 = vmatprep.subr.bf16.mxu0 %v4281_v7 }
 0x12e   :  { %v505_v50 = vmax.f32 %v473_v5, 0.0  ;;  %v4513_v12 = vadd.f32 %v256_v27, %v4380_v42  ;;  %v524_v62 = vpack.c.bf16 %v504_v3, %v502_v59  ;;  %v474_v33 = vadd.f32 %v431_v56, %v4507_v43 }
 0x12f   :  { %v258_v44 = vpop.f32.mrf.mxu0  ;;  %v433_v63 = vpop.f32.mrf.mxu1 }
 0x130   :  { %v4517_v52 = vadd.f32 %v258_v44, %v4376_v41  ;;  %v475_v1 = vadd.f32 %v433_v63, %v4513_v12  ;;  %v525_v6 = vpack.c.bf16 %v505_v50, %v503_v35  ;;  %1616 = vmatpush2.bf16.msra.mxu0 %v4294_v11  ;;  %v506_v3 = vmax.f32 %v474_v33, 0.0 }
 0x131   :  { %v260_v51 = vpop.f32.mrf.mxu0  ;;  %v435_v7 = vpop.f32.mrf.mxu1  ;;  %1617 = vmatprep.subr.bf16.mxu0 %v4297_v13 }
 0x132   :  { %v4523_v5 = vadd.f32 %v260_v51, %v4380_v42  ;;  %v476_v59 = vadd.f32 %v435_v7, %v4517_v52  ;;  %816 = vmatprep.mubr.bf16.mxu0 %v525_v6  ;;  %v507_v35 = vmax.f32 %v475_v1, 0.0 }
 0x133   :  { %3723 = vmatmul.mubr.msk.bf16.gmra.mxu1 %vm305_vm2, %v2790_v55  ;;  %v264_v27 = vpop.f32.mrf.mxu0  ;;  %v437_v56 = vpop.f32.mrf.mxu1  ;;  %817 = vmatmul.mubr.bf16.gmra.mxu0 %v524_v62 }
 0x134   :  { %2890 = vmatprep.mubr.bf16.mxu1 %v4004_v0  ;;  %v508_v11 = vmax.f32 %v476_v59, 0.0  ;;  %v4529_v50 = vadd.f32 %v264_v27, %v4376_v41  ;;  %v477_v13 = vadd.f32 %v437_v56, %v4523_v5  ;;  %1618 = vmatpush2.bf16.msra.mxu0 %v4300_v14  ;;  %v2792_v62 = vpop.permute.xlu0 %2791  ;;  %v4538_v59 = vld [vmem:[#allocation8 + $0x74] ss:$8 sps:$4 sm:$0xff]  }
 0x135   :  { %v266_v44 = vpop.f32.mrf.mxu0  ;;  %v441_v63 = vpop.f32.mrf.mxu1  ;;  %1619 = vmatprep.subr.bf16.mxu0 %v4304_v15  ;;  %5469 = vst [vmem:[#allocation24_spill] sm:$0xff] %v4538_v59  ;;  %3762 = vmatprep.subr.bf16.mxu1 %v4538_v59 }
 0x136   :  { %5467 = vst [vmem:[#allocation22_spill] sm:$0xff] %v4529_v50  ;;  %v509_v55 = vmax.f32 %v477_v13, 0.0  ;;  %v4535_v33 = vadd.f32 %v266_v44, %v4380_v42  ;;  %v526_v6 = vpack.c.bf16 %v508_v11, %v506_v3  ;;  %v478_v1 = vadd.f32 %v441_v63, %v4529_v50  ;;  %v4659_v50 = vld [vmem:[#allocation8 + $0x90] ss:$8 sps:$4 sm:$0xff]  }
 0x137   :  { %v268_v51 = vpop.f32.mrf.mxu0  ;;  %v443_v7 = vpop.f32.mrf.mxu1  ;;  %5483 = vst [vmem:[#allocation38_spill] sm:$0xff] %v4659_v50 }
 0x138   :  { %5468 = vst [vmem:[#allocation23_spill] sm:$0xff] %v4535_v33  ;;  %v4541_v27 = vadd.f32 %v268_v51, %v4376_v41  ;;  %v479_v14 = vadd.f32 %v443_v7, %v4535_v33  ;;  %v527_v56 = vpack.c.bf16 %v509_v55, %v507_v35  ;;  %1620 = vmatpush2.bf16.msra.mxu0 %v4310_v16  ;;  %v4552_v41 = vld [vmem:[#allocation8 + $0x70] ss:$8 sps:$4 sm:$0xff]   ;;  %v510_v44 = vmax.f32 %v478_v1, 0.0  ;;  %v4555_v16 = vld [vmem:[#allocation8 + $0x64] ss:$8 sps:$4 sm:$0xff]   ;;  %v2794_v1 = vpop.permute.xlu1 %2793 }
 0x139   :  { %v270_v15 = vpop.f32.mrf.mxu0  ;;  %v445_v13 = vpop.f32.mrf.mxu1  ;;  %1621 = vmatprep.subr.bf16.mxu0 %v4313_v18  ;;  %5472 = vst [vmem:[#allocation27_spill] sm:$0xff] %v4552_v41  ;;  %5473 = vst [vmem:[#allocation28_spill] sm:$0xff] %v4555_v16  ;;  %3778 = vmatpush1.bf16.msra.mxu1 %v4552_v41  ;;  %v4564_v51 = vld [vmem:[#allocation8 + $0x54] ss:$8 sps:$4 sm:$0xff]  }
 0x13a   :  { %5470 = vst [vmem:[#allocation25_spill] sm:$0xff] %v4541_v27  ;;  %v4548_v3 = vadd.f32 %v270_v15, %v4380_v42  ;;  %v480_v11 = vadd.f32 %v445_v13, %v4541_v27  ;;  %826 = vmatprep.mubr.bf16.mxu0 %v527_v56  ;;  %v511_v18 = vmax.f32 %v479_v14, 0.0  ;;  %3763 = vmatprep.subr.bf16.mxu1 %v4555_v16  ;;  %v4582_v14 = vld [vmem:[#allocation8 + $0x34] ss:$8 sps:$4 sm:$0xff]   ;;  %v4596_v56 = vld [vmem:[#allocation8 + $0x20] ss:$8 sps:$4 sm:$0xff]  }
 0x13b   :  { %3724 = vmatmul.mubr.msk.bf16.gmra.mxu1 %vm305_vm2, %v2792_v62  ;;  %v447_v35 = vpop.f32.mrf.mxu1  ;;  %827 = vmatmul.mubr.bf16.gmra.mxu0 %v526_v6  ;;  %v4562_v62 = vld [vmem:[#allocation8 + $0x60] ss:$8 sps:$4 sm:$0xff]   ;;  %v4598_v15 = vld [vmem:[#allocation8 + $0x14] ss:$8 sps:$4 sm:$0xff]   ;;  %v4606_v13 = vld [vmem:[#allocation8 + $0x4] ss:$8 sps:$4 sm:$0xff]  }
 0x13c   :  { %5471 = vst [vmem:[#allocation26_spill] sm:$0xff] %v4548_v3  ;;  %2900 = vmatprep.mubr.bf16.mxu1 %v4004_v0  ;;  %v512_v63 = vmax.f32 %v480_v11, 0.0  ;;  %v481_v55 = vadd.f32 %v447_v35, %v4548_v3  ;;  %1622 = vmatpush2.bf16.msra.mxu0 %v4316_v19  ;;  %5474 = vst [vmem:[#allocation29_spill] sm:$0xff] %v4562_v62  ;;  %v4571_v19 = vld [vmem:[#allocation8 + $0x50] ss:$8 sps:$4 sm:$0xff]  }
 0x13d   :  { %1623 = vmatprep.subr.bf16.mxu0 %v4319_v20  ;;  %3779 = vmatpush1.bf16.msra.mxu1 %v4562_v62  ;;  %v4574_v20 = vld [vmem:[#allocation8 + $0x44] ss:$8 sps:$4 sm:$0xff]   ;;  %v4610_v11 = vld [vmem:[#allocation8] ss:$8 sps:$4 sm:$0xff]   ;;  %v4612_v35 = vld [vmem:[#allocation8 + $0xf4] ss:$8 sps:$4 sm:$0xff]  }
 0x13e   :  { %v513_v42 = vmax.f32 %v481_v55, 0.0  ;;  %v528_v6 = vpack.c.bf16 %v512_v63, %v510_v44  ;;  %3764 = vmatprep.subr.bf16.mxu1 %v4564_v51  ;;  %v4620_v63 = vld [vmem:[#allocation8 + $0xe4] ss:$8 sps:$4 sm:$0xff]   ;;  %v4624_v55 = vld [vmem:[#allocation8 + $0xe0] ss:$8 sps:$4 sm:$0xff]  }
 0x13f   :  { %v4653_v16 = vld [vmem:[#allocation8 + $0x94] ss:$8 sps:$4 sm:$0xff]  }
 0x140   :  { %v529_v7 = vpack.c.bf16 %v513_v42, %v511_v18  ;;  %1624 = vmatpush2.bf16.msra.mxu0 %v4322_v21  ;;  %v4580_v21 = vld [vmem:[#allocation8 + $0x40] ss:$8 sps:$4 sm:$0xff]   ;;  %v4617_v18 = vld [vmem:[#allocation8 + $0xf0] ss:$8 sps:$4 sm:$0xff]   ;;  %5482 = vst [vmem:[#allocation37_spill] sm:$0xff] %v4653_v16 }
 0x141   :  { %1625 = vmatprep.subr.bf16.mxu0 %v4325_v22  ;;  %3780 = vmatpush1.bf16.msra.mxu1 %v4571_v19  ;;  %v2796_v22 = vpop.permute.xlu0 %2795 }
 0x142   :  { %836 = vmatprep.mubr.bf16.mxu0 %v529_v7  ;;  %3765 = vmatprep.subr.bf16.mxu1 %v4574_v20  ;;  %v4637_v7 = vld [vmem:[#allocation8 + $0xc0] ss:$8 sps:$4 sm:$0xff]  }
 0x143   :  { %3725 = vmatmul.mubr.msk.bf16.gmra.mxu1 %vm305_vm2, %v2794_v1  ;;  %837 = vmatmul.mubr.bf16.gmra.mxu0 %v528_v6  ;;  %v4626_v6 = vld [vmem:[#allocation8 + $0xd4] ss:$8 sps:$4 sm:$0xff]   ;;  %v4631_v1 = vld [vmem:[#allocation8 + $0xd0] ss:$8 sps:$4 sm:$0xff]   ;;  %5477 = vst [vmem:[#allocation32_spill] sm:$0xff] %v4637_v7 }
 0x144   :  { %2910 = vmatprep.mubr.bf16.mxu1 %v4004_v0  ;;  %1626 = vmatpush2.bf16.msra.mxu0 %v4328_v23  ;;  %v4589_v23 = vld [vmem:[#allocation8 + $0x30] ss:$8 sps:$4 sm:$0xff]   ;;  %5475 = vst [vmem:[#allocation30_spill] sm:$0xff] %v4631_v1 }
 0x145   :  { %1627 = vmatprep.subr.bf16.mxu0 %v4331_v24  ;;  %3781 = vmatpush1.bf16.msra.mxu1 %v4580_v21  ;;  %v4592_v24 = vld [vmem:[#allocation8 + $0x24] ss:$8 sps:$4 sm:$0xff]   ;;  %v2800_v44 = vpop.permute.xlu0 %2799 }
 0x146   :  { %3766 = vmatprep.subr.bf16.mxu1 %v4582_v14 }
 0x148   :  { %1628 = vmatpush2.bf16.msra.mxu0 %v4334_v25  ;;  %v2798_v25 = vpop.permute.xlu1 %2797 }
 0x149   :  { %2416 = vmatprep.subr.bf16.mxu0 %v4153_v40  ;;  %3782 = vmatpush1.bf16.msra.mxu1 %v4589_v23  ;;  %v4603_v40 = vld [vmem:[#allocation8 + $0x10] ss:$8 sps:$4 sm:$0xff]  }
 0x14a   :  { %3767 = vmatprep.subr.bf16.mxu1 %v4592_v24 }
 0x14b   :  { %3726 = vmatmul.mubr.msk.bf16.gmra.mxu1 %vm305_vm2, %v2796_v22  ;;  %v4639_v22 = vld [vmem:[#allocation8 + $0xb4] ss:$8 sps:$4 sm:$0xff]  }
 0x14c   :  { %2920 = vmatprep.mubr.bf16.mxu1 %v4004_v0  ;;  %v2802_v42 = vpop.permute.xlu1 %2801  ;;  %5478 = vst [vmem:[#allocation33_spill] sm:$0xff] %v4639_v22 }
 0x14d   :  { %3783 = vmatpush1.bf16.msra.mxu1 %v4596_v56 }
 0x14e   :  { %3768 = vmatprep.subr.bf16.mxu1 %v4598_v15 }
 0x151   :  { %3784 = vmatpush1.bf16.msra.mxu1 %v4603_v40 }
 0x152   :  { %3769 = vmatprep.subr.bf16.mxu1 %v4606_v13 }
 0x153   :  { %3727 = vmatmul.mubr.msk.bf16.gmra.mxu1 %vm305_vm2, %v2798_v25 }
 0x154   :  { %2930 = vmatprep.mubr.bf16.mxu1 %v4004_v0 }
 0x155   :  { %3785 = vmatpush1.bf16.msra.mxu1 %v4610_v11 }
 0x156   :  { %3770 = vmatprep.subr.bf16.mxu1 %v4612_v35 }
 0x159   :  { %3786 = vmatpush2.bf16.msra.mxu1 %v4617_v18 }
 0x15a   :  { %3771 = vmatprep.subr.bf16.mxu1 %v4620_v63 }
 0x15b   :  { %3728 = vmatmul.mubr.msk.bf16.gmra.mxu1 %vm305_vm2, %v2800_v44  ;;  %v4643_v44 = vld [vmem:[#allocation8 + $0xb0] ss:$8 sps:$4 sm:$0xff]  }
 0x15c   :  { %2940 = vmatprep.mubr.bf16.mxu1 %v4004_v0  ;;  %v4633_v0 = vld [vmem:[#allocation8 + $0xc4] ss:$8 sps:$4 sm:$0xff]   ;;  %5479 = vst [vmem:[#allocation34_spill] sm:$0xff] %v4643_v44 }
 0x15d   :  { %3787 = vmatpush2.bf16.msra.mxu1 %v4624_v55  ;;  %5476 = vst [vmem:[#allocation31_spill] sm:$0xff] %v4633_v0 }
 0x15e   :  { %3772 = vmatprep.subr.bf16.mxu1 %v4626_v6 }
 0x161   :  { %3788 = vmatpush2.bf16.msra.mxu1 %v4631_v1 }
 0x162   :  { %3773 = vmatprep.subr.bf16.mxu1 %v4633_v0 }
 0x163   :  { %3729 = vmatmul.mubr.msk.bf16.gmra.mxu1 %vm305_vm2, %v2802_v42  ;;  %v4645_v42 = vld [vmem:[#allocation8 + $0xa4] ss:$8 sps:$4 sm:$0xff]  }
 0x164   :  { %5480 = vst [vmem:[#allocation35_spill] sm:$0xff] %v4645_v42 }
 0x165   :  { %3789 = vmatpush2.bf16.msra.mxu1 %v4637_v7 }
 0x166   :  { %3774 = vmatprep.subr.bf16.mxu1 %v4639_v22 }
 0x169   :  { %3790 = vmatpush2.bf16.msra.mxu1 %v4643_v44 }
 0x16a   :  { %3775 = vmatprep.subr.bf16.mxu1 %v4645_v42 }
 0x16b   :  { %v1234_v25 = vpop.f32.mrf.mxu1 }
 0x16c   :  { %v1313_v41 = vadd.f32 %v1234_v25, %v4384_v48 }
 0x16d   :  { %v1236_v34 = vpop.f32.mrf.mxu1  ;;  %3791 = vmatpush2.bf16.msra.mxu1 %v4649_v17 }
 0x16e   :  { %v1314_v37 = vadd.f32 %v1236_v34, %v4387_v57  ;;  %3776 = vmatprep.subr.bf16.mxu1 %v4653_v16  ;;  %v4661_v34 = vld [vmem:[#allocation8 + $0x84] ss:$8 sps:$4 sm:$0xff]  }
 0x16f   :  { %v1238_v36 = vpop.f32.mrf.mxu1  ;;  %5484 = vst [vmem:[#allocation39_spill] sm:$0xff] %v4661_v34 }
 0x170   :  { %v1315_v62 = vadd.f32 %v1238_v36, %v4391_v4  ;;  %v1346_v27 = vmax.f32 %v1314_v37, 0.0  ;;  %v1345_v36 = vmax.f32 %v1313_v41, 0.0 }
 0x171   :  { %v1240_v59 = vpop.f32.mrf.mxu1  ;;  %3792 = vmatpush2.bf16.msra.mxu1 %v4659_v50 }
 0x172   :  { %v1316_v3 = vadd.f32 %v1240_v59, %v4395_v26  ;;  %v1347_v44 = vmax.f32 %v1315_v62, 0.0  ;;  %3777 = vmatprep.subr.bf16.mxu1 %v4661_v34  ;;  %v4665_v59 = vld [vmem:[#allocation8 + $0x80] ss:$8 sps:$4 sm:$0xff]  }
 0x173   :  { %v1244_v42 = vpop.f32.mrf.mxu1  ;;  %5485 = vst [vmem:[#allocation40_spill] sm:$0xff] %v4665_v59 }
 0x174   :  { %v1348_v33 = vmax.f32 %v1316_v3, 0.0  ;;  %v1377_v48 = vpack.c.bf16 %v1347_v44, %v1345_v36  ;;  %v1317_v37 = vadd.f32 %v1244_v42, %v4401_v32  ;;  %v3908_v36 = vld [vmem:[#allocation8 + $0x64] ss:$8 sps:$4 sm:$0xff]  }
 0x175   :  { %v1246_v4 = vpop.f32.mrf.mxu1  ;;  %3793 = vmatpush2.bf16.msra.mxu1 %v4665_v59 }
 0x176   :  { %v1378_v25 = vpack.c.bf16 %v1348_v33, %v1346_v27  ;;  %v1318_v62 = vadd.f32 %v1246_v4, %v4405_v46  ;;  %v3907_v33 = vld [vmem:[#allocation8 + $0x70] ss:$8 sps:$4 sm:$0xff]   ;;  %v1349_v4 = vmax.f32 %v1317_v37, 0.0 }
 0x177   :  { %v1248_v57 = vpop.f32.mrf.mxu1 }
 0x178   :  { %v1319_v26 = vadd.f32 %v1248_v57, %v4409_v2  ;;  %1629 = vmatprep.mubr.bf16.mxu0 %v1378_v25  ;;  %v1350_v34 = vmax.f32 %v1318_v62, 0.0  ;;  %v3909_v25 = vld [vmem:[#allocation8 + $0x60] ss:$8 sps:$4 sm:$0xff]  }
 0x179   :  { %v1250_v3 = vpop.f32.mrf.mxu1  ;;  %1630 = vmatmul.mubr.bf16.vlgmr.msra.gmra.mxu0 %v1377_v48 }
 0x17a   :  { %v1320_v41 = vadd.f32 %v1250_v3, %v4413_v29  ;;  %2417 = vmatpush1.bf16.msra.mxu0 %v3907_v33  ;;  %v1351_v27 = vmax.f32 %v1319_v26, 0.0 }
 0x17b   :  { %v1254_v44 = vpop.f32.mrf.mxu1  ;;  %2418 = vmatprep.subr.bf16.mxu0 %v3908_v36 }
 0x17c   :  { %v1352_v50 = vmax.f32 %v1320_v41, 0.0  ;;  %v1379_v42 = vpack.c.bf16 %v1351_v27, %v1349_v4  ;;  %v1321_v26 = vadd.f32 %v1254_v44, %v4419_v9 }
 0x17d   :  { %v1256_v46 = vpop.f32.mrf.mxu1 }
 0x17e   :  { %v1380_v57 = vpack.c.bf16 %v1352_v50, %v1350_v34  ;;  %2419 = vmatpush1.bf16.msra.mxu0 %v3909_v25  ;;  %v1322_v48 = vadd.f32 %v1256_v46, %v4425_v58  ;;  %v1353_v27 = vmax.f32 %v1321_v26, 0.0 }
 0x17f   :  { %v1258_v32 = vpop.f32.mrf.mxu1  ;;  %2420 = vmatprep.subr.bf16.mxu0 %v4564_v51 }
 0x180   :  { %v1323_v3 = vadd.f32 %v1258_v32, %v4429_v30  ;;  %1639 = vmatprep.mubr.bf16.mxu0 %v1380_v57  ;;  %v1354_v37 = vmax.f32 %v1322_v48, 0.0 }
 0x181   :  { %v1260_v33 = vpop.f32.mrf.mxu1  ;;  %1640 = vmatmul.mubr.bf16.gmra.mxu0 %v1379_v42 }
 0x182   :  { %v1324_v62 = vadd.f32 %v1260_v33, %v4435_v39  ;;  %2421 = vmatpush1.bf16.msra.mxu0 %v4571_v19  ;;  %v1355_v50 = vmax.f32 %v1323_v3, 0.0 }
 0x183   :  { %v1264_v34 = vpop.f32.mrf.mxu1  ;;  %2422 = vmatprep.subr.bf16.mxu0 %v4574_v20 }
 0x184   :  { %v1356_v41 = vmax.f32 %v1324_v62, 0.0  ;;  %v1381_v32 = vpack.c.bf16 %v1355_v50, %v1353_v27  ;;  %v1325_v25 = vadd.f32 %v1264_v34, %v4441_v49 }
 0x185   :  { %v1266_v36 = vpop.f32.mrf.mxu1 }
 0x186   :  { %v1382_v46 = vpack.c.bf16 %v1356_v41, %v1354_v37  ;;  %2423 = vmatpush1.bf16.msra.mxu0 %v4580_v21  ;;  %v1326_v44 = vadd.f32 %v1266_v36, %v4447_v8  ;;  %v1357_v50 = vmax.f32 %v1325_v25, 0.0 }
 0x187   :  { %v1268_v4 = vpop.f32.mrf.mxu1  ;;  %2424 = vmatprep.subr.bf16.mxu0 %v4582_v14 }
 0x188   :  { %v1327_v57 = vadd.f32 %v1268_v4, %v4451_v28  ;;  %1649 = vmatprep.mubr.bf16.mxu0 %v1382_v46  ;;  %v1358_v33 = vmax.f32 %v1326_v44, 0.0 }
 0x189   :  { %v1270_v42 = vpop.f32.mrf.mxu1  ;;  %1650 = vmatmul.mubr.bf16.gmra.mxu0 %v1381_v32 }
 0x18a   :  { %v1328_v48 = vadd.f32 %v1270_v42, %v4457_v47  ;;  %2425 = vmatpush1.bf16.msra.mxu0 %v4589_v23  ;;  %v1359_v3 = vmax.f32 %v1327_v57, 0.0 }
 0x18b   :  { %v1274_v26 = vpop.f32.mrf.mxu1  ;;  %2426 = vmatprep.subr.bf16.mxu0 %v4592_v24 }
 0x18c   :  { %v1360_v62 = vmax.f32 %v1328_v48, 0.0  ;;  %v1383_v27 = vpack.c.bf16 %v1359_v3, %v1357_v50  ;;  %v1329_v32 = vadd.f32 %v1274_v26, %v4463_v53 }
 0x18d   :  { %v1276_v37 = vpop.f32.mrf.mxu1 }
 0x18e   :  { %v1384_v41 = vpack.c.bf16 %v1360_v62, %v1358_v33  ;;  %2427 = vmatpush1.bf16.msra.mxu0 %v4596_v56  ;;  %v1330_v34 = vadd.f32 %v1276_v37, %v4469_v31  ;;  %v1361_v3 = vmax.f32 %v1329_v32, 0.0 }
 0x18f   :  { %v1278_v36 = vpop.f32.mrf.mxu1  ;;  %2428 = vmatprep.subr.bf16.mxu0 %v4598_v15 }
 0x190   :  { %v1331_v46 = vadd.f32 %v1278_v36, %v4473_v38  ;;  %1659 = vmatprep.mubr.bf16.mxu0 %v1384_v41  ;;  %v1362_v42 = vmax.f32 %v1330_v34, 0.0 }
 0x191   :  { %v1280_v4 = vpop.f32.mrf.mxu1  ;;  %1660 = vmatmul.mubr.bf16.gmra.mxu0 %v1383_v27 }
 0x192   :  { %v1332_v44 = vadd.f32 %v1280_v4, %v4479_v54  ;;  %2429 = vmatpush1.bf16.msra.mxu0 %v4603_v40  ;;  %v1363_v57 = vmax.f32 %v1331_v46, 0.0 }
 0x193   :  { %v1284_v25 = vpop.f32.mrf.mxu1  ;;  %2430 = vmatprep.subr.bf16.mxu0 %v4606_v13 }
 0x194   :  { %v1364_v48 = vmax.f32 %v1332_v44, 0.0  ;;  %v1385_v50 = vpack.c.bf16 %v1363_v57, %v1361_v3  ;;  %v1333_v27 = vadd.f32 %v1284_v25, %v4485_v10 }
 0x195   :  { %v1286_v33 = vpop.f32.mrf.mxu1 }
 0x196   :  { %v1386_v62 = vpack.c.bf16 %v1364_v48, %v1362_v42  ;;  %2431 = vmatpush1.bf16.msra.mxu0 %v4610_v11  ;;  %v1334_v26 = vadd.f32 %v1286_v33, %v4491_v60  ;;  %v1365_v57 = vmax.f32 %v1333_v27, 0.0 }
 0x197   :  { %v1288_v37 = vpop.f32.mrf.mxu1  ;;  %2432 = vmatprep.subr.bf16.mxu0 %v4612_v35 }
 0x198   :  { %v1335_v41 = vadd.f32 %v1288_v37, %v4495_v45  ;;  %1669 = vmatprep.mubr.bf16.mxu0 %v1386_v62  ;;  %v1366_v4 = vmax.f32 %v1334_v26, 0.0 }
 0x199   :  { %v1290_v36 = vpop.f32.mrf.mxu1  ;;  %1670 = vmatmul.mubr.bf16.gmra.mxu0 %v1385_v50 }
 0x19a   :  { %v1336_v34 = vadd.f32 %v1290_v36, %v4501_v61  ;;  %2433 = vmatpush2.bf16.msra.mxu0 %v4617_v18  ;;  %v1367_v46 = vmax.f32 %v1335_v41, 0.0 }
 0x19b   :  { %v1294_v32 = vpop.f32.mrf.mxu1  ;;  %2434 = vmatprep.subr.bf16.mxu0 %v4620_v63 }
 0x19c   :  { %v1368_v44 = vmax.f32 %v1336_v34, 0.0  ;;  %v1387_v3 = vpack.c.bf16 %v1367_v46, %v1365_v57  ;;  %v1337_v50 = vadd.f32 %v1294_v32, %v4507_v43  ;;  %v5486_v32 = vld [vmem:[#allocation23_spill] sm:$0xff] }
 0x19d   :  { %v1296_v42 = vpop.f32.mrf.mxu1 }
 0x19e   :  { %v1388_v48 = vpack.c.bf16 %v1368_v44, %v1366_v4  ;;  %2435 = vmatpush2.bf16.msra.mxu0 %v4624_v55  ;;  %v1338_v25 = vadd.f32 %v1296_v42, %v4513_v12  ;;  %v1369_v46 = vmax.f32 %v1337_v50, 0.0  ;;  %v5490_v50 = vld [vmem:[#allocation34_spill] sm:$0xff] }
 0x19f   :  { %v1298_v33 = vpop.f32.mrf.mxu1  ;;  %2436 = vmatprep.subr.bf16.mxu0 %v4626_v6 }
 0x1a0   :  { %v1339_v62 = vadd.f32 %v1298_v33, %v4517_v52  ;;  %1679 = vmatprep.mubr.bf16.mxu0 %v1388_v48  ;;  %v1370_v36 = vmax.f32 %v1338_v25, 0.0  ;;  %v5489_v25 = vld [vmem:[#allocation26_spill] sm:$0xff] }
 0x1a1   :  { %v1300_v37 = vpop.f32.mrf.mxu1  ;;  %1680 = vmatmul.mubr.bf16.gmra.mxu0 %v1387_v3  ;;  %v5487_v3 = vld [vmem:[#allocation25_spill] sm:$0xff] }
 0x1a2   :  { %v1340_v26 = vadd.f32 %v1300_v37, %v4523_v5  ;;  %2437 = vmatpush2.bf16.msra.mxu0 %v4631_v1  ;;  %v1371_v41 = vmax.f32 %v1339_v62, 0.0  ;;  %v5488_v62 = vld [vmem:[#allocation22_spill] sm:$0xff] }
 0x1a3   :  { %v1304_v27 = vpop.f32.mrf.mxu1  ;;  %2438 = vmatprep.subr.bf16.mxu0 %v4633_v0 }
 0x1a4   :  { %v1372_v34 = vmax.f32 %v1340_v26, 0.0  ;;  %v1389_v57 = vpack.c.bf16 %v1371_v41, %v1369_v46  ;;  %v1341_v37 = vadd.f32 %v1304_v27, %v5488_v62  ;;  %v5492_v27 = vld [vmem:[#allocation17_spill] sm:$0xff] }
 0x1a5   :  { %v1306_v4 = vpop.f32.mrf.mxu1 }
 0x1a6   :  { %v1390_v44 = vpack.c.bf16 %v1372_v34, %v1370_v36  ;;  %2439 = vmatpush2.bf16.msra.mxu0 %v4637_v7  ;;  %v1342_v48 = vadd.f32 %v1306_v4, %v5486_v32  ;;  %v5491_v7 = vld [vmem:[#allocation35_spill] sm:$0xff] }
 0x1a7   :  { %v1308_v42 = vpop.f32.mrf.mxu1  ;;  %2440 = vmatprep.subr.bf16.mxu0 %v4639_v22  ;;  %v1373_v22 = vmax.f32 %v1341_v37, 0.0  ;;  %v5496_v37 = vld [vmem:[#allocation38_spill] sm:$0xff] }
 0x1a8   :  { %v1343_v33 = vadd.f32 %v1308_v42, %v5487_v3  ;;  %1689 = vmatprep.mubr.bf16.mxu0 %v1390_v44  ;;  %v1374_v41 = vmax.f32 %v1342_v48, 0.0  ;;  %v5495_v48 = vld [vmem:[#allocation19_spill] sm:$0xff] }
 0x1a9   :  { %v1310_v1 = vpop.f32.mrf.mxu1  ;;  %1690 = vmatmul.mubr.bf16.gmra.mxu0 %v1389_v57 }
 0x1aa   :  { %v1344_v26 = vadd.f32 %v1310_v1, %v5489_v25  ;;  %2441 = vmatpush2.bf16.msra.mxu0 %v5490_v50  ;;  %v1375_v36 = vmax.f32 %v1343_v33, 0.0  ;;  %v5493_v1 = vld [vmem:[#allocation18_spill] sm:$0xff]  ;;  %v5494_v33 = vld [vmem:[#allocation16_spill] sm:$0xff] }
 0x1ab   :  { %v2053_v34 = vpop.f32.mrf.mxu1  ;;  %2442 = vmatprep.subr.bf16.mxu0 %v5491_v7 }
 0x1ac   :  { %v1376_v46 = vmax.f32 %v1344_v26, 0.0  ;;  %v1391_v44 = vpack.c.bf16 %v1375_v36, %v1373_v22  ;;  %v2132_v50 = vadd.f32 %v2053_v34, %v5494_v33  ;;  %v5498_v34 = vld [vmem:[#allocation24_spill] sm:$0xff] }
 0x1ad   :  { %v2055_v0 = vpop.f32.mrf.mxu1 }
 0x1ae   :  { %v1392_v4 = vpack.c.bf16 %v1376_v46, %v1374_v41  ;;  %2443 = vmatpush2.bf16.msra.mxu0 %v4649_v17  ;;  %v2133_v57 = vadd.f32 %v2055_v0, %v5492_v27  ;;  %v5497_v17 = vld [vmem:[#allocation39_spill] sm:$0xff] }
 0x1af   :  { %v2057_v42 = vpop.f32.mrf.mxu1  ;;  %2444 = vmatprep.subr.bf16.mxu0 %v4653_v16  ;;  %v2164_v16 = vmax.f32 %v2132_v50, 0.0  ;;  %v5501_v50 = vld [vmem:[#allocation27_spill] sm:$0xff] }
 0x1b0   :  { %v2134_v25 = vadd.f32 %v2057_v42, %v5493_v1  ;;  %1699 = vmatprep.mubr.bf16.mxu0 %v1392_v4  ;;  %v2165_v22 = vmax.f32 %v2133_v57, 0.0 }
 0x1b1   :  { %1700 = vmatmul.mubr.bf16.gmra.mxu0 %v1391_v44  ;;  %v2059_v7 = vpop.f32.mrf.mxu1  ;;  %v5499_v44 = vld [vmem:[#allocation21_spill] sm:$0xff] }
 0x1b2   :  { %v2135_v26 = vadd.f32 %v2059_v7, %v5495_v48  ;;  %2445 = vmatpush2.bf16.msra.mxu0 %v5496_v37  ;;  %v2166_v41 = vmax.f32 %v2134_v25, 0.0  ;;  %v5500_v25 = vld [vmem:[#allocation20_spill] sm:$0xff] }
 0x1b3   :  { %v2063_v46 = vpop.f32.mrf.mxu1  ;;  %2446 = vmatprep.subr.bf16.mxu0 %v5497_v17 }
 0x1b4   :  { %v2167_v36 = vmax.f32 %v2135_v26, 0.0  ;;  %v2196_v4 = vpack.c.bf16 %v2166_v41, %v2164_v16  ;;  %v2136_v37 = vadd.f32 %v2063_v46, %v5500_v25 }
 0x1b5   :  { %v2065_v3 = vpop.f32.mrf.mxu1 }
 0x1b6   :  { %v2197_v0 = vpack.c.bf16 %v2167_v36, %v2165_v22  ;;  %2447 = vmatpush2.bf16.msra.mxu0 %v4665_v59  ;;  %v2137_v1 = vadd.f32 %v2065_v3, %v5499_v44  ;;  %v5502_v36 = vld [vmem:[#allocation28_spill] sm:$0xff]  ;;  %v5503_v44 = vld [vmem:[#allocation29_spill] sm:$0xff] }
 0x1b7   :  { %v2067_v42 = vpop.f32.mrf.mxu1  ;;  %3235 = vmatprep.subr.bf16.mxu0 %v5498_v34  ;;  %v2168_v34 = vmax.f32 %v2136_v37, 0.0 }
 0x1b8   :  { %v2138_v7 = vadd.f32 %v2067_v42, %v4409_v2  ;;  %2448 = vmatprep.mubr.bf16.mxu0 %v2197_v0  ;;  %v2169_v16 = vmax.f32 %v2137_v1, 0.0 }
 0x1b9   :  { %v2069_v48 = vpop.f32.mrf.mxu1  ;;  %2449 = vmatmul.mubr.bf16.vlgmr.msra.gmra.mxu0 %v2196_v4 }
 0x1ba   :  { %v2139_v57 = vadd.f32 %v2069_v48, %v4413_v29  ;;  %3236 = vmatpush1.bf16.msra.mxu0 %v5501_v50  ;;  %v2170_v26 = vmax.f32 %v2138_v7, 0.0 }
 0x1bb   :  { %v2073_v22 = vpop.f32.mrf.mxu1  ;;  %3237 = vmatprep.subr.bf16.mxu0 %v5502_v36 }
 0x1bc   :  { %v2171_v41 = vmax.f32 %v2139_v57, 0.0  ;;  %v2198_v0 = vpack.c.bf16 %v2170_v26, %v2168_v34  ;;  %v2140_v4 = vadd.f32 %v2073_v22, %v4419_v9  ;;  %v562_v22 = vld [vmem:[%s5408_s6] sm:$0x3] }
 0x1bd   :  { %v2075_v59 = vpop.f32.mrf.mxu1 }
 0x1be   :  { %v2199_v3 = vpack.c.bf16 %v2171_v41, %v2169_v16  ;;  %3238 = vmatpush1.bf16.msra.mxu0 %v5503_v44  ;;  %v2141_v46 = vadd.f32 %v2075_v59, %v4425_v58 }
 0x1bf   :  { %v2077_v42 = vpop.f32.mrf.mxu1  ;;  %3239 = vmatprep.subr.bf16.mxu0 %v4564_v51  ;;  %v2172_v51 = vmax.f32 %v2140_v4, 0.0 }
 0x1c0   :  { %v2142_v48 = vadd.f32 %v2077_v42, %v4429_v30  ;;  %2458 = vmatprep.mubr.bf16.mxu0 %v2199_v3  ;;  %v2173_v44 = vmax.f32 %v2141_v46, 0.0  ;;  %v5504_v3 = vld [vmem:[#allocation14_spill] sm:$0xff] }
 0x1c1   :  { %v2079_v7 = vpop.f32.mrf.mxu1  ;;  %2459 = vmatmul.mubr.bf16.gmra.mxu0 %v2198_v0  ;;  %v4752_v0 = vrot.slane %v562_v22, %v5504_v3 }
 0x1c2   :  { %v2143_v1 = vadd.f32 %v2079_v7, %v4435_v39  ;;  %3240 = vmatpush1.bf16.msra.mxu0 %v4571_v19  ;;  %v2174_v37 = vmax.f32 %v2142_v48, 0.0  ;;  %v5505_v48 = vld [vmem:[#allocation15_spill] sm:$0xff] }
 0x1c3   :  { %v2083_v57 = vpop.f32.mrf.mxu1  ;;  %3241 = vmatprep.subr.bf16.mxu0 %v4574_v20  ;;  %v4761_v4 = vrot.slane %v562_v22, %v5505_v48 }
 0x1c4   :  { %v2175_v50 = vmax.f32 %v2143_v1, 0.0  ;;  %v2200_v36 = vpack.c.bf16 %v2174_v37, %v2172_v51  ;;  %v2144_v20 = vadd.f32 %v2083_v57, %v4441_v49 }
 0x1c5   :  { %v2085_v26 = vpop.f32.mrf.mxu1 }
 0x1c6   :  { %v2201_v59 = vpack.c.bf16 %v2175_v50, %v2173_v44  ;;  %3242 = vmatpush1.bf16.msra.mxu0 %v4580_v21  ;;  %v2145_v19 = vadd.f32 %v2085_v26, %v4447_v8  ;;  %v273_v21 = vld [vmem:[%s5409_s7] sm:$0x3]  ;;  %v2176_v44 = vmax.f32 %v2144_v20, 0.0 }
 0x1c7   :  { %v2087_v16 = vpop.f32.mrf.mxu1  ;;  %3243 = vmatprep.subr.bf16.mxu0 %v4582_v14  ;;  %v4764_v57 = vrot.slane %v273_v21, %v5504_v3 }
 0x1c8   :  { %v2146_v41 = vadd.f32 %v2087_v16, %v4451_v28  ;;  %2468 = vmatprep.mubr.bf16.mxu0 %v2201_v59  ;;  %v2177_v7 = vmax.f32 %v2145_v19, 0.0 }
 0x1c9   :  { %v2089_v34 = vpop.f32.mrf.mxu1  ;;  %2469 = vmatmul.mubr.bf16.gmra.mxu0 %v2200_v36 }
 0x1ca   :  { %v2147_v42 = vadd.f32 %v2089_v34, %v4457_v47  ;;  %3244 = vmatpush1.bf16.msra.mxu0 %v4589_v23  ;;  %v2178_v14 = vmax.f32 %v2146_v41, 0.0  ;;  %v4769_v23 = vrot.slane %v273_v21, %v5505_v48 }
 0x1cb   :  { %v2093_v46 = vpop.f32.mrf.mxu1  ;;  %3245 = vmatprep.subr.bf16.mxu0 %v4592_v24  ;;  %v768_v37 = vpop.f32.mrf.mxu0 }
 0x1cc   :  { %v2179_v1 = vmax.f32 %v2147_v42, 0.0  ;;  %v769_v50 = vadd.f32 %v768_v37, %v4752_v0  ;;  %v2202_v24 = vpack.c.bf16 %v2178_v14, %v2176_v44  ;;  %v2148_v19 = vadd.f32 %v2093_v46, %v4463_v53 }
 0x1cd   :  { %v2095_v51 = vpop.f32.mrf.mxu1  ;;  %v770_v59 = vpop.f32.mrf.mxu0 }
 0x1ce   :  { %v2203_v26 = vpack.c.bf16 %v2179_v1, %v2177_v7  ;;  %3246 = vmatpush1.bf16.msra.mxu0 %v4596_v56  ;;  %v847_v22 = vmax.f32 %v769_v50, 0.0  ;;  %v771_v36 = vadd.f32 %v770_v59, %v4761_v4  ;;  %v2149_v41 = vadd.f32 %v2095_v51, %v4469_v31 }
 0x1cf   :  { %v2097_v16 = vpop.f32.mrf.mxu1  ;;  %3247 = vmatprep.subr.bf16.mxu0 %v4598_v15  ;;  %v772_v34 = vpop.f32.mrf.mxu0  ;;  %v2180_v51 = vmax.f32 %v2148_v19, 0.0 }
 0x1d0   :  { %v2150_v20 = vadd.f32 %v2097_v16, %v4473_v38  ;;  %2478 = vmatprep.mubr.bf16.mxu0 %v2203_v26  ;;  %v890_v56 = vmul.f32 %v4764_v57, %v847_v22  ;;  %v848_v42 = vmax.f32 %v771_v36, 0.0  ;;  %v773_v21 = vadd.f32 %v772_v34, %v4752_v0 }
 0x1d1   :  { %v2099_v14 = vpop.f32.mrf.mxu1  ;;  %2479 = vmatmul.mubr.bf16.gmra.mxu0 %v2202_v24  ;;  %v774_v1 = vpop.f32.mrf.mxu0  ;;  %v2181_v26 = vmax.f32 %v2149_v41, 0.0 }
 0x1d2   :  { %v2151_v7 = vadd.f32 %v2099_v14, %v4479_v54  ;;  %3248 = vmatpush1.bf16.msra.mxu0 %v4603_v40  ;;  %v891_v15 = vmul.f32 %v4769_v23, %v848_v42  ;;  %v2182_v46 = vmax.f32 %v2150_v20, 0.0  ;;  %v849_v37 = vmax.f32 %v773_v21, 0.0 }
 0x1d3   :  { %v775_v44 = vadd.f32 %v774_v1, %v4761_v4  ;;  %v2103_v50 = vpop.f32.mrf.mxu1  ;;  %3249 = vmatprep.subr.bf16.mxu0 %v4606_v13  ;;  %v778_v22 = vpop.f32.mrf.mxu0 }
 0x1d4   :  { %v2183_v59 = vmax.f32 %v2151_v7, 0.0  ;;  %v892_v24 = vmul.f32 %v4764_v57, %v849_v37  ;;  %v779_v16 = vadd.f32 %v778_v22, %v4752_v0  ;;  %v922_v40 = vadd.f32 %v891_v15, %v890_v56 }
 0x1d5   :  { %v850_v36 = vmax.f32 %v775_v44, 0.0  ;;  %v2105_v34 = vpop.f32.mrf.mxu1  ;;  %v780_v42 = vpop.f32.mrf.mxu0  ;;  %v2204_v20 = vpack.c.bf16 %v2182_v46, %v2180_v51  ;;  %v2152_v41 = vadd.f32 %v2103_v50, %v4485_v10 }
 0x1d6   :  { %v2205_v14 = vpack.c.bf16 %v2183_v59, %v2181_v26  ;;  %3250 = vmatpush1.bf16.msra.mxu0 %v4610_v11  ;;  %v851_v1 = vmax.f32 %v779_v16, 0.0  ;;  %v781_v13 = vadd.f32 %v780_v42, %v4761_v4  ;;  %923 = vadd.xlane.f32.xlu0 %v922_v40  ;;  %v2153_v7 = vadd.f32 %v2105_v34, %v4491_v60 }
 0x1d7   :  { %v893_v21 = vmul.f32 %v4769_v23, %v850_v36  ;;  %v2107_v19 = vpop.f32.mrf.mxu1  ;;  %3251 = vmatprep.subr.bf16.mxu0 %v4612_v35  ;;  %v782_v15 = vpop.f32.mrf.mxu0  ;;  %v2184_v34 = vmax.f32 %v2152_v41, 0.0 }
 0x1d8   :  { %v2154_v56 = vadd.f32 %v2107_v19, %v4495_v45  ;;  %2488 = vmatprep.mubr.bf16.mxu0 %v2205_v14  ;;  %v894_v11 = vmul.f32 %v4764_v57, %v851_v1  ;;  %v852_v46 = vmax.f32 %v781_v13, 0.0  ;;  %v783_v37 = vadd.f32 %v782_v15, %v4752_v0 }
 0x1d9   :  { %v2109_v44 = vpop.f32.mrf.mxu1  ;;  %2489 = vmatmul.mubr.bf16.gmra.mxu0 %v2204_v20  ;;  %v925_v51 = vadd.f32 %v893_v21, %v892_v24  ;;  %v784_v35 = vpop.f32.mrf.mxu0  ;;  %v2185_v40 = vmax.f32 %v2153_v7, 0.0 }
 0x1da   :  { %v2155_v26 = vadd.f32 %v2109_v44, %v4501_v61  ;;  %3252 = vmatpush2.bf16.msra.mxu0 %v4617_v18  ;;  %v895_v50 = vmul.f32 %v4769_v23, %v852_v46  ;;  %v2186_v59 = vmax.f32 %v2154_v56, 0.0  ;;  %v853_v22 = vmax.f32 %v783_v37, 0.0 }
 0x1db   :  { %v785_v36 = vadd.f32 %v784_v35, %v4761_v4  ;;  %v2113_v16 = vpop.f32.mrf.mxu1  ;;  %3253 = vmatprep.subr.bf16.mxu0 %v4620_v63  ;;  %926 = vadd.xlane.f32.xlu1 %v925_v51  ;;  %v788_v42 = vpop.f32.mrf.mxu0 }
 0x1dc   :  { %v2187_v14 = vmax.f32 %v2155_v26, 0.0  ;;  %v896_v24 = vmul.f32 %v4764_v57, %v853_v22  ;;  %v789_v21 = vadd.f32 %v788_v42, %v4752_v0  ;;  %v928_v1 = vadd.f32 %v895_v50, %v894_v11  ;;  %v5506_v22 = vld [vmem:[#allocation30_spill] sm:$0xff]  ;;  %v5507_v42 = vld [vmem:[#allocation31_spill] sm:$0xff] }
 0x1dd   :  { %v854_v20 = vmax.f32 %v785_v36, 0.0  ;;  %v2115_v18 = vpop.f32.mrf.mxu1  ;;  %v790_v19 = vpop.f32.mrf.mxu0  ;;  %v2206_v56 = vpack.c.bf16 %v2186_v59, %v2184_v34  ;;  %v2156_v46 = vadd.f32 %v2113_v16, %v4507_v43 }
 0x1de   :  { %v2207_v13 = vpack.c.bf16 %v2187_v14, %v2185_v40  ;;  %3254 = vmatpush2.bf16.msra.mxu0 %v4624_v55  ;;  %v855_v63 = vmax.f32 %v789_v21, 0.0  ;;  %v791_v41 = vadd.f32 %v790_v19, %v4761_v4  ;;  %929 = vadd.xlane.f32.xlu0 %v928_v1  ;;  %v2157_v37 = vadd.f32 %v2115_v18, %v4513_v12 }
 0x1df   :  { %v897_v15 = vmul.f32 %v4769_v23, %v854_v20  ;;  %v2117_v7 = vpop.f32.mrf.mxu1  ;;  %3255 = vmatprep.subr.bf16.mxu0 %v4626_v6  ;;  %v792_v44 = vpop.f32.mrf.mxu0  ;;  %v2188_v20 = vmax.f32 %v2156_v46, 0.0 }
 0x1e0   :  { %v2158_v11 = vadd.f32 %v2117_v7, %v4517_v52  ;;  %2498 = vmatprep.mubr.bf16.mxu0 %v2207_v13  ;;  %v898_v55 = vmul.f32 %v4764_v57, %v855_v63  ;;  %v856_v51 = vmax.f32 %v791_v41, 0.0  ;;  %v793_v26 = vadd.f32 %v792_v44, %v4752_v0  ;;  %v5508_v7 = vld [vmem:[#allocation32_spill] sm:$0xff] }
 0x1e1   :  { %v2119_v35 = vpop.f32.mrf.mxu1  ;;  %2499 = vmatmul.mubr.bf16.gmra.mxu0 %v2206_v56  ;;  %v931_v50 = vadd.f32 %v897_v15, %v896_v24  ;;  %v794_v6 = vpop.f32.mrf.mxu0  ;;  %v2189_v21 = vmax.f32 %v2157_v37, 0.0 }
 0x1e2   :  { %v2159_v59 = vadd.f32 %v2119_v35, %v4523_v5  ;;  %3256 = vmatpush2.bf16.msra.mxu0 %v5506_v22  ;;  %v899_v36 = vmul.f32 %v4769_v23, %v856_v51  ;;  %v2190_v16 = vmax.f32 %v2158_v11, 0.0  ;;  %v857_v34 = vmax.f32 %v793_v26, 0.0  ;;  %v5509_v26 = vld [vmem:[#allocation33_spill] sm:$0xff] }
 0x1e3   :  { %v795_v40 = vadd.f32 %v794_v6, %v4761_v4  ;;  %v2123_v14 = vpop.f32.mrf.mxu1  ;;  %3257 = vmatprep.subr.bf16.mxu0 %v5507_v42  ;;  %932 = vadd.xlane.f32.xlu0 %v931_v50  ;;  %v798_v1 = vpop.f32.mrf.mxu0  ;;  %v5511_v42 = vld [vmem:[#allocation26_spill] sm:$0xff] }
 0x1e4   :  { %v2191_v18 = vmax.f32 %v2159_v59, 0.0  ;;  %v900_v24 = vmul.f32 %v4764_v57, %v857_v34  ;;  %v799_v19 = vadd.f32 %v798_v1, %v4752_v0  ;;  %v934_v15 = vadd.f32 %v899_v36, %v898_v55  ;;  %v5510_v59 = vld [vmem:[#allocation25_spill] sm:$0xff] }
 0x1e5   :  { %v858_v13 = vmax.f32 %v795_v40, 0.0  ;;  %v2125_v56 = vpop.f32.mrf.mxu1  ;;  %v800_v41 = vpop.f32.mrf.mxu0  ;;  %v2208_v11 = vpack.c.bf16 %v2190_v16, %v2188_v20  ;;  %v2160_v35 = vadd.f32 %v2123_v14, %v5488_v62 }
 0x1e6   :  { %v2209_v63 = vpack.c.bf16 %v2191_v18, %v2189_v21  ;;  %3258 = vmatpush2.bf16.msra.mxu0 %v5508_v7  ;;  %v859_v51 = vmax.f32 %v799_v19, 0.0  ;;  %v801_v46 = vadd.f32 %v800_v41, %v4761_v4  ;;  %935 = vadd.xlane.f32.xlu1 %v934_v15  ;;  %v2161_v50 = vadd.f32 %v2125_v56, %v5486_v32  ;;  %v5512_v18 = vld [vmem:[#allocation34_spill] sm:$0xff]  ;;  %v5513_v15 = vld [vmem:[#allocation35_spill] sm:$0xff] }
 0x1e7   :  { %v901_v44 = vmul.f32 %v4769_v23, %v858_v13  ;;  %v2127_v37 = vpop.f32.mrf.mxu1  ;;  %3259 = vmatprep.subr.bf16.mxu0 %v5509_v26  ;;  %v802_v6 = vpop.f32.mrf.mxu0 }
 0x1e8   :  { %v2162_v55 = vadd.f32 %v2127_v37, %v5510_v59  ;;  %2508 = vmatprep.mubr.bf16.mxu0 %v2209_v63  ;;  %v902_v22 = vmul.f32 %v4764_v57, %v859_v51  ;;  %v860_v36 = vmax.f32 %v801_v46, 0.0  ;;  %v803_v16 = vadd.f32 %v802_v6, %v4752_v0  ;;  %v5514_v6 = vld [vmem:[#allocation36_spill] sm:$0xff] }
 0x1e9   :  { %v2129_v34 = vpop.f32.mrf.mxu1  ;;  %2509 = vmatmul.mubr.bf16.gmra.mxu0 %v2208_v11  ;;  %v937_v40 = vadd.f32 %v901_v44, %v900_v24  ;;  %v804_v21 = vpop.f32.mrf.mxu0  ;;  %v2192_v63 = vmax.f32 %v2160_v35, 0.0  ;;  %v2193_v41 = vmax.f32 %v2161_v50, 0.0 }
 0x1ea   :  { %v2163_v20 = vadd.f32 %v2129_v34, %v5511_v42  ;;  %3260 = vmatpush2.bf16.msra.mxu0 %v5512_v18  ;;  %v903_v14 = vmul.f32 %v4769_v23, %v860_v36  ;;  %v2194_v1 = vmax.f32 %v2162_v55, 0.0  ;;  %v861_v13 = vmax.f32 %v803_v16, 0.0  ;;  %v5516_v18 = vld [vmem:[#allocation18_spill] sm:$0xff] }
 0x1eb   :  { %v805_v19 = vadd.f32 %v804_v21, %v4761_v4  ;;  %v2872_v56 = vpop.f32.mrf.mxu1  ;;  %3261 = vmatprep.subr.bf16.mxu0 %v5513_v15  ;;  %938 = vadd.xlane.f32.xlu0 %v937_v40  ;;  %v808_v11 = vpop.f32.mrf.mxu0  ;;  %v5515_v40 = vld [vmem:[#allocation37_spill] sm:$0xff] }
 0x1ec   :  { %v2195_v7 = vmax.f32 %v2163_v20, 0.0  ;;  %v904_v24 = vmul.f32 %v4764_v57, %v861_v13  ;;  %v809_v51 = vadd.f32 %v808_v11, %v4752_v0  ;;  %v940_v37 = vadd.f32 %v903_v14, %v902_v22 }
 0x1ed   :  { %v862_v44 = vmax.f32 %v805_v19, 0.0  ;;  %v2874_v46 = vpop.f32.mrf.mxu1  ;;  %v810_v55 = vpop.f32.mrf.mxu0  ;;  %v2210_v36 = vpack.c.bf16 %v2194_v1, %v2192_v63  ;;  %v2951_v20 = vadd.f32 %v2872_v56, %v5494_v33 }
 0x1ee   :  { %v2211_v26 = vpack.c.bf16 %v2195_v7, %v2193_v41  ;;  %3262 = vmatpush2.bf16.msra.mxu0 %v5514_v6  ;;  %v863_v34 = vmax.f32 %v809_v51, 0.0  ;;  %v811_v35 = vadd.f32 %v810_v55, %v4761_v4  ;;  %941 = vadd.xlane.f32.xlu1 %v940_v37  ;;  %v2952_v21 = vadd.f32 %v2874_v46, %v5492_v27  ;;  %v5517_v41 = vld [vmem:[#allocation19_spill] sm:$0xff] }
 0x1ef   :  { %v905_v16 = vmul.f32 %v4769_v23, %v862_v44  ;;  %v2876_v50 = vpop.f32.mrf.mxu1  ;;  %3263 = vmatprep.subr.bf16.mxu0 %v5515_v40  ;;  %v812_v14 = vpop.f32.mrf.mxu0  ;;  %v5518_v44 = vld [vmem:[#allocation38_spill] sm:$0xff]  ;;  %v2983_v37 = vmax.f32 %v2951_v20, 0.0 }
 0x1f0   :  { %v2953_v22 = vadd.f32 %v2876_v50, %v5516_v18  ;;  %2518 = vmatprep.mubr.bf16.mxu0 %v2211_v26  ;;  %v906_v13 = vmul.f32 %v4764_v57, %v863_v34  ;;  %v864_v1 = vmax.f32 %v811_v35, 0.0  ;;  %v813_v19 = vadd.f32 %v812_v14, %v4752_v0  ;;  %v5519_v18 = vld [vmem:[#allocation40_spill] sm:$0xff] }
 0x1f1   :  { %2519 = vmatmul.mubr.bf16.gmra.mxu0 %v2210_v36  ;;  %v2878_v15 = vpop.f32.mrf.mxu1  ;;  %v943_v63 = vadd.f32 %v905_v16, %v904_v24  ;;  %v814_v11 = vpop.f32.mrf.mxu0  ;;  %v2984_v26 = vmax.f32 %v2952_v21, 0.0 }
 0x1f2   :  { %v2954_v7 = vadd.f32 %v2878_v15, %v5517_v41  ;;  %3264 = vmatpush2.bf16.msra.mxu0 %v5518_v44  ;;  %v907_v33 = vmul.f32 %v4769_v23, %v864_v1  ;;  %v2985_v27 = vmax.f32 %v2953_v22, 0.0  ;;  %v865_v56 = vmax.f32 %v813_v19, 0.0  ;;  %v5520_v19 = vld [vmem:[#allocation21_spill] sm:$0xff] }
 0x1f3   :  { %v815_v51 = vadd.f32 %v814_v11, %v4761_v4  ;;  %v2882_v46 = vpop.f32.mrf.mxu1  ;;  %3265 = vmatprep.subr.bf16.mxu0 %v5497_v17  ;;  %944 = vadd.xlane.f32.xlu0 %v943_v63  ;;  %v818_v6 = vpop.f32.mrf.mxu0 }
 0x1f4   :  { %v2986_v55 = vmax.f32 %v2954_v7, 0.0  ;;  %v908_v24 = vmul.f32 %v4764_v57, %v865_v56  ;;  %v819_v16 = vadd.f32 %v818_v6, %v4752_v0  ;;  %v946_v35 = vadd.f32 %v907_v33, %v906_v13 }
 0x1f5   :  { %v866_v36 = vmax.f32 %v815_v51, 0.0  ;;  %v2884_v34 = vpop.f32.mrf.mxu1  ;;  %v820_v40 = vpop.f32.mrf.mxu0  ;;  %v3015_v22 = vpack.c.bf16 %v2985_v27, %v2983_v37  ;;  %v2955_v1 = vadd.f32 %v2882_v46, %v5500_v25 }
 0x1f6   :  { %v3016_v50 = vpack.c.bf16 %v2986_v55, %v2984_v26  ;;  %3266 = vmatpush2.bf16.msra.mxu0 %v5519_v18  ;;  %v867_v17 = vmax.f32 %v819_v16, 0.0  ;;  %v821_v20 = vadd.f32 %v820_v40, %v4761_v4  ;;  %947 = vadd.xlane.f32.xlu1 %v946_v35  ;;  %v2956_v15 = vadd.f32 %v2884_v34, %v5520_v19 }
 0x1f7   :  { %v909_v14 = vmul.f32 %v4769_v23, %v866_v36  ;;  %v2886_v21 = vpop.f32.mrf.mxu1  ;;  %v822_v41 = vpop.f32.mrf.mxu0  ;;  %v2987_v26 = vmax.f32 %v2955_v1, 0.0 }
 0x1f8   :  { %v2957_v63 = vadd.f32 %v2886_v21, %v4409_v2  ;;  %3267 = vmatprep.mubr.bf16.mxu0 %v3016_v50  ;;  %v910_v13 = vmul.f32 %v4764_v57, %v867_v17  ;;  %v868_v7 = vmax.f32 %v821_v20, 0.0  ;;  %v823_v11 = vadd.f32 %v822_v41, %v4752_v0 }
 0x1f9   :  { %v2888_v44 = vpop.f32.mrf.mxu1  ;;  %3268 = vmatmul.mubr.bf16.vlgmr.msra.gmra.mxu0 %v3015_v22  ;;  %v949_v33 = vadd.f32 %v909_v14, %v908_v24  ;;  %v824_v56 = vpop.f32.mrf.mxu0  ;;  %v2988_v55 = vmax.f32 %v2956_v15, 0.0 }
 0x1fa   :  { %v2958_v27 = vadd.f32 %v2888_v44, %v4413_v29  ;;  %v911_v51 = vmul.f32 %v4769_v23, %v868_v7  ;;  %v2989_v25 = vmax.f32 %v2957_v63, 0.0  ;;  %v869_v46 = vmax.f32 %v823_v11, 0.0 }
 0x1fb   :  { %v825_v37 = vadd.f32 %v824_v56, %v4761_v4  ;;  %v2892_v2 = vpop.f32.mrf.mxu1  ;;  %950 = vadd.xlane.f32.xlu0 %v949_v33  ;;  %v828_v36 = vpop.f32.mrf.mxu0 }
 0x1fc   :  { %v2990_v6 = vmax.f32 %v2958_v27, 0.0  ;;  %v912_v16 = vmul.f32 %v4764_v57, %v869_v46  ;;  %v829_v24 = vadd.f32 %v828_v36, %v4752_v0  ;;  %v952_v29 = vadd.f32 %v911_v51, %v910_v13 }
 0x1fd   :  { %v870_v34 = vmax.f32 %v825_v37, 0.0  ;;  %v2894_v35 = vpop.f32.mrf.mxu1  ;;  %v830_v40 = vpop.f32.mrf.mxu0  ;;  %v3017_v18 = vpack.c.bf16 %v2989_v25, %v2987_v26  ;;  %v2959_v21 = vadd.f32 %v2892_v2, %v4419_v9 }
 0x1fe   :  { %v3018_v50 = vpack.c.bf16 %v2990_v6, %v2988_v55  ;;  %v871_v14 = vmax.f32 %v829_v24, 0.0  ;;  %v831_v17 = vadd.f32 %v830_v40, %v4761_v4  ;;  %953 = vadd.xlane.f32.xlu1 %v952_v29  ;;  %v2960_v1 = vadd.f32 %v2894_v35, %v4425_v58 }
 0x1ff   :  { %v913_v22 = vmul.f32 %v4769_v23, %v870_v34  ;;  %v2896_v20 = vpop.f32.mrf.mxu1  ;;  %v832_v15 = vpop.f32.mrf.mxu0  ;;  %v2991_v51 = vmax.f32 %v2959_v21, 0.0 }
 0x200   :  { %v2961_v19 = vadd.f32 %v2896_v20, %v4429_v30  ;;  %3277 = vmatprep.mubr.bf16.mxu0 %v3018_v50  ;;  %v914_v63 = vmul.f32 %v4764_v57, %v871_v14  ;;  %v872_v41 = vmax.f32 %v831_v17, 0.0  ;;  %v833_v13 = vadd.f32 %v832_v15, %v4752_v0 }
 0x201   :  { %v2898_v7 = vpop.f32.mrf.mxu1  ;;  %3278 = vmatmul.mubr.bf16.gmra.mxu0 %v3017_v18  ;;  %v955_v11 = vadd.f32 %v913_v22, %v912_v16  ;;  %v834_v33 = vpop.f32.mrf.mxu0  ;;  %v2992_v25 = vmax.f32 %v2960_v1, 0.0 }
 0x202   :  { %v2962_v44 = vadd.f32 %v2898_v7, %v4435_v39  ;;  %v915_v27 = vmul.f32 %v4769_v23, %v872_v41  ;;  %v2993_v9 = vmax.f32 %v2961_v19, 0.0  ;;  %v873_v56 = vmax.f32 %v833_v13, 0.0 }
 0x203   :  { %v835_v58 = vadd.f32 %v834_v33, %v4761_v4  ;;  %v2902_v30 = vpop.f32.mrf.mxu1  ;;  %956 = vadd.xlane.f32.xlu0 %v955_v11  ;;  %v838_v37 = vpop.f32.mrf.mxu0 }
 0x204   :  { %v2994_v46 = vmax.f32 %v2962_v44, 0.0  ;;  %v916_v2 = vmul.f32 %v4764_v57, %v873_v56  ;;  %v839_v55 = vadd.f32 %v838_v37, %v4752_v0  ;;  %v958_v39 = vadd.f32 %v915_v27, %v914_v63 }
 0x205   :  { %v874_v26 = vmax.f32 %v835_v58, 0.0  ;;  %v2904_v6 = vpop.f32.mrf.mxu1  ;;  %v840_v16 = vpop.f32.mrf.mxu0  ;;  %v3019_v34 = vpack.c.bf16 %v2993_v9, %v2991_v51  ;;  %v2963_v40 = vadd.f32 %v2902_v30, %v4441_v49 }
 0x206   :  { %v3020_v36 = vpack.c.bf16 %v2994_v46, %v2992_v25  ;;  %v875_v35 = vmax.f32 %v839_v55, 0.0  ;;  %v841_v29 = vadd.f32 %v840_v16, %v4761_v4  ;;  %959 = vadd.xlane.f32.xlu1 %v958_v39  ;;  %v2964_v18 = vadd.f32 %v2904_v6, %v4447_v8 }
 0x207   :  { %v917_v24 = vmul.f32 %v4769_v23, %v874_v26  ;;  %v2906_v50 = vpop.f32.mrf.mxu1  ;;  %v842_v14 = vpop.f32.mrf.mxu0  ;;  %v2995_v44 = vmax.f32 %v2963_v40, 0.0 }
 0x208   :  { %v2965_v22 = vadd.f32 %v2906_v50, %v4451_v28  ;;  %3287 = vmatprep.mubr.bf16.mxu0 %v3020_v36  ;;  %v918_v17 = vmul.f32 %v4764_v57, %v875_v35  ;;  %v876_v20 = vmax.f32 %v841_v29, 0.0  ;;  %v843_v21 = vadd.f32 %v842_v14, %v4752_v0 }
 0x209   :  { %v2908_v1 = vpop.f32.mrf.mxu1  ;;  %3288 = vmatmul.mubr.bf16.gmra.mxu0 %v3019_v34  ;;  %v961_v19 = vadd.f32 %v917_v24, %v916_v2  ;;  %v844_v63 = vpop.f32.mrf.mxu0  ;;  %v2996_v7 = vmax.f32 %v2964_v18, 0.0 }
 0x20a   :  { %v2966_v15 = vadd.f32 %v2908_v1, %v4457_v47  ;;  %v919_v41 = vmul.f32 %v4769_v23, %v876_v20  ;;  %v2997_v49 = vmax.f32 %v2965_v22, 0.0  ;;  %v877_v13 = vmax.f32 %v843_v21, 0.0 }
 0x20b   :  { %v845_v8 = vadd.f32 %v844_v63, %v4761_v4  ;;  %v2912_v28 = vpop.f32.mrf.mxu1  ;;  %962 = vadd.xlane.f32.xlu0 %v961_v19 }
 0x20c   :  { %v2998_v11 = vmax.f32 %v2966_v15, 0.0  ;;  %v920_v33 = vmul.f32 %v4764_v57, %v877_v13  ;;  %v964_v9 = vadd.f32 %v919_v41, %v918_v17  ;;  %v3021_v58 = vpack.c.bf16 %v2997_v49, %v2995_v44 }
 0x20d   :  { %v878_v0 = vmax.f32 %v845_v8, 0.0  ;;  %v2914_v27 = vpop.f32.mrf.mxu1  ;;  %v2967_v25 = vadd.f32 %v2912_v28, %v4463_v53 }
 0x20e   :  { %v3022_v56 = vpack.c.bf16 %v2998_v11, %v2996_v7  ;;  %965 = vadd.xlane.f32.xlu1 %v964_v9  ;;  %v2968_v51 = vadd.f32 %v2914_v27, %v4469_v31 }
 0x20f   :  { %v921_v47 = vmul.f32 %v4769_v23, %v878_v0  ;;  %v2916_v30 = vpop.f32.mrf.mxu1  ;;  %v2999_v36 = vmax.f32 %v2967_v25, 0.0 }
 0x210   :  { %v2969_v4 = vadd.f32 %v2916_v30, %v4473_v38  ;;  %3297 = vmatprep.mubr.bf16.mxu0 %v3022_v56  ;;  %v3000_v6 = vmax.f32 %v2968_v51, 0.0 }
 0x211   :  { %v2918_v46 = vpop.f32.mrf.mxu1  ;;  %3298 = vmatmul.mubr.bf16.gmra.mxu0 %v3021_v58  ;;  %v967_v37 = vadd.f32 %v921_v47, %v920_v33 }
 0x212   :  { %v2970_v2 = vadd.f32 %v2918_v46, %v4479_v54  ;;  %v3001_v26 = vmax.f32 %v2969_v4, 0.0 }
 0x213   :  { %v2922_v55 = vpop.f32.mrf.mxu1  ;;  %968 = vadd.xlane.f32.xlu0 %v967_v37 }
 0x214   :  { %v3002_v39 = vmax.f32 %v2970_v2, 0.0  ;;  %v3023_v24 = vpack.c.bf16 %v3001_v26, %v2999_v36  ;;  %v2971_v53 = vadd.f32 %v2922_v55, %v4485_v10 }
 0x215   :  { %v2924_v16 = vpop.f32.mrf.mxu1 }
 0x216   :  { %v3024_v34 = vpack.c.bf16 %v3002_v39, %v3000_v6  ;;  %v2972_v38 = vadd.f32 %v2924_v16, %v4491_v60  ;;  %v3003_v14 = vmax.f32 %v2971_v53, 0.0 }
 0x217   :  { %v2926_v31 = vpop.f32.mrf.mxu1 }
 0x218   :  { %v2973_v35 = vadd.f32 %v2926_v31, %v4495_v45  ;;  %3307 = vmatprep.mubr.bf16.mxu1 %v3024_v34  ;;  %v3004_v18 = vmax.f32 %v2972_v38, 0.0 }
 0x219   :  { %v2928_v29 = vpop.f32.mrf.mxu1  ;;  %3308 = vmatmul.mubr.bf16.vlgmr.msra.gmra.mxu1 %v3023_v24 }
 0x21a   :  { %v2974_v54 = vadd.f32 %v2928_v29, %v4501_v61  ;;  %v3005_v50 = vmax.f32 %v2973_v35, 0.0 }
 0x21b   :  { %v2932_v40 = vpop.f32.mrf.mxu1 }
 0x21c   :  { %v3006_v22 = vmax.f32 %v2974_v54, 0.0  ;;  %v3025_v21 = vpack.c.bf16 %v3005_v50, %v3003_v14  ;;  %v2975_v10 = vadd.f32 %v2932_v40, %v4507_v43 }
 0x21d   :  { %v2934_v17 = vpop.f32.mrf.mxu1 }
 0x21e   :  { %v3026_v20 = vpack.c.bf16 %v3006_v22, %v3004_v18  ;;  %v2976_v60 = vadd.f32 %v2934_v17, %v4513_v12  ;;  %v3007_v13 = vmax.f32 %v2975_v10, 0.0 }
 0x21f   :  { %v2936_v1 = vpop.f32.mrf.mxu1 }
 0x220   :  { %v2977_v45 = vadd.f32 %v2936_v1, %v4517_v52  ;;  %3317 = vmatprep.mubr.bf16.mxu1 %v3026_v20  ;;  %v3008_v41 = vmax.f32 %v2976_v60, 0.0 }
 0x221   :  { %v2938_v19 = vpop.f32.mrf.mxu1  ;;  %3318 = vmatmul.mubr.bf16.gmra.mxu1 %v3025_v21 }
 0x222   :  { %v2978_v61 = vadd.f32 %v2938_v19, %v4523_v5  ;;  %v3009_v15 = vmax.f32 %v2977_v45, 0.0 }
 0x223   :  { %v2942_v63 = vpop.f32.mrf.mxu1 }
 0x224   :  { %v3010_v49 = vmax.f32 %v2978_v61, 0.0  ;;  %v3027_v7 = vpack.c.bf16 %v3009_v15, %v3007_v13  ;;  %v2979_v43 = vadd.f32 %v2942_v63, %v5488_v62 }
 0x225   :  { %v2944_v8 = vpop.f32.mrf.mxu1 }
 0x226   :  { %v3028_v28 = vpack.c.bf16 %v3010_v49, %v3008_v41  ;;  %v2980_v12 = vadd.f32 %v2944_v8, %v5486_v32  ;;  %v3011_v9 = vmax.f32 %v2979_v43, 0.0  ;;  %v1425_v32 = vld [vmem:[%s5408_s6] sm:$0x3] }
 0x227   :  { %v2946_v11 = vpop.f32.mrf.mxu1  ;;  %v4909_v62 = vrot.slane %v1425_v32, %v5505_v48 }
 0x228   :  { %v2981_v52 = vadd.f32 %v2946_v11, %v5510_v59  ;;  %3327 = vmatprep.mubr.bf16.mxu1 %v3028_v28  ;;  %v3012_v0 = vmax.f32 %v2980_v12, 0.0  ;;  %v4906_v59 = vrot.slane %v1425_v32, %v5504_v3 }
 0x229   :  { %v2948_v44 = vpop.f32.mrf.mxu1  ;;  %3328 = vmatmul.mubr.bf16.gmra.mxu1 %v3027_v7 }
 0x22a   :  { %v2982_v5 = vadd.f32 %v2948_v44, %v5511_v42  ;;  %v3013_v33 = vmax.f32 %v2981_v52, 0.0 }
 0x22c   :  { %v3014_v27 = vmax.f32 %v2982_v5, 0.0  ;;  %v3029_v58 = vpack.c.bf16 %v3013_v33, %v3011_v9 }
 0x22e   :  { %v3030_v56 = vpack.c.bf16 %v3014_v27, %v3012_v0 }
 0x230   :  { %3337 = vmatprep.mubr.bf16.mxu1 %v3030_v56 }
 0x231   :  { %3338 = vmatmul.mubr.bf16.gmra.mxu1 %v3029_v58 }
 0x239   :  { %v1631_v47 = vpop.f32.mrf.mxu0 }
 0x23a   :  { %v1632_v42 = vadd.f32 %v1631_v47, %v4906_v59 }
 0x23b   :  { %v1633_v30 = vpop.f32.mrf.mxu0 }
 0x23c   :  { %v1710_v51 = vmax.f32 %v1632_v42, 0.0  ;;  %v1634_v4 = vadd.f32 %v1633_v30, %v4909_v62 }
 0x23d   :  { %v1635_v25 = vpop.f32.mrf.mxu0 }
 0x23e   :  { %v1711_v46 = vmax.f32 %v1634_v4, 0.0  ;;  %v1636_v37 = vadd.f32 %v1635_v25, %v4906_v59  ;;  %v1742_v26 = vmul.f32 %v1710_v51, %v4764_v57 }
 0x23f   :  { %v1637_v2 = vpop.f32.mrf.mxu0 }
 0x240   :  { %v1743_v55 = vmul.f32 %v1711_v46, %v4769_v23  ;;  %v1712_v6 = vmax.f32 %v1636_v37, 0.0  ;;  %v1638_v39 = vadd.f32 %v1637_v2, %v4909_v62 }
 0x241   :  { %v1641_v36 = vpop.f32.mrf.mxu0 }
 0x242   :  { %v1713_v16 = vmax.f32 %v1638_v39, 0.0  ;;  %v1642_v34 = vadd.f32 %v1641_v36, %v4906_v59  ;;  %v1774_v24 = vadd.f32 %v1743_v55, %v1742_v26  ;;  %v1744_v38 = vmul.f32 %v1712_v6, %v4764_v57 }
 0x243   :  { %v1643_v31 = vpop.f32.mrf.mxu0 }
 0x244   :  { %v1745_v35 = vmul.f32 %v1713_v16, %v4769_v23  ;;  %v1714_v53 = vmax.f32 %v1642_v34, 0.0  ;;  %v1644_v29 = vadd.f32 %v1643_v31, %v4909_v62  ;;  %1775 = vadd.xlane.f32.xlu1 %v1774_v24 }
 0x245   :  { %v1645_v54 = vpop.f32.mrf.mxu0 }
 0x246   :  { %v1715_v50 = vmax.f32 %v1644_v29, 0.0  ;;  %v1646_v40 = vadd.f32 %v1645_v54, %v4906_v59  ;;  %v1777_v18 = vadd.f32 %v1745_v35, %v1744_v38  ;;  %v1746_v14 = vmul.f32 %v1714_v53, %v4764_v57 }
 0x247   :  { %v1647_v22 = vpop.f32.mrf.mxu0 }
 0x248   :  { %v1747_v17 = vmul.f32 %v1715_v50, %v4769_v23  ;;  %v1716_v20 = vmax.f32 %v1646_v40, 0.0  ;;  %v1648_v21 = vadd.f32 %v1647_v22, %v4909_v62  ;;  %1778 = vadd.xlane.f32.xlu0 %v1777_v18 }
 0x249   :  { %v1651_v1 = vpop.f32.mrf.mxu0 }
 0x24a   :  { %v1717_v60 = vmax.f32 %v1648_v21, 0.0  ;;  %v1652_v45 = vadd.f32 %v1651_v1, %v4906_v59  ;;  %v1780_v10 = vadd.f32 %v1747_v17, %v1746_v14  ;;  %v1748_v61 = vmul.f32 %v1716_v20, %v4764_v57 }
 0x24b   :  { %v1653_v19 = vpop.f32.mrf.mxu0 }
 0x24c   :  { %v1749_v15 = vmul.f32 %v1717_v60, %v4769_v23  ;;  %v1718_v63 = vmax.f32 %v1652_v45, 0.0  ;;  %v1654_v41 = vadd.f32 %v1653_v19, %v4909_v62  ;;  %1781 = vadd.xlane.f32.xlu1 %v1780_v10  ;;  %v5521_v60 = vlaneseq }
 0x24d   :  { %v1655_v49 = vpop.f32.mrf.mxu0 }
 0x24e   :  { %v1719_v13 = vmax.f32 %v1654_v41, 0.0  ;;  %v1656_v8 = vadd.f32 %v1655_v49, %v4906_v59  ;;  %v1783_v28 = vadd.f32 %v1749_v15, %v1748_v61  ;;  %v1750_v11 = vmul.f32 %v1718_v63, %v4764_v57 }
 0x24f   :  { %v1657_v7 = vpop.f32.mrf.mxu0  ;;  %v4951_v45 = vand.u32 127, %v5521_v60 }
 0x250   :  { %v1751_v12 = vmul.f32 %v1719_v13, %v4769_v23  ;;  %v1720_v52 = vmax.f32 %v1656_v8, 0.0  ;;  %v1658_v43 = vadd.f32 %v1657_v7, %v4909_v62  ;;  %1784 = vadd.xlane.f32.xlu0 %v1783_v28  ;;  %v4960_v7 = vstv %s5410_s8 }
 0x251   :  { %v1661_v44 = vpop.f32.mrf.mxu0 }
 0x252   :  { %v1721_v5 = vmax.f32 %v1658_v43, 0.0  ;;  %v1662_v33 = vadd.f32 %v1661_v44, %v4906_v59  ;;  %v1786_v0 = vadd.f32 %v1751_v12, %v1750_v11  ;;  %v1752_v9 = vmul.f32 %v1720_v52, %v4764_v57 }
 0x253   :  { %v1663_v27 = vpop.f32.mrf.mxu0  ;;  %v1009_v11 = vadd.s32 4294967288, %v4951_v45 }
 0x254   :  { %v1753_v56 = vmul.f32 %v1721_v5, %v4769_v23  ;;  %v1722_v58 = vmax.f32 %v1662_v33, 0.0  ;;  %v1664_v32 = vadd.f32 %v1663_v27, %v4909_v62  ;;  %1787 = vadd.xlane.f32.xlu1 %v1786_v0  ;;  %v1016_v33 = vadd.s32 4294967280, %v4951_v45 }
 0x255   :  { %v1665_v47 = vpop.f32.mrf.mxu0 }
 0x256   :  { %v1723_v42 = vmax.f32 %v1664_v32, 0.0  ;;  %v1666_v30 = vadd.f32 %v1665_v47, %v4906_v59  ;;  %v1789_v51 = vadd.f32 %v1753_v56, %v1752_v9  ;;  %v1754_v25 = vmul.f32 %v1722_v58, %v4764_v57  ;;  %v5522_v32 = vld [vmem:[#allocation13_spill] sm:$0xff] }
 0x257   :  { %v1667_v4 = vpop.f32.mrf.mxu0  ;;  %v4970_v47 = vsub.s32 %v4951_v45, %v5522_v32 }
 0x258   :  { %v1755_v46 = vmul.f32 %v1723_v42, %v4769_v23  ;;  %v1724_v37 = vmax.f32 %v1666_v30, 0.0  ;;  %v1668_v2 = vadd.f32 %v1667_v4, %v4909_v62  ;;  %1790 = vadd.xlane.f32.xlu0 %v1789_v51  ;;  %v4974_v30 = vsub.s32 %v1009_v11, %v5522_v32 }
 0x259   :  { %v1671_v26 = vpop.f32.mrf.mxu0 }
 0x25a   :  { %v1725_v55 = vmax.f32 %v1668_v2, 0.0  ;;  %v1672_v6 = vadd.f32 %v1671_v26, %v4906_v59  ;;  %v1792_v39 = vadd.f32 %v1755_v46, %v1754_v25  ;;  %v1756_v16 = vmul.f32 %v1724_v37, %v4764_v57 }
 0x25b   :  { %v1673_v36 = vpop.f32.mrf.mxu0 }
 0x25c   :  { %v1757_v34 = vmul.f32 %v1725_v55, %v4769_v23  ;;  %v1726_v24 = vmax.f32 %v1672_v6, 0.0  ;;  %v1674_v31 = vadd.f32 %v1673_v36, %v4909_v62  ;;  %1793 = vadd.xlane.f32.xlu1 %v1792_v39  ;;  %v4981_v55 = vsub.s32 %v1016_v33, %v5522_v32 }
 0x25d   :  { %v1675_v38 = vpop.f32.mrf.mxu0 }
 0x25e   :  { %v1727_v35 = vmax.f32 %v1674_v31, 0.0  ;;  %v1676_v53 = vadd.f32 %v1675_v38, %v4906_v59  ;;  %v1795_v29 = vadd.f32 %v1757_v34, %v1756_v16  ;;  %v1758_v50 = vmul.f32 %v1726_v24, %v4764_v57 }
 0x25f   :  { %v1677_v54 = vpop.f32.mrf.mxu0  ;;  %v924_v8 = vpop.xlane.xlu0 %923  ;;  %v1023_v38 = vadd.s32 4294967272, %v4951_v45 }
 0x260   :  { %v1759_v40 = vmul.f32 %v1727_v35, %v4769_v23  ;;  %v1728_v18 = vmax.f32 %v1676_v53, 0.0  ;;  %v1678_v22 = vadd.f32 %v1677_v54, %v4909_v62  ;;  %1796 = vadd.xlane.f32.xlu0 %v1795_v29  ;;  %v971_v42 = vadd.f32 %v4960_v7, %v924_v8 }
 0x261   :  { %v1681_v14 = vpop.f32.mrf.mxu0 }
 0x262   :  { %v1729_v17 = vmax.f32 %v1678_v22, 0.0  ;;  %v1682_v20 = vadd.f32 %v1681_v14, %v4906_v59  ;;  %v1798_v21 = vadd.f32 %v1759_v40, %v1758_v50  ;;  %v1760_v10 = vmul.f32 %v1728_v18, %v4764_v57  ;;  %v2244_v14 = vld [vmem:[%s5408_s6] sm:$0x3] }
 0x263   :  { %v1683_v1 = vpop.f32.mrf.mxu0  ;;  %v1008_v34 = vrot.slane %v971_v42, %v4970_v47  ;;  %v5009_v8 = vrot.slane %v2244_v14, %v5505_v48 }
 0x264   :  { %v1761_v19 = vmul.f32 %v1729_v17, %v4769_v23  ;;  %v1730_v61 = vmax.f32 %v1682_v20, 0.0  ;;  %v1684_v15 = vadd.f32 %v1683_v1, %v4909_v62  ;;  %1799 = vadd.xlane.f32.xlu1 %v1798_v21  ;;  %v927_v56 = vpop.xlane.xlu1 %926  ;;  %v1030_v20 = vadd.s32 4294967264, %v4951_v45 }
 0x265   :  { %v1685_v63 = vpop.f32.mrf.mxu0  ;;  %v972_v51 = vadd.f32 %v4960_v7, %v927_v56 }
 0x266   :  { %v1731_v41 = vmax.f32 %v1684_v15, 0.0  ;;  %v1686_v49 = vadd.f32 %v1685_v63, %v4906_v59  ;;  %v1801_v13 = vadd.f32 %v1761_v19, %v1760_v10  ;;  %v1762_v12 = vmul.f32 %v1730_v61, %v4764_v57 }
 0x267   :  { %v1687_v28 = vpop.f32.mrf.mxu0  ;;  %v930_v2 = vpop.xlane.xlu0 %929  ;;  %v1013_v31 = vrot.slane %v972_v51, %v4974_v30  ;;  %v4999_v10 = vsub.s32 %v1023_v38, %v5522_v32 }
 0x268   :  { %v1763_v52 = vmul.f32 %v1731_v41, %v4769_v23  ;;  %v1732_v43 = vmax.f32 %v1686_v49, 0.0  ;;  %v1688_v44 = vadd.f32 %v1687_v28, %v4909_v62  ;;  %1802 = vadd.xlane.f32.xlu0 %v1801_v13  ;;  %v973_v24 = vadd.f32 %v4960_v7, %v930_v2 }
 0x269   :  { %v1691_v5 = vpop.f32.mrf.mxu0  ;;  %v1015_v60 = vsel %vm1014_vm3, %v1013_v31, %v1008_v34  ;;  %v5006_v13 = vrot.slane %v2244_v14, %v5504_v3  ;;  %v1051_v14 = vadd.s32 4294967240, %v4951_v45 }
 0x26a   :  { %v1733_v0 = vmax.f32 %v1688_v44, 0.0  ;;  %v1692_v27 = vadd.f32 %v1691_v5, %v4906_v59  ;;  %v1804_v9 = vadd.f32 %v1763_v52, %v1762_v12  ;;  %v1764_v4 = vmul.f32 %v1732_v43, %v4764_v57 }
 0x26b   :  { %v1693_v58 = vpop.f32.mrf.mxu0  ;;  %v1020_v1 = vrot.slane %v973_v24, %v4981_v55  ;;  %v5013_v52 = vsub.s32 %v1030_v20, %v5522_v32 }
 0x26c   :  { %v1765_v25 = vmul.f32 %v1733_v0, %v4769_v23  ;;  %v1734_v46 = vmax.f32 %v1692_v27, 0.0  ;;  %v1694_v37 = vadd.f32 %v1693_v58, %v4909_v62  ;;  %1805 = vadd.xlane.f32.xlu1 %v1804_v9  ;;  %v933_v17 = vpop.xlane.xlu0 %932  ;;  %v1037_v27 = vadd.s32 4294967256, %v4951_v45 }
 0x26d   :  { %v1695_v26 = vpop.f32.mrf.mxu0  ;;  %v974_v19 = vadd.f32 %v4960_v7, %v933_v17  ;;  %v1022_v5 = vsel %vm1021_vm4, %v1020_v1, %v1015_v60 }
 0x26e   :  { %v1735_v6 = vmax.f32 %v1694_v37, 0.0  ;;  %v1696_v39 = vadd.f32 %v1695_v26, %v4906_v59  ;;  %v1807_v36 = vadd.f32 %v1765_v25, %v1764_v4  ;;  %v1766_v35 = vmul.f32 %v1734_v46, %v4764_v57 }
 0x26f   :  { %v1697_v16 = vpop.f32.mrf.mxu0  ;;  %v936_v43 = vpop.xlane.xlu1 %935  ;;  %v1027_v33 = vrot.slane %v974_v19, %v4999_v10  ;;  %v1044_v37 = vadd.s32 4294967248, %v4951_v45 }
 0x270   :  { %v1767_v53 = vmul.f32 %v1735_v6, %v4769_v23  ;;  %v1736_v29 = vmax.f32 %v1696_v39, 0.0  ;;  %v1698_v54 = vadd.f32 %v1697_v16, %v4909_v62  ;;  %1808 = vadd.xlane.f32.xlu0 %v1807_v36  ;;  %v975_v0 = vadd.f32 %v4960_v7, %v936_v43 }
 0x271   :  { %v1701_v50 = vpop.f32.mrf.mxu0  ;;  %v1029_v26 = vsel %vm1028_vm5, %v1027_v33, %v1022_v5  ;;  %v5027_v39 = vsub.s32 %v1037_v27, %v5522_v32 }
 0x272   :  { %v1737_v40 = vmax.f32 %v1698_v54, 0.0  ;;  %v1702_v18 = vadd.f32 %v1701_v50, %v4906_v59  ;;  %v1810_v22 = vadd.f32 %v1767_v53, %v1766_v35  ;;  %v1768_v61 = vmul.f32 %v1736_v29, %v4764_v57 }
 0x273   :  { %v1703_v21 = vpop.f32.mrf.mxu0  ;;  %v1034_v6 = vrot.slane %v975_v0, %v5013_v52  ;;  %v5035_v29 = vsub.s32 %v1044_v37, %v5522_v32 }
 0x274   :  { %v1769_v15 = vmul.f32 %v1737_v40, %v4769_v23  ;;  %v1738_v63 = vmax.f32 %v1702_v18, 0.0  ;;  %v1704_v41 = vadd.f32 %v1703_v21, %v4909_v62  ;;  %1811 = vadd.xlane.f32.xlu1 %v1810_v22  ;;  %v939_v46 = vpop.xlane.xlu0 %938 }
 0x275   :  { %v1705_v49 = vpop.f32.mrf.mxu0  ;;  %v1036_v40 = vsel %vm1035_vm6, %v1034_v6, %v1029_v26 }
 0x276   :  { %v1739_v28 = vmax.f32 %v1704_v41, 0.0  ;;  %v1706_v11 = vadd.f32 %v1705_v49, %v4906_v59  ;;  %v1813_v12 = vadd.f32 %v1769_v15, %v1768_v61  ;;  %v1770_v9 = vmul.f32 %v1738_v63, %v4764_v57 }
 0x277   :  { %v1707_v44 = vpop.f32.mrf.mxu0  ;;  %v942_v54 = vpop.xlane.xlu1 %941  ;;  %v1058_v41 = vadd.s32 4294967232, %v4951_v45 }
 0x278   :  { %v1771_v56 = vmul.f32 %v1739_v28, %v4769_v23  ;;  %v1740_v58 = vmax.f32 %v1706_v11, 0.0  ;;  %v1708_v59 = vadd.f32 %v1707_v44, %v4909_v62  ;;  %1814 = vadd.xlane.f32.xlu0 %v1813_v12  ;;  %v976_v62 = vadd.f32 %v4960_v7, %v939_v46 }
 0x279   :  { %v2450_v42 = vpop.f32.mrf.mxu0  ;;  %v977_v22 = vadd.f32 %v4960_v7, %v942_v54  ;;  %v5049_v12 = vsub.s32 %v1051_v14, %v5522_v32  ;;  %v5060_v46 = vsub.s32 %v1058_v41, %v5522_v32 }
 0x27a   :  { %v1741_v51 = vmax.f32 %v1708_v59, 0.0  ;;  %v2451_v4 = vadd.f32 %v2450_v42, %v5006_v13  ;;  %v1816_v25 = vadd.f32 %v1771_v56, %v1770_v9  ;;  %v1772_v36 = vmul.f32 %v1740_v58, %v4764_v57 }
 0x27b   :  { %v2452_v2 = vpop.f32.mrf.mxu0  ;;  %v1041_v18 = vrot.slane %v976_v62, %v5027_v39  ;;  %v1048_v11 = vrot.slane %v977_v22, %v5035_v29  ;;  %v1065_v9 = vadd.s32 4294967224, %v4951_v45 }
 0x27c   :  { %v1773_v16 = vmul.f32 %v1741_v51, %v4769_v23  ;;  %v2529_v34 = vmax.f32 %v2451_v4, 0.0  ;;  %v2453_v24 = vadd.f32 %v2452_v2, %v5009_v8  ;;  %1817 = vadd.xlane.f32.xlu1 %v1816_v25  ;;  %v945_v63 = vpop.xlane.xlu0 %944 }
 0x27d   :  { %v2454_v31 = vpop.f32.mrf.mxu0  ;;  %v1043_v49 = vsel %vm1042_vm7, %v1041_v18, %v1036_v40  ;;  %v978_v43 = vadd.f32 %v4960_v7, %v945_v63 }
 0x27e   :  { %v2530_v38 = vmax.f32 %v2453_v24, 0.0  ;;  %v2455_v35 = vadd.f32 %v2454_v31, %v5006_v13  ;;  %v1819_v53 = vadd.f32 %v1773_v16, %v1772_v36  ;;  %v2561_v17 = vmul.f32 %v2529_v34, %v4764_v57 }
 0x27f   :  { %v2456_v50 = vpop.f32.mrf.mxu0  ;;  %v948_v59 = vpop.xlane.xlu1 %947  ;;  %v1050_v51 = vsel %vm1049_vm8, %v1048_v11, %v1043_v49  ;;  %v1055_v4 = vrot.slane %v978_v43, %v5049_v12  ;;  %v5067_v34 = vsub.s32 %v1065_v9, %v5522_v32  ;;  %v1072_v24 = vadd.s32 4294967216, %v4951_v45 }
 0x280   :  { %v2562_v20 = vmul.f32 %v2530_v38, %v4769_v23  ;;  %v2531_v21 = vmax.f32 %v2455_v35, 0.0  ;;  %v2457_v1 = vadd.f32 %v2456_v50, %v5009_v8  ;;  %1820 = vadd.xlane.f32.xlu0 %v1819_v53  ;;  %v979_v37 = vadd.f32 %v4960_v7, %v948_v59 }
 0x281   :  { %v2460_v60 = vpop.f32.mrf.mxu0  ;;  %v1057_v54 = vsel %vm1056_vm9, %v1055_v4, %v1050_v51  ;;  %v1086_v43 = vadd.s32 4294967200, %v4951_v45  ;;  %v1093_v59 = vadd.s32 4294967192, %v4951_v45 }
 0x282   :  { %v2532_v19 = vmax.f32 %v2457_v1, 0.0  ;;  %v2461_v61 = vadd.f32 %v2460_v60, %v5006_v13  ;;  %v2593_v15 = vadd.f32 %v2562_v20, %v2561_v17  ;;  %v2563_v44 = vmul.f32 %v2531_v21, %v4764_v57 }
 0x283   :  { %v2462_v28 = vpop.f32.mrf.mxu0  ;;  %v1062_v50 = vrot.slane %v979_v37, %v5060_v46  ;;  %v5078_v21 = vsub.s32 %v1072_v24, %v5522_v32 }
 0x284   :  { %v2564_v5 = vmul.f32 %v2532_v19, %v4769_v23  ;;  %v2533_v33 = vmax.f32 %v2461_v61, 0.0  ;;  %v2463_v0 = vadd.f32 %v2462_v28, %v5009_v8  ;;  %2594 = vadd.xlane.f32.xlu1 %v2593_v15  ;;  %v951_v36 = vpop.xlane.xlu0 %950  ;;  %v1079_v19 = vadd.s32 4294967208, %v4951_v45 }
 0x285   :  { %v2464_v27 = vpop.f32.mrf.mxu0  ;;  %v980_v35 = vadd.f32 %v4960_v7, %v951_v36  ;;  %v1064_v28 = vsel %vm1063_vm10, %v1062_v50, %v1057_v54  ;;  %v5108_v54 = vsub.s32 %v1093_v59, %v5522_v32 }
 0x286   :  { %v2534_v56 = vmax.f32 %v2463_v0, 0.0  ;;  %v2465_v58 = vadd.f32 %v2464_v27, %v5006_v13  ;;  %v2596_v42 = vadd.f32 %v2564_v5, %v2563_v44  ;;  %v2565_v2 = vmul.f32 %v2533_v33, %v4764_v57 }
 0x287   :  { %v2466_v25 = vpop.f32.mrf.mxu0  ;;  %v954_v20 = vpop.xlane.xlu1 %953  ;;  %v1069_v61 = vrot.slane %v980_v35, %v5067_v34  ;;  %v5091_v9 = vsub.s32 %v1079_v19, %v5522_v32 }
 0x288   :  { %v2566_v26 = vmul.f32 %v2534_v56, %v4769_v23  ;;  %v2535_v6 = vmax.f32 %v2465_v58, 0.0  ;;  %v2467_v62 = vadd.f32 %v2466_v25, %v5009_v8  ;;  %2597 = vadd.xlane.f32.xlu0 %v2596_v42  ;;  %v981_v1 = vadd.f32 %v4960_v7, %v954_v20 }
 0x289   :  { %v2470_v16 = vpop.f32.mrf.mxu0  ;;  %v1071_v42 = vsel %vm1070_vm11, %v1069_v61, %v1064_v28 }
 0x28a   :  { %v2536_v31 = vmax.f32 %v2467_v62, 0.0  ;;  %v2471_v38 = vadd.f32 %v2470_v16, %v5006_v13  ;;  %v2599_v53 = vadd.f32 %v2566_v26, %v2565_v2  ;;  %v2567_v18 = vmul.f32 %v2535_v6, %v4764_v57 }
 0x28b   :  { %v2472_v40 = vpop.f32.mrf.mxu0  ;;  %v1076_v27 = vrot.slane %v981_v1, %v5078_v21  ;;  %v5098_v2 = vsub.s32 %v1086_v43, %v5522_v32  ;;  %v1100_v6 = vadd.s32 4294967184, %v4951_v45  ;;  %v1107_v1 = vadd.s32 4294967176, %v4951_v45 }
 0x28c   :  { %v2568_v22 = vmul.f32 %v2536_v31, %v4769_v23  ;;  %v2537_v14 = vmax.f32 %v2471_v38, 0.0  ;;  %v2473_v17 = vadd.f32 %v2472_v40, %v5009_v8  ;;  %2600 = vadd.xlane.f32.xlu1 %v2599_v53  ;;  %v957_v41 = vpop.xlane.xlu0 %956 }
 0x28d   :  { %v2474_v60 = vpop.f32.mrf.mxu0  ;;  %v982_v56 = vadd.f32 %v4960_v7, %v957_v41  ;;  %v1078_v38 = vsel %vm1077_vm12, %v1076_v27, %v1071_v42  ;;  %v5113_v20 = vsub.s32 %v1100_v6, %v5522_v32  ;;  %v5126_v27 = vsub.s32 %v1107_v1, %v5522_v32 }
 0x28e   :  { %v2538_v15 = vmax.f32 %v2473_v17, 0.0  ;;  %v2475_v63 = vadd.f32 %v2474_v60, %v5006_v13  ;;  %v2602_v49 = vadd.f32 %v2568_v22, %v2567_v18  ;;  %v2569_v44 = vmul.f32 %v2537_v14, %v4764_v57 }
 0x28f   :  { %v2476_v11 = vpop.f32.mrf.mxu0  ;;  %v960_v4 = vpop.xlane.xlu1 %959  ;;  %v1083_v35 = vrot.slane %v982_v56, %v5091_v9 }
 0x290   :  { %v2570_v5 = vmul.f32 %v2538_v15, %v4769_v23  ;;  %v2539_v33 = vmax.f32 %v2475_v63, 0.0  ;;  %v2477_v0 = vadd.f32 %v2476_v11, %v5009_v8  ;;  %2603 = vadd.xlane.f32.xlu0 %v2602_v49  ;;  %v983_v53 = vadd.f32 %v4960_v7, %v960_v4 }
 0x291   :  { %v2480_v58 = vpop.f32.mrf.mxu0  ;;  %v1085_v41 = vsel %vm1084_vm13, %v1083_v35, %v1078_v38 }
 0x292   :  { %v2540_v51 = vmax.f32 %v2477_v0, 0.0  ;;  %v2481_v25 = vadd.f32 %v2480_v58, %v5006_v13  ;;  %v2605_v37 = vadd.f32 %v2570_v5, %v2569_v44  ;;  %v2571_v62 = vmul.f32 %v2539_v33, %v4764_v57 }
 0x293   :  { %v2482_v26 = vpop.f32.mrf.mxu0  ;;  %v1090_v49 = vrot.slane %v983_v53, %v5098_v2 }
 0x294   :  { %v2572_v36 = vmul.f32 %v2540_v51, %v4769_v23  ;;  %v2541_v16 = vmax.f32 %v2481_v25, 0.0  ;;  %v2483_v24 = vadd.f32 %v2482_v26, %v5009_v8  ;;  %2606 = vadd.xlane.f32.xlu1 %v2605_v37  ;;  %v963_v31 = vpop.xlane.xlu0 %962 }
 0x295   :  { %v2484_v50 = vpop.f32.mrf.mxu0  ;;  %v984_v18 = vadd.f32 %v4960_v7, %v963_v31  ;;  %v1092_v4 = vsel %vm1091_vm14, %v1090_v49, %v1085_v41 }
 0x296   :  { %v2542_v40 = vmax.f32 %v2483_v24, 0.0  ;;  %v2485_v22 = vadd.f32 %v2484_v50, %v5006_v13  ;;  %v2608_v14 = vadd.f32 %v2572_v36, %v2571_v62  ;;  %v2573_v60 = vmul.f32 %v2541_v16, %v4764_v57 }
 0x297   :  { %v2486_v17 = vpop.f32.mrf.mxu0  ;;  %v966_v63 = vpop.xlane.xlu1 %965  ;;  %v1097_v43 = vrot.slane %v984_v18, %v5108_v54 }
 0x298   :  { %v2574_v19 = vmul.f32 %v2542_v40, %v4769_v23  ;;  %v2543_v61 = vmax.f32 %v2485_v22, 0.0  ;;  %v2487_v15 = vadd.f32 %v2486_v17, %v5009_v8  ;;  %2609 = vadd.xlane.f32.xlu0 %v2608_v14  ;;  %v985_v28 = vadd.f32 %v4960_v7, %v966_v63 }
 0x299   :  { %v2490_v11 = vpop.f32.mrf.mxu0  ;;  %v1099_v26 = vsel %vm1098_vm15, %v1097_v43, %v1092_v4 }
 0x29a   :  { %v2544_v45 = vmax.f32 %v2487_v15, 0.0  ;;  %v2491_v44 = vadd.f32 %v2490_v11, %v5006_v13  ;;  %v2611_v5 = vadd.f32 %v2574_v19, %v2573_v60  ;;  %v1104_v33 = vrot.slane %v985_v28, %v5113_v20 }
 0x29b   :  { %v2492_v0 = vpop.f32.mrf.mxu0  ;;  %v2575_v56 = vmul.f32 %v2543_v61, %v4764_v57 }
 0x29c   :  { %v2576_v58 = vmul.f32 %v2544_v45, %v4769_v23  ;;  %v2545_v59 = vmax.f32 %v2491_v44, 0.0  ;;  %v2493_v42 = vadd.f32 %v2492_v0, %v5009_v8  ;;  %2612 = vadd.xlane.f32.xlu1 %v2611_v5  ;;  %v969_v51 = vpop.xlane.xlu0 %968  ;;  %v1106_v36 = vsel %vm1105_vm0, %v1104_v33, %v1099_v26 }
 0x29d   :  { %v986_v25 = vadd.f32 %v4960_v7, %v969_v51  ;;  %v2494_v37 = vpop.f32.mrf.mxu0 }
 0x29e   :  { %v2546_v6 = vmax.f32 %v2493_v42, 0.0  ;;  %v2495_v32 = vadd.f32 %v2494_v37, %v5006_v13  ;;  %v2614_v62 = vadd.f32 %v2576_v58, %v2575_v56  ;;  %v2577_v31 = vmul.f32 %v2545_v59, %v4764_v57 }
 0x29f   :  { %v1111_v16 = vrot.slane %v986_v25, %v5126_v27  ;;  %v2496_v24 = vpop.f32.mrf.mxu0 }
 0x2a0   :  { %v2578_v38 = vmul.f32 %v2546_v6, %v4769_v23  ;;  %v2547_v35 = vmax.f32 %v2495_v32, 0.0  ;;  %v2497_v53 = vadd.f32 %v2496_v24, %v5009_v8  ;;  %2615 = vadd.xlane.f32.xlu0 %v2614_v62 }
 0x2a1   :  { %v1113_v50 = vsel %vm1112_vm1, %v1111_v16, %v1106_v36  ;;  %v2500_v40 = vpop.f32.mrf.mxu0 }
 0x2a2   :  { %1115 = vst [vmem:[%s5411_s9] sm:$0x1] %v1113_v50  ;;  %v2548_v18 = vmax.f32 %v2497_v53, 0.0  ;;  %v2501_v22 = vadd.f32 %v2500_v40, %v5006_v13  ;;  %v2617_v14 = vadd.f32 %v2578_v38, %v2577_v31  ;;  %v2579_v1 = vmul.f32 %v2547_v35, %v4764_v57  ;;  %v3063_v40 = vld [vmem:[%s5408_s6] sm:$0x3] }
 0x2a3   :  { %v2502_v17 = vpop.f32.mrf.mxu0 }
 0x2a4   :  { %v2580_v60 = vmul.f32 %v2548_v18, %v4769_v23  ;;  %v2549_v19 = vmax.f32 %v2501_v22, 0.0  ;;  %v2503_v61 = vadd.f32 %v2502_v17, %v5009_v8  ;;  %2618 = vadd.xlane.f32.xlu1 %v2617_v14 }
 0x2a5   :  { %v2504_v15 = vpop.f32.mrf.mxu0 }
 0x2a6   :  { %v2550_v63 = vmax.f32 %v2503_v61, 0.0  ;;  %v2505_v41 = vadd.f32 %v2504_v15, %v5006_v13  ;;  %v2620_v49 = vadd.f32 %v2580_v60, %v2579_v1  ;;  %v2581_v11 = vmul.f32 %v2549_v19, %v4764_v57 }
 0x2a7   :  { %v2506_v28 = vpop.f32.mrf.mxu0  ;;  %v5169_v15 = vrot.slane %v3063_v40, %v5504_v3 }
 0x2a8   :  { %v2582_v43 = vmul.f32 %v2550_v63, %v4769_v23  ;;  %v2551_v45 = vmax.f32 %v2505_v41, 0.0  ;;  %v2507_v44 = vadd.f32 %v2506_v28, %v5009_v8  ;;  %2621 = vadd.xlane.f32.xlu0 %v2620_v49  ;;  %v5172_v41 = vrot.slane %v3063_v40, %v5505_v48 }
 0x2a9   :  { %v2510_v5 = vpop.f32.mrf.mxu0 }
 0x2aa   :  { %v2552_v33 = vmax.f32 %v2507_v44, 0.0  ;;  %v2511_v0 = vadd.f32 %v2510_v5, %v5006_v13  ;;  %v2623_v56 = vadd.f32 %v2582_v43, %v2581_v11  ;;  %v2583_v59 = vmul.f32 %v2551_v45, %v4764_v57 }
 0x2ab   :  { %v2512_v58 = vpop.f32.mrf.mxu0 }
 0x2ac   :  { %v2584_v42 = vmul.f32 %v2552_v33, %v4769_v23  ;;  %v2553_v51 = vmax.f32 %v2511_v0, 0.0  ;;  %v2513_v4 = vadd.f32 %v2512_v58, %v5009_v8  ;;  %2624 = vadd.xlane.f32.xlu1 %v2623_v56 }
 0x2ad   :  { %v2514_v25 = vpop.f32.mrf.mxu0 }
 0x2ae   :  { %v2554_v37 = vmax.f32 %v2513_v4, 0.0  ;;  %v2515_v26 = vadd.f32 %v2514_v25, %v5006_v13  ;;  %v2626_v6 = vadd.f32 %v2584_v42, %v2583_v59  ;;  %v2585_v62 = vmul.f32 %v2553_v51, %v4764_v57 }
 0x2af   :  { %v2516_v32 = vpop.f32.mrf.mxu0 }
 0x2b0   :  { %v2586_v36 = vmul.f32 %v2554_v37, %v4769_v23  ;;  %v2555_v16 = vmax.f32 %v2515_v26, 0.0  ;;  %v2517_v24 = vadd.f32 %v2516_v32, %v5009_v8  ;;  %2627 = vadd.xlane.f32.xlu0 %v2626_v6 }
 0x2b1   :  { %v2520_v31 = vpop.f32.mrf.mxu0 }
 0x2b2   :  { %v2556_v38 = vmax.f32 %v2517_v24, 0.0  ;;  %v2521_v35 = vadd.f32 %v2520_v31, %v5006_v13  ;;  %v2629_v53 = vadd.f32 %v2586_v36, %v2585_v62  ;;  %v2587_v18 = vmul.f32 %v2555_v16, %v4764_v57 }
 0x2b3   :  { %v2522_v50 = vpop.f32.mrf.mxu0 }
 0x2b4   :  { %v2588_v22 = vmul.f32 %v2556_v38, %v4769_v23  ;;  %v2557_v14 = vmax.f32 %v2521_v35, 0.0  ;;  %v2523_v17 = vadd.f32 %v2522_v50, %v5009_v8  ;;  %2630 = vadd.xlane.f32.xlu1 %v2629_v53 }
 0x2b5   :  { %v2524_v1 = vpop.f32.mrf.mxu0 }
 0x2b6   :  { %v2558_v60 = vmax.f32 %v2523_v17, 0.0  ;;  %v2525_v19 = vadd.f32 %v2524_v1, %v5006_v13  ;;  %v2632_v61 = vadd.f32 %v2588_v22, %v2587_v18  ;;  %v2589_v49 = vmul.f32 %v2557_v14, %v4764_v57 }
 0x2b7   :  { %v2526_v63 = vpop.f32.mrf.mxu0 }
 0x2b8   :  { %v2590_v28 = vmul.f32 %v2558_v60, %v4769_v23  ;;  %v2559_v11 = vmax.f32 %v2525_v19, 0.0  ;;  %v2527_v43 = vadd.f32 %v2526_v63, %v5009_v8  ;;  %2633 = vadd.xlane.f32.xlu0 %v2632_v61 }
 0x2b9   :  { %v3269_v45 = vpop.f32.mrf.mxu0 }
 0x2ba   :  { %v2560_v44 = vmax.f32 %v2527_v43, 0.0  ;;  %v3270_v13 = vadd.f32 %v3269_v45, %v5169_v15  ;;  %v2635_v5 = vadd.f32 %v2590_v28, %v2589_v49  ;;  %v2591_v3 = vmul.f32 %v2559_v11, %v4764_v57 }
 0x2bb   :  { %v3271_v33 = vpop.f32.mrf.mxu0 }
 0x2bc   :  { %v2592_v0 = vmul.f32 %v2560_v44, %v4769_v23  ;;  %v3348_v48 = vmax.f32 %v3270_v13, 0.0  ;;  %v3272_v56 = vadd.f32 %v3271_v33, %v5172_v41  ;;  %2636 = vadd.xlane.f32.xlu1 %v2635_v5 }
 0x2bd   :  { %v3273_v58 = vpop.f32.mrf.mxu0 }
 0x2be   :  { %v3349_v59 = vmax.f32 %v3272_v56, 0.0  ;;  %v3274_v42 = vadd.f32 %v3273_v58, %v5169_v15  ;;  %v5182_v8 = vadd.f32 %v2592_v0, %v2591_v3  ;;  %v3380_v4 = vmul.f32 %v3348_v48, %v4764_v57 }
 0x2bf   :  { %v3275_v51 = vpop.f32.mrf.mxu0 }
 0x2c0   :  { %v3381_v25 = vmul.f32 %v3349_v59, %v4769_v23  ;;  %v3350_v37 = vmax.f32 %v3274_v42, 0.0  ;;  %v3276_v26 = vadd.f32 %v3275_v51, %v5172_v41 }
 0x2c1   :  { %v3279_v6 = vpop.f32.mrf.mxu0 }
 0x2c2   :  { %v3351_v32 = vmax.f32 %v3276_v26, 0.0  ;;  %v3280_v62 = vadd.f32 %v3279_v6, %v5169_v15  ;;  %v3412_v36 = vadd.f32 %v3381_v25, %v3380_v4  ;;  %v3382_v24 = vmul.f32 %v3350_v37, %v4764_v57 }
 0x2c3   :  { %v3281_v16 = vpop.f32.mrf.mxu0 }
 0x2c4   :  { %v3383_v31 = vmul.f32 %v3351_v32, %v4769_v23  ;;  %v3352_v38 = vmax.f32 %v3280_v62, 0.0  ;;  %v3282_v35 = vadd.f32 %v3281_v16, %v5172_v41  ;;  %3413 = vadd.xlane.f32.xlu0 %v3412_v36 }
 0x2c5   :  { %v3283_v53 = vpop.f32.mrf.mxu0 }
 0x2c6   :  { %v3353_v50 = vmax.f32 %v3282_v35, 0.0  ;;  %v3284_v40 = vadd.f32 %v3283_v53, %v5169_v15  ;;  %v3415_v18 = vadd.f32 %v3383_v31, %v3382_v24  ;;  %v3384_v14 = vmul.f32 %v3352_v38, %v4764_v57 }
 0x2c7   :  { %v3285_v22 = vpop.f32.mrf.mxu0 }
 0x2c8   :  { %v3385_v17 = vmul.f32 %v3353_v50, %v4769_v23  ;;  %v3286_v1 = vadd.f32 %v3285_v22, %v5172_v41  ;;  %3416 = vadd.xlane.f32.xlu1 %v3415_v18  ;;  %v3354_v60 = vmax.f32 %v3284_v40, 0.0 }
 0x2c9   :  { %v3289_v19 = vpop.f32.mrf.mxu0 }
 0x2ca   :  { %v3355_v61 = vmax.f32 %v3286_v1, 0.0  ;;  %v3290_v63 = vadd.f32 %v3289_v19, %v5169_v15  ;;  %v3418_v49 = vadd.f32 %v3385_v17, %v3384_v14  ;;  %v3386_v45 = vmul.f32 %v3354_v60, %v4764_v57 }
 0x2cb   :  { %v3291_v28 = vpop.f32.mrf.mxu0 }
 0x2cc   :  { %v3387_v11 = vmul.f32 %v3355_v61, %v4769_v23  ;;  %v3292_v43 = vadd.f32 %v3291_v28, %v5172_v41  ;;  %3419 = vadd.xlane.f32.xlu0 %v3418_v49  ;;  %v3356_v44 = vmax.f32 %v3290_v63, 0.0 }
 0x2cd   :  { %v3293_v13 = vpop.f32.mrf.mxu0 }
 0x2ce   :  { %v3357_v5 = vmax.f32 %v3292_v43, 0.0  ;;  %v3294_v33 = vadd.f32 %v3293_v13, %v5169_v15  ;;  %v3421_v0 = vadd.f32 %v3387_v11, %v3386_v45  ;;  %v3388_v58 = vmul.f32 %v3356_v44, %v4764_v57 }
 0x2cf   :  { %v3295_v3 = vpop.f32.mrf.mxu0 }
 0x2d0   :  { %v3389_v48 = vmul.f32 %v3357_v5, %v4769_v23  ;;  %v3296_v56 = vadd.f32 %v3295_v3, %v5172_v41  ;;  %v3358_v59 = vmax.f32 %v3294_v33, 0.0  ;;  %3422 = vadd.xlane.f32.xlu1 %v3421_v0 }
 0x2d1   :  { %v3299_v42 = vpop.f32.mrf.mxu0 }
 0x2d2   :  { %v3359_v51 = vmax.f32 %v3296_v56, 0.0  ;;  %v3300_v4 = vadd.f32 %v3299_v42, %v5169_v15  ;;  %v3424_v37 = vadd.f32 %v3389_v48, %v3388_v58  ;;  %v3390_v32 = vmul.f32 %v3358_v59, %v4764_v57 }
 0x2d3   :  { %v3301_v25 = vpop.f32.mrf.mxu0 }
 0x2d4   :  { %v3391_v26 = vmul.f32 %v3359_v51, %v4769_v23  ;;  %v3302_v6 = vadd.f32 %v3301_v25, %v5172_v41  ;;  %v3360_v62 = vmax.f32 %v3300_v4, 0.0  ;;  %3425 = vadd.xlane.f32.xlu0 %v3424_v37 }
 0x2d5   :  { %v3303_v36 = vpop.f32.mrf.mxu0 }
 0x2d6   :  { %v3361_v16 = vmax.f32 %v3302_v6, 0.0  ;;  %v3304_v24 = vadd.f32 %v3303_v36, %v5169_v15  ;;  %v3427_v38 = vadd.f32 %v3391_v26, %v3390_v32  ;;  %v3392_v50 = vmul.f32 %v3360_v62, %v4764_v57  ;;  %v1776_v62 = vpop.xlane.xlu1 %1775 }
 0x2d7   :  { %v3305_v31 = vpop.f32.mrf.mxu0 }
 0x2d8   :  { %v3393_v35 = vmul.f32 %v3361_v16, %v4769_v23  ;;  %v3306_v53 = vadd.f32 %v3305_v31, %v5172_v41  ;;  %v3362_v40 = vmax.f32 %v3304_v24, 0.0  ;;  %3428 = vadd.xlane.f32.xlu1 %v3427_v38  ;;  %v1779_v24 = vpop.xlane.xlu0 %1778 }
 0x2d9   :  { %v3309_v18 = vpop.f32.mrf.mxu1 }
 0x2da   :  { %v3363_v22 = vmax.f32 %v3306_v53, 0.0  ;;  %v3310_v14 = vadd.f32 %v3309_v18, %v5169_v15  ;;  %v3430_v1 = vadd.f32 %v3393_v35, %v3392_v50  ;;  %v3394_v61 = vmul.f32 %v3362_v40, %v4764_v57 }
 0x2db   :  { %v3311_v17 = vpop.f32.mrf.mxu1 }
 0x2dc   :  { %v3395_v60 = vmul.f32 %v3363_v22, %v4769_v23  ;;  %v3312_v19 = vadd.f32 %v3311_v17, %v5172_v41  ;;  %v3364_v63 = vmax.f32 %v3310_v14, 0.0  ;;  %3431 = vadd.xlane.f32.xlu0 %v3430_v1  ;;  %v1782_v22 = vpop.xlane.xlu1 %1781  ;;  %v1785_v1 = vpop.xlane.xlu0 %1784 }
 0x2dd   :  { %v3313_v49 = vpop.f32.mrf.mxu1 }
 0x2de   :  { %v3365_v28 = vmax.f32 %v3312_v19, 0.0  ;;  %v3314_v11 = vadd.f32 %v3313_v49, %v5169_v15  ;;  %v3433_v45 = vadd.f32 %v3395_v60, %v3394_v61  ;;  %v3396_v5 = vmul.f32 %v3364_v63, %v4764_v57 }
 0x2df   :  { %v3315_v43 = vpop.f32.mrf.mxu1 }
 0x2e0   :  { %v3397_v44 = vmul.f32 %v3365_v28, %v4769_v23  ;;  %v3316_v13 = vadd.f32 %v3315_v43, %v5172_v41  ;;  %v3366_v33 = vmax.f32 %v3314_v11, 0.0  ;;  %3434 = vadd.xlane.f32.xlu1 %v3433_v45  ;;  %v1788_v43 = vpop.xlane.xlu1 %1787 }
 0x2e1   :  { %v3319_v3 = vpop.f32.mrf.mxu1 }
 0x2e2   :  { %v3367_v0 = vmax.f32 %v3316_v13, 0.0  ;;  %v3320_v48 = vadd.f32 %v3319_v3, %v5169_v15  ;;  %v3436_v58 = vadd.f32 %v3397_v44, %v3396_v5  ;;  %v3398_v51 = vmul.f32 %v3366_v33, %v4764_v57  ;;  %v1791_v13 = vpop.xlane.xlu0 %1790 }
 0x2e3   :  { %v3321_v56 = vpop.f32.mrf.mxu1 }
 0x2e4   :  { %v3399_v59 = vmul.f32 %v3367_v0, %v4769_v23  ;;  %v3322_v42 = vadd.f32 %v3321_v56, %v5172_v41  ;;  %v3368_v4 = vmax.f32 %v3320_v48, 0.0  ;;  %3437 = vadd.xlane.f32.xlu0 %v3436_v58 }
 0x2e5   :  { %v3323_v25 = vpop.f32.mrf.mxu1 }
 0x2e6   :  { %v3369_v37 = vmax.f32 %v3322_v42, 0.0  ;;  %v3324_v26 = vadd.f32 %v3323_v25, %v5169_v15  ;;  %v3439_v32 = vadd.f32 %v3399_v59, %v3398_v51  ;;  %v3400_v31 = vmul.f32 %v3368_v4, %v4764_v57  ;;  %v1794_v59 = vpop.xlane.xlu1 %1793 }
 0x2e7   :  { %v3325_v6 = vpop.f32.mrf.mxu1 }
 0x2e8   :  { %v3401_v36 = vmul.f32 %v3369_v37, %v4769_v23  ;;  %v3326_v16 = vadd.f32 %v3325_v6, %v5172_v41  ;;  %v3370_v38 = vmax.f32 %v3324_v26, 0.0  ;;  %3440 = vadd.xlane.f32.xlu1 %v3439_v32 }
 0x2e9   :  { %v3329_v35 = vpop.f32.mrf.mxu1  ;;  %v1797_v25 = vpop.xlane.xlu0 %1796 }
 0x2ea   :  { %v3371_v53 = vmax.f32 %v3326_v16, 0.0  ;;  %v3330_v50 = vadd.f32 %v3329_v35, %v5169_v15  ;;  %v3442_v18 = vadd.f32 %v3401_v36, %v3400_v31  ;;  %v3402_v60 = vmul.f32 %v3370_v38, %v4764_v57 }
 0x2eb   :  { %v3331_v40 = vpop.f32.mrf.mxu1  ;;  %v1823_v36 = vadd.f32 %v1779_v24, %v4960_v7 }
 0x2ec   :  { %v3403_v14 = vmul.f32 %v3371_v53, %v4769_v23  ;;  %v3332_v17 = vadd.f32 %v3331_v40, %v5172_v41  ;;  %v3372_v19 = vmax.f32 %v3330_v50, 0.0  ;;  %3443 = vadd.xlane.f32.xlu0 %v3442_v18  ;;  %v1824_v18 = vadd.f32 %v1782_v22, %v4960_v7 }
 0x2ed   :  { %v3333_v61 = vpop.f32.mrf.mxu1  ;;  %v1800_v38 = vpop.xlane.xlu1 %1799 }
 0x2ee   :  { %v3373_v63 = vmax.f32 %v3332_v17, 0.0  ;;  %v3334_v49 = vadd.f32 %v3333_v61, %v5169_v15  ;;  %v3445_v11 = vadd.f32 %v3403_v14, %v3402_v60  ;;  %v3404_v5 = vmul.f32 %v3372_v19, %v4764_v57 }
 0x2ef   :  { %v3335_v28 = vpop.f32.mrf.mxu1  ;;  %v1822_v17 = vadd.f32 %v1776_v62, %v4960_v7  ;;  %v1826_v19 = vadd.f32 %v1788_v43, %v4960_v7  ;;  %v1861_v61 = vrot.slane %v1823_v36, %v4974_v30  ;;  %v1866_v22 = vrot.slane %v1824_v18, %v4981_v55 }
 0x2f0   :  { %v3405_v45 = vmul.f32 %v3373_v63, %v4769_v23  ;;  %v3336_v44 = vadd.f32 %v3335_v28, %v5172_v41  ;;  %v3374_v33 = vmax.f32 %v3334_v49, 0.0  ;;  %3446 = vadd.xlane.f32.xlu1 %v3445_v11  ;;  %v1827_v63 = vadd.f32 %v1791_v13, %v4960_v7 }
 0x2f1   :  { %v3339_v3 = vpop.f32.mrf.mxu1  ;;  %v1803_v14 = vpop.xlane.xlu0 %1802  ;;  %v1828_v62 = vadd.f32 %v1794_v59, %v4960_v7  ;;  %v1830_v13 = vadd.f32 %v1800_v38, %v4960_v7 }
 0x2f2   :  { %v3375_v0 = vmax.f32 %v3336_v44, 0.0  ;;  %v3340_v48 = vadd.f32 %v3339_v3, %v5169_v15  ;;  %v3448_v58 = vadd.f32 %v3405_v45, %v3404_v5  ;;  %v3406_v37 = vmul.f32 %v3374_v33, %v4764_v57 }
 0x2f3   :  { %v3341_v56 = vpop.f32.mrf.mxu1  ;;  %v1829_v45 = vadd.f32 %v1797_v25, %v4960_v7  ;;  %v1881_v5 = vrot.slane %v1827_v63, %v5027_v39  ;;  %v1831_v33 = vadd.f32 %v1803_v14, %v4960_v7 }
 0x2f4   :  { %v3407_v42 = vmul.f32 %v3375_v0, %v4769_v23  ;;  %v3376_v51 = vmax.f32 %v3340_v48, 0.0  ;;  %v3342_v4 = vadd.f32 %v3341_v56, %v5172_v41  ;;  %3449 = vadd.xlane.f32.xlu0 %v3448_v58  ;;  %v1886_v0 = vrot.slane %v1828_v62, %v5035_v29 }
 0x2f5   :  { %v3343_v26 = vpop.f32.mrf.mxu1  ;;  %v1806_v28 = vpop.xlane.xlu1 %1805  ;;  %v1891_v59 = vrot.slane %v1829_v45, %v5049_v12 }
 0x2f6   :  { %v3377_v6 = vmax.f32 %v3342_v4, 0.0  ;;  %v3344_v32 = vadd.f32 %v3343_v26, %v5169_v15  ;;  %v3451_v31 = vadd.f32 %v3407_v42, %v3406_v37  ;;  %v3408_v35 = vmul.f32 %v3376_v51, %v4764_v57 }
 0x2f7   :  { %v3345_v16 = vpop.f32.mrf.mxu1  ;;  %v1825_v15 = vadd.f32 %v1785_v1, %v4960_v7  ;;  %v1857_v1 = vrot.slane %v1822_v17, %v4970_v47  ;;  %v1832_v48 = vadd.f32 %v1806_v28, %v4960_v7  ;;  %v1896_v4 = vrot.slane %v1830_v13, %v5060_v46 }
 0x2f8   :  { %v3409_v53 = vmul.f32 %v3377_v6, %v4769_v23  ;;  %v3378_v50 = vmax.f32 %v3344_v32, 0.0  ;;  %v3346_v40 = vadd.f32 %v3345_v16, %v5172_v41  ;;  %3452 = vadd.xlane.f32.xlu1 %v3451_v31  ;;  %v1901_v26 = vrot.slane %v1831_v33, %v5067_v34 }
 0x2f9   :  { %v1809_v11 = vpop.xlane.xlu0 %1808  ;;  %v1871_v43 = vrot.slane %v1825_v15, %v4999_v10  ;;  %v1906_v36 = vrot.slane %v1832_v48, %v5078_v21 }
 0x2fa   :  { %v3379_v60 = vmax.f32 %v3346_v40, 0.0  ;;  %v3454_v24 = vadd.f32 %v3409_v53, %v3408_v35  ;;  %v3410_v49 = vmul.f32 %v3378_v50, %v4764_v57  ;;  %v1876_v57 = vrot.slane %v1826_v19, %v5013_v52 }
 0x2fb   :  { %v1833_v42 = vadd.f32 %v1809_v11, %v4960_v7 }
 0x2fc   :  { %v3411_v41 = vmul.f32 %v3379_v60, %v4769_v23  ;;  %3455 = vadd.xlane.f32.xlu0 %v3454_v24  ;;  %2639 = vadd.xlane.f32.xlu1 %v5182_v8  ;;  %v1862_v23 = vsel %vm1014_vm3, %v1861_v61, %v1857_v1 }
 0x2fd   :  { %v1812_v3 = vpop.xlane.xlu1 %1811  ;;  %v1867_v8 = vsel %vm1021_vm4, %v1866_v22, %v1862_v23  ;;  %v1911_v38 = vrot.slane %v1833_v42, %v5091_v9 }
 0x2fe   :  { %v3457_v44 = vadd.f32 %v3411_v41, %v3410_v49  ;;  %v1872_v58 = vsel %vm1028_vm5, %v1871_v43, %v1867_v8  ;;  %v1834_v25 = vadd.f32 %v1812_v3, %v4960_v7 }
 0x2ff   :  { %v1877_v51 = vsel %vm1035_vm6, %v1876_v57, %v1872_v58 }
 0x300   :  { %3458 = vadd.xlane.f32.xlu0 %v3457_v44  ;;  %v1882_v37 = vsel %vm1042_vm7, %v1881_v5, %v1877_v51  ;;  %v1916_v50 = vrot.slane %v1834_v25, %v5098_v2 }
 0x301   :  { %v1815_v56 = vpop.xlane.xlu0 %1814  ;;  %v1887_v32 = vsel %vm1049_vm8, %v1886_v0, %v1882_v37 }
 0x302   :  { %v1835_v6 = vadd.f32 %v1815_v56, %v4960_v7  ;;  %v1892_v31 = vsel %vm1056_vm9, %v1891_v59, %v1887_v32 }
 0x303   :  { %v1897_v53 = vsel %vm1063_vm10, %v1896_v4, %v1892_v31 }
 0x304   :  { %v1902_v40 = vsel %vm1070_vm11, %v1901_v26, %v1897_v53  ;;  %v1921_v18 = vrot.slane %v1835_v6, %v5108_v54 }
 0x305   :  { %v1818_v16 = vpop.xlane.xlu1 %1817  ;;  %v1907_v14 = vsel %vm1077_vm12, %v1906_v36, %v1902_v40 }
 0x306   :  { %v1836_v35 = vadd.f32 %v1818_v16, %v4960_v7  ;;  %v1912_v60 = vsel %vm1084_vm13, %v1911_v38, %v1907_v14 }
 0x307   :  { %v1917_v19 = vsel %vm1091_vm14, %v1916_v50, %v1912_v60 }
 0x308   :  { %v1926_v17 = vrot.slane %v1836_v35, %v5113_v20  ;;  %v1922_v61 = vsel %vm1098_vm15, %v1921_v18, %v1917_v19 }
 0x309   :  { %v1821_v15 = vpop.xlane.xlu0 %1820 }
 0x30a   :  { %v1837_v24 = vadd.f32 %v1821_v15, %v4960_v7  ;;  %v1927_v49 = vsel %vm1105_vm0, %v1926_v17, %v1922_v61 }
 0x30c   :  { %v1931_v63 = vrot.slane %v1837_v24, %v5126_v27 }
 0x30d   :  { %v2595_v41 = vpop.xlane.xlu1 %2594 }
 0x30e   :  { %v1932_v28 = vsel %vm1112_vm1, %v1931_v63, %v1927_v49  ;;  %v2641_v51 = vadd.f32 %v2595_v41, %v4960_v7 }
 0x30f   :  { %1934 = vst [vmem:[%s5411_s9 + $0x1] sm:$0x1] %v1932_v28 }
 0x310   :  { %v2676_v31 = vrot.slane %v2641_v51, %v4970_v47 }
 0x311   :  { %v2598_v22 = vpop.xlane.xlu0 %2597 }
 0x312   :  { %v2642_v58 = vadd.f32 %v2598_v22, %v4960_v7 }
 0x314   :  { %v2680_v26 = vrot.slane %v2642_v58, %v4974_v30 }
 0x315   :  { %v2601_v62 = vpop.xlane.xlu1 %2600 }
 0x316   :  { %v2643_v42 = vadd.f32 %v2601_v62, %v4960_v7  ;;  %v2681_v18 = vsel %vm1014_vm3, %v2680_v26, %v2676_v31 }
 0x318   :  { %v2685_v36 = vrot.slane %v2643_v42, %v4981_v55 }
 0x319   :  { %v2604_v11 = vpop.xlane.xlu0 %2603 }
 0x31a   :  { %v2644_v4 = vadd.f32 %v2604_v11, %v4960_v7  ;;  %v2686_v60 = vsel %vm1021_vm4, %v2685_v36, %v2681_v18 }
 0x31c   :  { %v2690_v38 = vrot.slane %v2644_v4, %v4999_v10 }
 0x31d   :  { %v2607_v1 = vpop.xlane.xlu1 %2606 }
 0x31e   :  { %v2645_v37 = vadd.f32 %v2607_v1, %v4960_v7  ;;  %v2691_v19 = vsel %vm1028_vm5, %v2690_v38, %v2686_v60 }
 0x320   :  { %v2695_v50 = vrot.slane %v2645_v37, %v5013_v52 }
 0x321   :  { %v2610_v43 = vpop.xlane.xlu0 %2609 }
 0x322   :  { %v2646_v6 = vadd.f32 %v2610_v43, %v4960_v7  ;;  %v2696_v28 = vsel %vm1035_vm6, %v2695_v50, %v2691_v19 }
 0x324   :  { %v2700_v14 = vrot.slane %v2646_v6, %v5027_v39 }
 0x325   :  { %v2613_v45 = vpop.xlane.xlu1 %2612 }
 0x326   :  { %v2647_v16 = vadd.f32 %v2613_v45, %v4960_v7  ;;  %v2701_v62 = vsel %vm1042_vm7, %v2700_v14, %v2696_v28 }
 0x328   :  { %v2705_v24 = vrot.slane %v2647_v16, %v5035_v29 }
 0x329   :  { %v2616_v44 = vpop.xlane.xlu0 %2615 }
 0x32a   :  { %v2648_v35 = vadd.f32 %v2616_v44, %v4960_v7  ;;  %v2706_v44 = vsel %vm1049_vm8, %v2705_v24, %v2701_v62 }
 0x32c   :  { %v2710_v61 = vrot.slane %v2648_v35, %v5049_v12 }
 0x32d   :  { %v2619_v57 = vpop.xlane.xlu1 %2618 }
 0x32e   :  { %v2649_v40 = vadd.f32 %v2619_v57, %v4960_v7 }
 0x330   :  { %v2715_v41 = vrot.slane %v2649_v40, %v5060_v46 }
 0x331   :  { %v2622_v13 = vpop.xlane.xlu0 %2621 }
 0x332   :  { %v2650_v17 = vadd.f32 %v2622_v13, %v4960_v7 }
 0x334   :  { %v2720_v11 = vrot.slane %v2650_v17, %v5067_v34 }
 0x335   :  { %v2625_v23 = vpop.xlane.xlu1 %2624 }
 0x336   :  { %v2651_v57 = vadd.f32 %v2625_v23, %v4960_v7 }
 0x339   :  { %v2628_v5 = vpop.xlane.xlu0 %2627 }
 0x33a   :  { %v2652_v6 = vadd.f32 %v2628_v5, %v4960_v7 }
 0x33c   :  { %v2730_v18 = vrot.slane %v2652_v6, %v5091_v9 }
 0x33d   :  { %v2631_v33 = vpop.xlane.xlu1 %2630 }
 0x341   :  { %v5296_v3 = vpop.xlane.xlu0 %2633 }
 0x342   :  { %v2654_v38 = vadd.f32 %v5296_v3, %v4960_v7 }
 0x344   :  { %v2740_v24 = vrot.slane %v2654_v38, %v5108_v54 }
 0x345   :  { %v5298_v8 = vpop.xlane.xlu1 %2636 }
 0x34d   :  { %v3414_v0 = vpop.xlane.xlu0 %3413 }
 0x34e   :  { %v3460_v1 = vadd.f32 %v3414_v0, %v4960_v7 }
 0x350   :  { %v3495_v37 = vrot.slane %v3460_v1, %v4970_v47 }
 0x351   :  { %v3417_v48 = vpop.xlane.xlu1 %3416 }
 0x352   :  { %v3461_v63 = vadd.f32 %v3417_v48, %v4960_v7  ;;  %v2711_v48 = vsel %vm1056_vm9, %v2710_v61, %v2706_v44 }
 0x353   :  { %v2716_v51 = vsel %vm1063_vm10, %v2715_v41, %v2711_v48 }
 0x354   :  { %v3499_v58 = vrot.slane %v3461_v63, %v4974_v30  ;;  %v2721_v4 = vsel %vm1070_vm11, %v2720_v11, %v2716_v51  ;;  %v2725_v30 = vrot.slane %v2651_v57, %v5078_v21 }
 0x355   :  { %v3420_v56 = vpop.xlane.xlu0 %3419 }
 0x356   :  { %v3462_v22 = vadd.f32 %v3420_v56, %v4960_v7  ;;  %v3500_v16 = vsel %vm1014_vm3, %v3499_v58, %v3495_v37 }
 0x358   :  { %v3504_v0 = vrot.slane %v3462_v22, %v4981_v55  ;;  %v2653_v55 = vadd.f32 %v2631_v33, %v4960_v7 }
 0x359   :  { %v3423_v59 = vpop.xlane.xlu1 %3422 }
 0x35a   :  { %v3463_v43 = vadd.f32 %v3423_v59, %v4960_v7  ;;  %v3505_v35 = vsel %vm1021_vm4, %v3504_v0, %v3500_v16  ;;  %v2735_v17 = vrot.slane %v2653_v55, %v5098_v2 }
 0x35c   :  { %v3509_v23 = vrot.slane %v3463_v43, %v4999_v10 }
 0x35d   :  { %v3426_v25 = vpop.xlane.xlu0 %3425 }
 0x35e   :  { %v3464_v13 = vadd.f32 %v3426_v25, %v4960_v7  ;;  %v3510_v33 = vsel %vm1028_vm5, %v3509_v23, %v3505_v35 }
 0x361   :  { %v3429_v32 = vpop.xlane.xlu1 %3428 }
 0x362   :  { %v3465_v56 = vadd.f32 %v3429_v32, %v4960_v7  ;;  %v3514_v32 = vrot.slane %v3464_v13, %v5013_v52 }
 0x364   :  { %v3519_v31 = vrot.slane %v3465_v56, %v5027_v39  ;;  %v3515_v3 = vsel %vm1035_vm6, %v3514_v32, %v3510_v33 }
 0x365   :  { %v3432_v53 = vpop.xlane.xlu0 %3431 }
 0x366   :  { %v3466_v59 = vadd.f32 %v3432_v53, %v4960_v7  ;;  %v2655_v53 = vadd.f32 %v5298_v8, %v4960_v7 }
 0x368   :  { %v3524_v5 = vrot.slane %v3466_v59, %v5035_v29 }
 0x369   :  { %v3435_v15 = vpop.xlane.xlu1 %3434 }
 0x36a   :  { %v3467_v25 = vadd.f32 %v3435_v15, %v4960_v7  ;;  %v3520_v15 = vsel %vm1042_vm7, %v3519_v31, %v3515_v3 }
 0x36b   :  { %v3525_v19 = vsel %vm1049_vm8, %v3524_v5, %v3520_v15 }
 0x36c   :  { %v3529_v50 = vrot.slane %v3467_v25, %v5049_v12  ;;  %v2726_v12 = vsel %vm1077_vm12, %v2725_v30, %v2721_v4 }
 0x36d   :  { %v3438_v49 = vpop.xlane.xlu0 %3437  ;;  %v2731_v22 = vsel %vm1084_vm13, %v2730_v18, %v2726_v12 }
 0x36e   :  { %v3468_v36 = vadd.f32 %v3438_v49, %v4960_v7  ;;  %v3530_v49 = vsel %vm1056_vm9, %v3529_v50, %v3525_v19 }
 0x370   :  { %v3534_v14 = vrot.slane %v3468_v36, %v5060_v46  ;;  %v2745_v46 = vrot.slane %v2655_v53, %v5113_v20 }
 0x371   :  { %v3441_v45 = vpop.xlane.xlu1 %3440 }
 0x372   :  { %v3469_v47 = vadd.f32 %v3441_v45, %v4960_v7  ;;  %v3535_v62 = vsel %vm1063_vm10, %v3534_v14, %v3530_v49 }
 0x374   :  { %v3539_v8 = vrot.slane %v3469_v47, %v5067_v34 }
 0x375   :  { %v3444_v42 = vpop.xlane.xlu0 %3443 }
 0x376   :  { %v3470_v52 = vadd.f32 %v3444_v42, %v4960_v7  ;;  %v3540_v43 = vsel %vm1070_vm11, %v3539_v8, %v3535_v62 }
 0x378   :  { %v3544_v61 = vrot.slane %v3470_v52, %v5078_v21  ;;  %v2736_v21 = vsel %vm1091_vm14, %v2735_v17, %v2731_v22 }
 0x379   :  { %v3447_v26 = vpop.xlane.xlu1 %3446  ;;  %v2741_v44 = vsel %vm1098_vm15, %v2740_v24, %v2736_v21 }
 0x37a   :  { %v3471_v39 = vadd.f32 %v3447_v26, %v4960_v7  ;;  %v2746_v58 = vsel %vm1105_vm0, %v2745_v46, %v2741_v44 }
 0x37c   :  { %v3549_v28 = vrot.slane %v3471_v39, %v5091_v9  ;;  %v3545_v9 = vsel %vm1077_vm12, %v3544_v61, %v3540_v43 }
 0x37d   :  { %v3450_v10 = vpop.xlane.xlu0 %3449 }
 0x37e   :  { %v3472_v29 = vadd.f32 %v3450_v10, %v4960_v7 }
 0x380   :  { %v3554_v11 = vrot.slane %v3472_v29, %v5098_v2  ;;  %v3550_v2 = vsel %vm1084_vm13, %v3549_v28, %v3545_v9 }
 0x381   :  { %v3453_v40 = vpop.xlane.xlu1 %3452 }
 0x382   :  { %v3473_v60 = vadd.f32 %v3453_v40, %v4960_v7  ;;  %v3555_v42 = vsel %vm1091_vm14, %v3554_v11, %v3550_v2 }
 0x384   :  { %v3559_v45 = vrot.slane %v3473_v60, %v5108_v54 }
 0x385   :  { %v3456_v63 = vpop.xlane.xlu0 %3455  ;;  %v2640_v41 = vpop.xlane.xlu1 %2639 }
 0x386   :  { %v3474_v34 = vadd.f32 %v3456_v63, %v4960_v7  ;;  %v2656_v1 = vadd.f32 %v2640_v41, %v4960_v7  ;;  %v3560_v54 = vsel %vm1098_vm15, %v3559_v45, %v3555_v42 }
 0x388   :  { %v2750_v57 = vrot.slane %v2656_v1, %v5126_v27  ;;  %v3564_v13 = vrot.slane %v3474_v34, %v5113_v20 }
 0x389   :  { %v3459_v48 = vpop.xlane.xlu0 %3458 }
 0x38a   :  { %v3475_v56 = vadd.f32 %v3459_v48, %v4960_v7  ;;  %v2751_v51 = vsel %vm1112_vm1, %v2750_v57, %v2746_v58  ;;  %v3565_v20 = vsel %vm1105_vm0, %v3564_v13, %v3560_v54 }
 0x38b   :  { %2753 = vst [vmem:[%s5411_s9 + $0x2] sm:$0x1] %v2751_v51 }
 0x38c   :  { %v3569_v0 = vrot.slane %v3475_v56, %v5126_v27 }
 0x38e   :  { %v3570_v59 = vsel %vm1112_vm1, %v3569_v0, %v3565_v20 }
 0x38f   :  { %3572 = vst [vmem:[%s5411_s9 + $0x3] sm:$0x1] %v3570_v59 }
 0x390   :  { %3577 = vsyncpa [#allocation4], 1 }
 0x391   :  { %3578 = vsyncpa [#allocation6], 1 }
 0x392   :  { %3579 = vsyncpa [#allocation9], 1 }

</bundles_post_ra>
